<compile_context>
chip_gen: v6e
topology: v6e:2x2x1
jax: 0.10.0
libtpu: 0.0.40
codegen_flags: <defaults>
</compile_context>

<pallas_src>
import jax
import jax.numpy as jnp
import numpy as np
from jax.experimental import pallas as pl
from jax.experimental.pallas import tpu as pltpu


# ----------------------------------------------------------------------------
# Kernel
# ----------------------------------------------------------------------------
def _initial_resblock_kernel(xw_ref, w1s_ref, w2t_ref, bn_ref, o_ref,
                             im1_ref, im2_ref):
    """Fused InitialResBlock for one (batch, row-block) grid step.

    xw_ref : (1, Cin, Hb+4, W+4) bf16  input window, 2-px zero halo each side
    w1s_ref: (2*Cout, 9*Cin)     bf16  conv1 (rows :Cout) + 1x1 skip (rows Cout:)
                                       as one tap-major GEMM weight
    w2t_ref: (Cout, 9*Cout)      bf16  conv2 tap-major GEMM weight
    bn_ref : (Cout, 4)           f32   folded BN columns [sc1, sh1, scs, shs]
    o_ref  : (1, Cout, Hb*W)     f32   this block's output rows (lane-dense)
    im1_ref: (9*Cin,  (Hb+2)*(W+2)) bf16 scratch: conv1 im2col
    im2_ref: (9*Cout, Hb*W)      bf16  scratch: conv2 im2col
    """
    _, Cin, _, Ww = xw_ref.shape
    _, Cout, HbW = o_ref.shape
    W = Ww - 4
    Hb = HbW // W
    Ha, Wa = Hb + 2, W + 2            # activation rows/cols incl. 1-px halo ring
    H = Hb * pl.num_programs(1)       # full image height (for the halo mask)
    rb = pl.program_id(1)

    xw = xw_ref[0]                    # (Cin, Hb+4, W+4) bf16 (pre-cast in wrapper)

    # ---- conv1 + fused 1x1 skip: build im2col once, ONE big-K MXU dot ------
    for dy in range(3):
        slab = xw[:, dy:dy + Ha, :]                       # (Cin, Ha, W+4)
        for dx in range(3):
            t = dy * 3 + dx
            im1_ref[t * Cin:(t + 1) * Cin, :] = (
                slab[:, :, dx:dx + Wa].reshape(Cin, Ha * Wa))
    both = jnp.dot(w1s_ref[...], im1_ref[...],
                   preferred_element_type=jnp.float32)    # (2*Cout, Ha*Wa) f32
    y1 = both[:Cout, :]
    skp = both[Cout:, :]

    # ---- norm1 (folded eval-mode BN) + ReLU, dense (Cout, Ha*Wa) f32 -------
    a = jnp.maximum(y1 * bn_ref[:, 0:1] + bn_ref[:, 1:2], 0.0)
    a = a.reshape(Cout, Ha, Wa)

    # conv2's padding zero-pads the *activation*: zero the halo ring (rows
    # outside the image for edge blocks, and the two extra columns).
    row_g = rb * Hb - 1 + jax.lax.broadcasted_iota(jnp.int32, (1, Ha, 1), 1)
    col_l = jax.lax.broadcasted_iota(jnp.int32, (1, 1, Wa), 2)
    valid = (row_g >= 0) & (row_g < H) & (col_l >= 1) & (col_l <= W)
    a = jnp.where(valid, a, 0.0).astype(jnp.bfloat16)     # single bf16 cast

    # ---- conv2: im2col of the activation, ONE big-K MXU dot ----------------
    for dy in range(3):
        slab = a[:, dy:dy + Hb, :]                        # (Cout, Hb, W+2)
        for dx in range(3):
            t = dy * 3 + dx
            im2_ref[t * Cout:(t + 1) * Cout, :] = (
                slab[:, :, dx:dx + W].reshape(Cout, Hb * W))
    y2 = jnp.dot(w2t_ref[...], im2_ref[...],
                 preferred_element_type=jnp.float32)      # (Cout, Hb*W) f32

    # ---- skip norm + residual add; one dense (Cout, Hb*W) store ------------
    skc = skp.reshape(Cout, Ha, Wa)[:, 1:1 + Hb, 1:1 + W].reshape(Cout, Hb * W)
    o_ref[0] = (y2 + skc * bn_ref[:, 2:3] + bn_ref[:, 3:4]).astype(o_ref.dtype)


# ----------------------------------------------------------------------------
# Wrapper
# ----------------------------------------------------------------------------
def _pick_row_block(H, W, cap=64):
    """Largest row block <= cap that tiles H and keeps the output store lane-dense."""
    best = H
    for hb in range(1, min(H, cap) + 1):
        if H % hb == 0 and (hb * W) % 128 == 0:
            best = hb
    return best


def initial_res_block_forward(x_nchw, params, row_block=None):
    """Pallas implementation of InitialResBlock.forward (NCHW in / NCHW out)."""
    x = x_nchw.astype(jnp.float32)
    N, Cin, H, W = x.shape
    Cout = params["w1"].shape[-1]

    Hb = _pick_row_block(H, W) if row_block is None else int(row_block)
    if H % Hb != 0:
        raise ValueError(f"row_block={Hb} must divide H={H}")
    nrb = H // Hb
    if nrb > 1 and (Hb * W) % 128 != 0:
        raise ValueError("row_block * W must be a multiple of 128 when nrb > 1")

    # Pad H and W by 2 (1 px conv padding + 1 px recomputed activation halo),
    # build overlapped per-row-block input windows, cast to bf16 once.
    xp = jnp.pad(x, ((0, 0), (0, 0), (2, 2), (2, 2)))
    xwin = jnp.stack([xp[:, :, r * Hb:r * Hb + Hb + 4, :] for r in range(nrb)],
                     axis=1).reshape(N * nrb, Cin, Hb + 4, W + 4)
    xwin = xwin.astype(jnp.bfloat16)

    # conv1 weights (tap-major, K = 9*Cin) with the 1x1 skip fused in as Cout
    # extra output channels whose non-center-tap rows are zero.
    w1_2d = params["w1"].reshape(9 * Cin, Cout)
    skip_col = jnp.zeros((9 * Cin, Cout), jnp.float32)
    skip_col = skip_col.at[4 * Cin:5 * Cin, :].set(params["ws"])
    w1s_t = jnp.concatenate([w1_2d, skip_col], axis=1).T.astype(jnp.bfloat16)
    w2_t = params["w2"].reshape(9 * Cout, Cout).T.astype(jnp.bfloat16)

    # Folded BN table (Cout, 4): [scale1, shift1, scale_s, shift_s]; the 1x1
    # conv bias (PyTorch default bias=True) is folded into shift_s.
    shift_s = params["shift_s"] + params["scale_s"] * params["bs"]
    bn = jnp.stack([params["scale1"], params["shift1"],
                    params["scale_s"], shift_s], axis=1).astype(jnp.float32)

    out_flat = pl.pallas_call(
        _initial_resblock_kernel,
        out_shape=jax.ShapeDtypeStruct((N, Cout, H * W), jnp.float32),
        grid_spec=pltpu.PrefetchScalarGridSpec(
            num_scalar_prefetch=0,
            grid=(N, nrb),
            in_specs=[
                pl.BlockSpec((1, Cin, Hb + 4, W + 4),
                             lambda n, r: (n * nrb + r, 0, 0, 0)),
                pl.BlockSpec((2 * Cout, 9 * Cin), lambda n, r: (0, 0)),
                pl.BlockSpec((Cout, 9 * Cout), lambda n, r: (0, 0)),
                pl.BlockSpec((Cout, 4), lambda n, r: (0, 0)),
            ],
            out_specs=pl.BlockSpec((1, Cout, Hb * W), lambda n, r: (n, 0, r)),
            scratch_shapes=[
                pltpu.VMEM((9 * Cin, (Hb + 2) * (W + 2)), jnp.bfloat16),
                pltpu.VMEM((9 * Cout, Hb * W), jnp.bfloat16),
            ]),
        compiler_params=pltpu.CompilerParams(
            dimension_semantics=("parallel", "parallel")),
    )(xwin, w1s_t, w2_t, bn)

    return out_flat.reshape(N, Cout, H, W)


# ----------------------------------------------------------------------------
# Pure-JAX reference + deterministic parameters
# ----------------------------------------------------------------------------
def reference_forward(x_nchw, params, use_bf16=False):
    """lax-based reference. use_bf16=True mirrors the kernel's bf16 matmul
    operands (bf16 products are exact in f32, so it should match tightly)."""
    x = jnp.transpose(x_nchw, (0, 2, 3, 1)).astype(jnp.float32)      # NHWC
    mb = (lambda t: t.astype(jnp.bfloat16)) if use_bf16 else (lambda t: t)

    def conv3(x_, w_):
        return jax.lax.conv_general_dilated(
            mb(x_), mb(w_), (1, 1), "SAME",
            dimension_numbers=("NHWC", "HWIO", "NHWC"),
            preferred_element_type=jnp.float32)

    y1 = conv3(x, params["w1"])
    a = jnp.maximum(y1 * params["scale1"] + params["shift1"], 0.0)
    res = conv3(a, params["w2"])
    skip = jnp.einsum("nhwc,cd->nhwd", mb(x), mb(params["ws"]),
                      preferred_element_type=jnp.float32) + params["bs"]
    skip = skip * params["scale_s"] + params["shift_s"]
    return jnp.transpose(res + skip, (0, 3, 1, 2))


def make_params(key, Cin, Cout):
    k1, k2, k3, k4, k5, k6 = jax.random.split(key, 6)

    def norm(k, c):
        ka, kb, kc, kd = jax.random.split(k, 4)
        gamma = 1.0 + 0.1 * jax.random.normal(ka, (c,), jnp.float32)
        beta = 0.1 * jax.random.normal(kb, (c,), jnp.float32)
        mean = 0.1 * jax.random.normal(kc, (c,), jnp.float32)
        var = 1.0 + 0.1 * jnp.abs(jax.random.normal(kd, (c,), jnp.float32))
        scale = gamma / jnp.sqrt(var + 1e-5)     # eval-mode BatchNorm folded
        shift = beta - mean * scale
        return scale, shift

    w1 = jax.random.normal(k1, (3, 3, Cin, Cout), jnp.float32) / np.sqrt(9.0 * Cin)
    w2 = jax.random.normal(k2, (3, 3, Cout, Cout), jnp.float32) / np.sqrt(9.0 * Cout)
    ws = jax.random.normal(k3, (Cin, Cout), jnp.float32) / np.sqrt(float(Cin))
    bs = 0.1 * jax.random.normal(k6, (Cout,), jnp.float32)   # 1x1 conv bias
    scale1, shift1 = norm(k4, Cout)
    scale_s, shift_s = norm(k5, Cout)
    return dict(w1=w1, w2=w2, ws=ws, bs=bs, scale1=scale1, shift1=shift1,
                scale_s=scale_s, shift_s=shift_s)


if __name__ == "__main__":
    N, Cin, Cout, H, W = 2, 4, 8, 16, 16

    key = jax.random.PRNGKey(0)
    kx, kp = jax.random.split(key)
    x = jax.random.normal(kx, (N, Cin, H, W), jnp.float32)     # NCHW input
    params = make_params(kp, Cin, Cout)

    # row_block=8 -> 2 row blocks per image, exercising the halo/mask path and
    # giving a parallel grid of 4 steps.
    out = jax.block_until_ready(
        initial_res_block_forward(x, params, row_block=8))
    assert out.shape == (N, Cout, H, W)

    # Tight check vs a bf16-matched reference, loose check vs pure f32 spec.
    ref_bf16 = jax.block_until_ready(reference_forward(x, params, use_bf16=True))
    np.testing.assert_allclose(np.asarray(out), np.asarray(ref_bf16),
                               rtol=1e-2, atol=1e-2)
    ref_f32 = jax.block_until_ready(reference_forward(x, params, use_bf16=False))
    np.testing.assert_allclose(np.asarray(out), np.asarray(ref_f32),
                               rtol=1e-1, atol=1e-1)
    print("KERNEL_OK")
</pallas_src>

<mosaic_0001>
module attributes {stable_mosaic.version = 11 : i64} {
  func.func @_initial_resblock_kernel(%arg0: i32, %arg1: i32, %arg2: memref<1x4x12x20xbf16, #tpu.memory_space<vmem>>, %arg3: memref<16x36xbf16, #tpu.memory_space<vmem>>, %arg4: memref<8x72xbf16, #tpu.memory_space<vmem>>, %arg5: memref<8x4xf32, #tpu.memory_space<vmem>>, %arg6: memref<1x8x128xf32, #tpu.memory_space<vmem>>, %arg7: memref<36x180xbf16, #tpu.memory_space<vmem>>, %arg8: memref<72x128xbf16, #tpu.memory_space<vmem>>) attributes {dimension_semantics = [#tpu.dimension_semantics<parallel>, #tpu.dimension_semantics<parallel>], iteration_bounds = array<i64: 2, 2>, scalar_prefetch = 0 : i64, scratch_operands = 2 : i64, tpu.core_type = #tpu.core_type<tc>, window_params = [{transform_indices = @transform_0, window_bounds = array<i64: 1, 4, 12, 20>}, {pipeline_mode = #tpu.pipeline_mode<synchronous>, transform_indices = @transform_1, window_bounds = array<i64: 16, 36>}, {pipeline_mode = #tpu.pipeline_mode<synchronous>, transform_indices = @transform_2, window_bounds = array<i64: 8, 72>}, {pipeline_mode = #tpu.pipeline_mode<synchronous>, transform_indices = @transform_3, window_bounds = array<i64: 8, 4>}, {transform_indices = @transform_4, window_bounds = array<i64: 1, 8, 128>}]} {
    %c0 = arith.constant 0 : index
    %c0_0 = arith.constant 0 : index
    %c0_1 = arith.constant 0 : index
    %c0_2 = arith.constant 0 : index
    %0 = vector.load %arg2[%c0, %c0_0, %c0_1, %c0_2] : memref<1x4x12x20xbf16, #tpu.memory_space<vmem>>, vector<1x4x12x20xbf16>
    %1 = vector.shape_cast %0 : vector<1x4x12x20xbf16> to vector<4x12x20xbf16>
    %2 = vector.extract_strided_slice %1 {offsets = [0, 0, 0], sizes = [4, 10, 20], strides = [1, 1, 1]} : vector<4x12x20xbf16> to vector<4x10x20xbf16>
    %3 = vector.extract_strided_slice %2 {offsets = [0, 0, 0], sizes = [4, 10, 18], strides = [1, 1, 1]} : vector<4x10x20xbf16> to vector<4x10x18xbf16>
    %4 = vector.shape_cast %3 : vector<4x10x18xbf16> to vector<4x180xbf16>
    %c0_3 = arith.constant 0 : index
    %c0_4 = arith.constant 0 : index
    %5 = vector.load %arg7[%c0_3, %c0_4] : memref<36x180xbf16, #tpu.memory_space<vmem>>, vector<4x180xbf16>
    tpu.vector_store %arg7[%c0_3, %c0_4], %4 {strides = array<i32>} : memref<36x180xbf16, #tpu.memory_space<vmem>>, vector<4x180xbf16>,
    %6 = vector.extract_strided_slice %2 {offsets = [0, 0, 1], sizes = [4, 10, 18], strides = [1, 1, 1]} : vector<4x10x20xbf16> to vector<4x10x18xbf16>
    %7 = vector.shape_cast %6 : vector<4x10x18xbf16> to vector<4x180xbf16>
    %c4 = arith.constant 4 : index
    %c0_5 = arith.constant 0 : index
    %8 = vector.load %arg7[%c4, %c0_5] : memref<36x180xbf16, #tpu.memory_space<vmem>>, vector<4x180xbf16>
    tpu.vector_store %arg7[%c4, %c0_5], %7 {strides = array<i32>} : memref<36x180xbf16, #tpu.memory_space<vmem>>, vector<4x180xbf16>,
    %9 = vector.extract_strided_slice %2 {offsets = [0, 0, 2], sizes = [4, 10, 18], strides = [1, 1, 1]} : vector<4x10x20xbf16> to vector<4x10x18xbf16>
    %10 = vector.shape_cast %9 : vector<4x10x18xbf16> to vector<4x180xbf16>
    %c8 = arith.constant 8 : index
    %c0_6 = arith.constant 0 : index
    %11 = vector.load %arg7[%c8, %c0_6] : memref<36x180xbf16, #tpu.memory_space<vmem>>, vector<4x180xbf16>
    tpu.vector_store %arg7[%c8, %c0_6], %10 {strides = array<i32>} : memref<36x180xbf16, #tpu.memory_space<vmem>>, vector<4x180xbf16>,
    %12 = vector.extract_strided_slice %1 {offsets = [0, 1, 0], sizes = [4, 10, 20], strides = [1, 1, 1]} : vector<4x12x20xbf16> to vector<4x10x20xbf16>
    %13 = vector.extract_strided_slice %12 {offsets = [0, 0, 0], sizes = [4, 10, 18], strides = [1, 1, 1]} : vector<4x10x20xbf16> to vector<4x10x18xbf16>
    %14 = vector.shape_cast %13 : vector<4x10x18xbf16> to vector<4x180xbf16>
    %c12 = arith.constant 12 : index
    %c0_7 = arith.constant 0 : index
    %15 = vector.load %arg7[%c12, %c0_7] : memref<36x180xbf16, #tpu.memory_space<vmem>>, vector<4x180xbf16>
    tpu.vector_store %arg7[%c12, %c0_7], %14 {strides = array<i32>} : memref<36x180xbf16, #tpu.memory_space<vmem>>, vector<4x180xbf16>,
    %16 = vector.extract_strided_slice %12 {offsets = [0, 0, 1], sizes = [4, 10, 18], strides = [1, 1, 1]} : vector<4x10x20xbf16> to vector<4x10x18xbf16>
    %17 = vector.shape_cast %16 : vector<4x10x18xbf16> to vector<4x180xbf16>
    %c16 = arith.constant 16 : index
    %c0_8 = arith.constant 0 : index
    %18 = vector.load %arg7[%c16, %c0_8] : memref<36x180xbf16, #tpu.memory_space<vmem>>, vector<4x180xbf16>
    tpu.vector_store %arg7[%c16, %c0_8], %17 {strides = array<i32>} : memref<36x180xbf16, #tpu.memory_space<vmem>>, vector<4x180xbf16>,
    %19 = vector.extract_strided_slice %12 {offsets = [0, 0, 2], sizes = [4, 10, 18], strides = [1, 1, 1]} : vector<4x10x20xbf16> to vector<4x10x18xbf16>
    %20 = vector.shape_cast %19 : vector<4x10x18xbf16> to vector<4x180xbf16>
    %c20 = arith.constant 20 : index
    %c0_9 = arith.constant 0 : index
    %21 = vector.load %arg7[%c20, %c0_9] : memref<36x180xbf16, #tpu.memory_space<vmem>>, vector<4x180xbf16>
    tpu.vector_store %arg7[%c20, %c0_9], %20 {strides = array<i32>} : memref<36x180xbf16, #tpu.memory_space<vmem>>, vector<4x180xbf16>,
    %22 = vector.extract_strided_slice %1 {offsets = [0, 2, 0], sizes = [4, 10, 20], strides = [1, 1, 1]} : vector<4x12x20xbf16> to vector<4x10x20xbf16>
    %23 = vector.extract_strided_slice %22 {offsets = [0, 0, 0], sizes = [4, 10, 18], strides = [1, 1, 1]} : vector<4x10x20xbf16> to vector<4x10x18xbf16>
    %24 = vector.shape_cast %23 : vector<4x10x18xbf16> to vector<4x180xbf16>
    %c24 = arith.constant 24 : index
    %c0_10 = arith.constant 0 : index
    %25 = vector.load %arg7[%c24, %c0_10] : memref<36x180xbf16, #tpu.memory_space<vmem>>, vector<4x180xbf16>
    tpu.vector_store %arg7[%c24, %c0_10], %24 {strides = array<i32>} : memref<36x180xbf16, #tpu.memory_space<vmem>>, vector<4x180xbf16>,
    %26 = vector.extract_strided_slice %22 {offsets = [0, 0, 1], sizes = [4, 10, 18], strides = [1, 1, 1]} : vector<4x10x20xbf16> to vector<4x10x18xbf16>
    %27 = vector.shape_cast %26 : vector<4x10x18xbf16> to vector<4x180xbf16>
    %c28 = arith.constant 28 : index
    %c0_11 = arith.constant 0 : index
    %28 = vector.load %arg7[%c28, %c0_11] : memref<36x180xbf16, #tpu.memory_space<vmem>>, vector<4x180xbf16>
    tpu.vector_store %arg7[%c28, %c0_11], %27 {strides = array<i32>} : memref<36x180xbf16, #tpu.memory_space<vmem>>, vector<4x180xbf16>,
    %29 = vector.extract_strided_slice %22 {offsets = [0, 0, 2], sizes = [4, 10, 18], strides = [1, 1, 1]} : vector<4x10x20xbf16> to vector<4x10x18xbf16>
    %30 = vector.shape_cast %29 : vector<4x10x18xbf16> to vector<4x180xbf16>
    %c32 = arith.constant 32 : index
    %c0_12 = arith.constant 0 : index
    %31 = vector.load %arg7[%c32, %c0_12] : memref<36x180xbf16, #tpu.memory_space<vmem>>, vector<4x180xbf16>
    tpu.vector_store %arg7[%c32, %c0_12], %30 {strides = array<i32>} : memref<36x180xbf16, #tpu.memory_space<vmem>>, vector<4x180xbf16>,
    %c0_13 = arith.constant 0 : index
    %c0_14 = arith.constant 0 : index
    %32 = vector.load %arg3[%c0_13, %c0_14] : memref<16x36xbf16, #tpu.memory_space<vmem>>, vector<16x36xbf16>
    %c0_15 = arith.constant 0 : index
    %c0_16 = arith.constant 0 : index
    %33 = vector.load %arg7[%c0_15, %c0_16] : memref<36x180xbf16, #tpu.memory_space<vmem>>, vector<36x180xbf16>
    %cst = arith.constant dense<0.000000e+00> : vector<16x180xf32>
    %34 = tpu.matmul %32, %33, %cst {dimension_numbers = #tpu.dot_dimension_numbers<[1], [0], [0], [1], [0, 0, 1, 1], [], []>} : vector<16x36xbf16>, vector<36x180xbf16>, vector<16x180xf32> -> vector<16x180xf32>
    %35 = vector.extract_strided_slice %34 {offsets = [0, 0], sizes = [8, 180], strides = [1, 1]} : vector<16x180xf32> to vector<8x180xf32>
    %36 = vector.extract_strided_slice %34 {offsets = [8, 0], sizes = [8, 180], strides = [1, 1]} : vector<16x180xf32> to vector<8x180xf32>
    %c0_17 = arith.constant 0 : index
    %c0_18 = arith.constant 0 : index
    %37 = vector.load %arg5[%c0_17, %c0_18] : memref<8x4xf32, #tpu.memory_space<vmem>>, vector<8x1xf32>
    %38 = vector.broadcast %37 : vector<8x1xf32> to vector<8x180xf32>
    %39 = arith.mulf %35, %38 : vector<8x180xf32>
    %c0_19 = arith.constant 0 : index
    %c1 = arith.constant 1 : index
    %40 = vector.load %arg5[%c0_19, %c1] : memref<8x4xf32, #tpu.memory_space<vmem>>, vector<8x1xf32>
    %41 = vector.broadcast %40 : vector<8x1xf32> to vector<8x180xf32>
    %42 = arith.addf %39, %41 : vector<8x180xf32>
    %cst_20 = arith.constant 0.000000e+00 : f32
    %43 = vector.broadcast %cst_20 : f32 to vector<8x180xf32>
    %44 = arith.maximumf %42, %43 : vector<8x180xf32>
    %45 = vector.shape_cast %44 : vector<8x180xf32> to vector<8x10x18xf32>
    %c8_i32 = arith.constant 8 : i32
    %46 = arith.muli %arg1, %c8_i32 : i32
    %c1_i32 = arith.constant 1 : i32
    %47 = arith.subi %46, %c1_i32 : i32
    %48 = tpu.iota {dimensions = array<i32: 1>} : vector<1x10x1xi32>
    %49 = vector.broadcast %47 : i32 to vector<1x10x1xi32>
    %50 = arith.addi %49, %48 : vector<1x10x1xi32>
    %51 = tpu.iota {dimensions = array<i32: 2>} : vector<1x1x18xi32>
    %c0_i32 = arith.constant 0 : i32
    %52 = vector.broadcast %c0_i32 : i32 to vector<1x10x1xi32>
    %53 = arith.cmpi sge, %50, %52 : vector<1x10x1xi32>
    %c16_i32 = arith.constant 16 : i32
    %54 = vector.broadcast %c16_i32 : i32 to vector<1x10x1xi32>
    %55 = arith.cmpi slt, %50, %54 : vector<1x10x1xi32>
    %56 = arith.andi %53, %55 : vector<1x10x1xi1>
    %c1_i32_21 = arith.constant 1 : i32
    %57 = vector.broadcast %c1_i32_21 : i32 to vector<1x1x18xi32>
    %58 = arith.cmpi sge, %51, %57 : vector<1x1x18xi32>
    %59 = vector.broadcast %56 : vector<1x10x1xi1> to vector<1x10x18xi1>
    %60 = vector.broadcast %58 : vector<1x1x18xi1> to vector<1x10x18xi1>
    %61 = arith.andi %59, %60 : vector<1x10x18xi1>
    %c16_i32_22 = arith.constant 16 : i32
    %62 = vector.broadcast %c16_i32_22 : i32 to vector<1x1x18xi32>
    %63 = arith.cmpi sle, %51, %62 : vector<1x1x18xi32>
    %64 = vector.broadcast %63 : vector<1x1x18xi1> to vector<1x10x18xi1>
    %65 = arith.andi %61, %64 : vector<1x10x18xi1>
    %cst_23 = arith.constant 0.000000e+00 : f32
    %66 = vector.shape_cast %65 : vector<1x10x18xi1> to vector<1x10x18xi1>
    %67 = vector.broadcast %66 : vector<1x10x18xi1> to vector<8x10x18xi1>
    %68 = vector.broadcast %cst_23 : f32 to vector<8x10x18xf32>
    %69 = arith.select %67, %45, %68 : vector<8x10x18xi1>, vector<8x10x18xf32>
    %70 = arith.truncf %69 : vector<8x10x18xf32> to vector<8x10x18xbf16>
    %71 = vector.extract_strided_slice %70 {offsets = [0, 0, 0], sizes = [8, 8, 18], strides = [1, 1, 1]} : vector<8x10x18xbf16> to vector<8x8x18xbf16>
    %72 = vector.extract_strided_slice %71 {offsets = [0, 0, 0], sizes = [8, 8, 16], strides = [1, 1, 1]} : vector<8x8x18xbf16> to vector<8x8x16xbf16>
    %73 = vector.shape_cast %72 : vector<8x8x16xbf16> to vector<8x128xbf16>
    %c0_24 = arith.constant 0 : index
    %c0_25 = arith.constant 0 : index
    %74 = vector.load %arg8[%c0_24, %c0_25] : memref<72x128xbf16, #tpu.memory_space<vmem>>, vector<8x128xbf16>
    tpu.vector_store %arg8[%c0_24, %c0_25], %73 {strides = array<i32>} : memref<72x128xbf16, #tpu.memory_space<vmem>>, vector<8x128xbf16>,
    %75 = vector.extract_strided_slice %71 {offsets = [0, 0, 1], sizes = [8, 8, 16], strides = [1, 1, 1]} : vector<8x8x18xbf16> to vector<8x8x16xbf16>
    %76 = vector.shape_cast %75 : vector<8x8x16xbf16> to vector<8x128xbf16>
    %c8_26 = arith.constant 8 : index
    %c0_27 = arith.constant 0 : index
    %77 = vector.load %arg8[%c8_26, %c0_27] : memref<72x128xbf16, #tpu.memory_space<vmem>>, vector<8x128xbf16>
    tpu.vector_store %arg8[%c8_26, %c0_27], %76 {strides = array<i32>} : memref<72x128xbf16, #tpu.memory_space<vmem>>, vector<8x128xbf16>,
    %78 = vector.extract_strided_slice %71 {offsets = [0, 0, 2], sizes = [8, 8, 16], strides = [1, 1, 1]} : vector<8x8x18xbf16> to vector<8x8x16xbf16>
    %79 = vector.shape_cast %78 : vector<8x8x16xbf16> to vector<8x128xbf16>
    %c16_28 = arith.constant 16 : index
    %c0_29 = arith.constant 0 : index
    %80 = vector.load %arg8[%c16_28, %c0_29] : memref<72x128xbf16, #tpu.memory_space<vmem>>, vector<8x128xbf16>
    tpu.vector_store %arg8[%c16_28, %c0_29], %79 {strides = array<i32>} : memref<72x128xbf16, #tpu.memory_space<vmem>>, vector<8x128xbf16>,
    %81 = vector.extract_strided_slice %70 {offsets = [0, 1, 0], sizes = [8, 8, 18], strides = [1, 1, 1]} : vector<8x10x18xbf16> to vector<8x8x18xbf16>
    %82 = vector.extract_strided_slice %81 {offsets = [0, 0, 0], sizes = [8, 8, 16], strides = [1, 1, 1]} : vector<8x8x18xbf16> to vector<8x8x16xbf16>
    %83 = vector.shape_cast %82 : vector<8x8x16xbf16> to vector<8x128xbf16>
    %c24_30 = arith.constant 24 : index
    %c0_31 = arith.constant 0 : index
    %84 = vector.load %arg8[%c24_30, %c0_31] : memref<72x128xbf16, #tpu.memory_space<vmem>>, vector<8x128xbf16>
    tpu.vector_store %arg8[%c24_30, %c0_31], %83 {strides = array<i32>} : memref<72x128xbf16, #tpu.memory_space<vmem>>, vector<8x128xbf16>,
    %85 = vector.extract_strided_slice %81 {offsets = [0, 0, 1], sizes = [8, 8, 16], strides = [1, 1, 1]} : vector<8x8x18xbf16> to vector<8x8x16xbf16>
    %86 = vector.shape_cast %85 : vector<8x8x16xbf16> to vector<8x128xbf16>
    %c32_32 = arith.constant 32 : index
    %c0_33 = arith.constant 0 : index
    %87 = vector.load %arg8[%c32_32, %c0_33] : memref<72x128xbf16, #tpu.memory_space<vmem>>, vector<8x128xbf16>
    tpu.vector_store %arg8[%c32_32, %c0_33], %86 {strides = array<i32>} : memref<72x128xbf16, #tpu.memory_space<vmem>>, vector<8x128xbf16>,
    %88 = vector.extract_strided_slice %81 {offsets = [0, 0, 2], sizes = [8, 8, 16], strides = [1, 1, 1]} : vector<8x8x18xbf16> to vector<8x8x16xbf16>
    %89 = vector.shape_cast %88 : vector<8x8x16xbf16> to vector<8x128xbf16>
    %c40 = arith.constant 40 : index
    %c0_34 = arith.constant 0 : index
    %90 = vector.load %arg8[%c40, %c0_34] : memref<72x128xbf16, #tpu.memory_space<vmem>>, vector<8x128xbf16>
    tpu.vector_store %arg8[%c40, %c0_34], %89 {strides = array<i32>} : memref<72x128xbf16, #tpu.memory_space<vmem>>, vector<8x128xbf16>,
    %91 = vector.extract_strided_slice %70 {offsets = [0, 2, 0], sizes = [8, 8, 18], strides = [1, 1, 1]} : vector<8x10x18xbf16> to vector<8x8x18xbf16>
    %92 = vector.extract_strided_slice %91 {offsets = [0, 0, 0], sizes = [8, 8, 16], strides = [1, 1, 1]} : vector<8x8x18xbf16> to vector<8x8x16xbf16>
    %93 = vector.shape_cast %92 : vector<8x8x16xbf16> to vector<8x128xbf16>
    %c48 = arith.constant 48 : index
    %c0_35 = arith.constant 0 : index
    %94 = vector.load %arg8[%c48, %c0_35] : memref<72x128xbf16, #tpu.memory_space<vmem>>, vector<8x128xbf16>
    tpu.vector_store %arg8[%c48, %c0_35], %93 {strides = array<i32>} : memref<72x128xbf16, #tpu.memory_space<vmem>>, vector<8x128xbf16>,
    %95 = vector.extract_strided_slice %91 {offsets = [0, 0, 1], sizes = [8, 8, 16], strides = [1, 1, 1]} : vector<8x8x18xbf16> to vector<8x8x16xbf16>
    %96 = vector.shape_cast %95 : vector<8x8x16xbf16> to vector<8x128xbf16>
    %c56 = arith.constant 56 : index
    %c0_36 = arith.constant 0 : index
    %97 = vector.load %arg8[%c56, %c0_36] : memref<72x128xbf16, #tpu.memory_space<vmem>>, vector<8x128xbf16>
    tpu.vector_store %arg8[%c56, %c0_36], %96 {strides = array<i32>} : memref<72x128xbf16, #tpu.memory_space<vmem>>, vector<8x128xbf16>,
    %98 = vector.extract_strided_slice %91 {offsets = [0, 0, 2], sizes = [8, 8, 16], strides = [1, 1, 1]} : vector<8x8x18xbf16> to vector<8x8x16xbf16>
    %99 = vector.shape_cast %98 : vector<8x8x16xbf16> to vector<8x128xbf16>
    %c64 = arith.constant 64 : index
    %c0_37 = arith.constant 0 : index
    %100 = vector.load %arg8[%c64, %c0_37] : memref<72x128xbf16, #tpu.memory_space<vmem>>, vector<8x128xbf16>
    tpu.vector_store %arg8[%c64, %c0_37], %99 {strides = array<i32>} : memref<72x128xbf16, #tpu.memory_space<vmem>>, vector<8x128xbf16>,
    %c0_38 = arith.constant 0 : index
    %c0_39 = arith.constant 0 : index
    %101 = vector.load %arg4[%c0_38, %c0_39] : memref<8x72xbf16, #tpu.memory_space<vmem>>, vector<8x72xbf16>
    %c0_40 = arith.constant 0 : index
    %c0_41 = arith.constant 0 : index
    %102 = vector.load %arg8[%c0_40, %c0_41] : memref<72x128xbf16, #tpu.memory_space<vmem>>, vector<72x128xbf16>
    %cst_42 = arith.constant dense<0.000000e+00> : vector<8x128xf32>
    %103 = tpu.matmul %101, %102, %cst_42 {dimension_numbers = #tpu.dot_dimension_numbers<[1], [0], [0], [1], [0, 0, 1, 1], [], []>} : vector<8x72xbf16>, vector<72x128xbf16>, vector<8x128xf32> -> vector<8x128xf32>
    %104 = vector.shape_cast %36 : vector<8x180xf32> to vector<8x10x18xf32>
    %105 = vector.extract_strided_slice %104 {offsets = [0, 1, 1], sizes = [8, 8, 16], strides = [1, 1, 1]} : vector<8x10x18xf32> to vector<8x8x16xf32>
    %106 = vector.shape_cast %105 : vector<8x8x16xf32> to vector<8x128xf32>
    %c0_43 = arith.constant 0 : index
    %c2 = arith.constant 2 : index
    %107 = vector.load %arg5[%c0_43, %c2] : memref<8x4xf32, #tpu.memory_space<vmem>>, vector<8x1xf32>
    %108 = vector.broadcast %107 : vector<8x1xf32> to vector<8x128xf32>
    %109 = arith.mulf %106, %108 : vector<8x128xf32>
    %110 = arith.addf %103, %109 : vector<8x128xf32>
    %c0_44 = arith.constant 0 : index
    %c3 = arith.constant 3 : index
    %111 = vector.load %arg5[%c0_44, %c3] : memref<8x4xf32, #tpu.memory_space<vmem>>, vector<8x1xf32>
    %112 = vector.broadcast %111 : vector<8x1xf32> to vector<8x128xf32>
    %113 = arith.addf %110, %112 : vector<8x128xf32>
    %c0_45 = arith.constant 0 : index
    %c0_46 = arith.constant 0 : index
    %c0_47 = arith.constant 0 : index
    %114 = vector.load %arg6[%c0_45, %c0_46, %c0_47] : memref<1x8x128xf32, #tpu.memory_space<vmem>>, vector<1x8x128xf32>
    %115 = vector.shape_cast %114 : vector<1x8x128xf32> to vector<8x128xf32>
    %116 = vector.shape_cast %113 : vector<8x128xf32> to vector<1x8x128xf32>
    tpu.vector_store %arg6[%c0_45, %c0_46, %c0_47], %116 {strides = array<i32>} : memref<1x8x128xf32, #tpu.memory_space<vmem>>, vector<1x8x128xf32>,
    return
  }
  func.func @transform_0(%arg0: i32, %arg1: i32) -> (i32, i32, i32, i32) {
    %c2_i32 = arith.constant 2 : i32
    %0 = arith.muli %arg0, %c2_i32 : i32
    %1 = arith.addi %0, %arg1 : i32
    %c0_i32 = arith.constant 0 : i32
    %c0_i32_0 = arith.constant 0 : i32
    %c0_i32_1 = arith.constant 0 : i32
    %c0_i32_2 = arith.constant 0 : i32
    return %1, %c0_i32, %c0_i32_0, %c0_i32_1 : i32, i32, i32, i32
  }
  func.func @transform_1(%arg0: i32, %arg1: i32) -> (i32, i32) {
    %c0_i32 = arith.constant 0 : i32
    %c0_i32_0 = arith.constant 0 : i32
    %c0_i32_1 = arith.constant 0 : i32
    return %c0_i32, %c0_i32_0 : i32, i32
  }
  func.func @transform_2(%arg0: i32, %arg1: i32) -> (i32, i32) {
    %c0_i32 = arith.constant 0 : i32
    %c0_i32_0 = arith.constant 0 : i32
    %c0_i32_1 = arith.constant 0 : i32
    return %c0_i32, %c0_i32_0 : i32, i32
  }
  func.func @transform_3(%arg0: i32, %arg1: i32) -> (i32, i32) {
    %c0_i32 = arith.constant 0 : i32
    %c0_i32_0 = arith.constant 0 : i32
    %c0_i32_1 = arith.constant 0 : i32
    return %c0_i32, %c0_i32_0 : i32, i32
  }
  func.func @transform_4(%arg0: i32, %arg1: i32) -> (i32, i32, i32) {
    %c0_i32 = arith.constant 0 : i32
    %c0_i32_0 = arith.constant 0 : i32
    return %arg0, %c0_i32, %arg1 : i32, i32, i32
  }
}

</mosaic_0001>

<bundles_post_ra>
// kernel: tpu_custom_call.1
= control target key start
LH: loop header
LB: loop body
LE: loop exit
PB: predicated region body
PF: predicated region fallthrough
CT: control target
= control target key end

     0   :  { %9 = vsyncpa [#allocation5], 0  ;;  %s7083_s0 = inlined_call_operand.vmem [shape: bf16[4,4,12,20], index: 0, kind: input, shape index: {}]   ;;  %s7084_s1 = inlined_call_operand.vmem [shape: bf16[16,36], index: 1, kind: input, shape index: {}]   ;;  %s7085_s2 = inlined_call_operand.vmem [shape: bf16[8,72], index: 2, kind: input, shape index: {}]   ;;  %s7086_s3 = inlined_call_operand.vmem [shape: f32[8,4], index: 3, kind: input, shape index: {}]   ;;  %s7087_s4 = inlined_call_operand.hbm [shape: f32[2,8,256], index: 4, kind: output, shape index: {}]  }
   0x1   :  { %11 = vsyncpa [#allocation5 + $0x1], 0  ;;  %s4899_s15 = smov 0   ;;  %s4901_s16 = smov 0  }
   0x2   :  { %s4903_s17 = smov 0   ;;  %s4905_s18 = smov 0  }
   0x3   :  { %s4907_s19 = smov 0   ;;  %s4909_s20 = smov 0  }
   0x4   :  { %s4911_s21 = smov 0   ;;  %s4913_s22 = smov 0  }
   0x5 LB: > { %s4468_s23 = sadd.s32 4294967295, %s4839_s22   ;;  %s4469_s24 = sadd.s32 4294967294, %s4839_s22   ;;  %s4839_s22 = sphi %s4913_s22, %s17_s22   ;;  %s4835_s21 = sphi %s4911_s21, %s7178_s21   ;;  %s4831_s20 = sphi %s4909_s20, %s7177_s20   ;;  %s4827_s19 = sphi %s4907_s19, %s7176_s19   ;;  %s4823_s18 = sphi %s4905_s18, %s7175_s18   ;;  %s4819_s17 = sphi %s4903_s17, %s7174_s17   ;;  %s4815_s16 = sphi %s4901_s16, %s7173_s16   ;;  %s4811_s15 = sphi %s4899_s15, %s7172_s15  }
   0x6   : > { %s26_s25 = sadd.s32 1, %s4831_s20  ;;  %s29_s26 = sadd.s32 1, %s4835_s21 }
   0x7   : > { %p27_p0 = scmp.ge.s32.totalorder %s26_s25, 2  ;;  %p141_p1 = scmp.ne.s32.totalorder %s4819_s17, %s4815_s16 }
   0x8   : > { %p142_p2 = scmp.eq.s32.totalorder %s4468_s23, 3  ;;  %p147_p5 = scmp.ne.s32.totalorder %s4815_s16, %s4811_s15 }
   0x9   : > { %s7180_s25 = smov (%p27_p0, %s26_s25), 0  ;;  %s7182_s26 = smov (!%p27_p0, %s29_s26), %s4835_s21 }
   0xa   : > { %s127_s27 = ssub.s32 %s4831_s20, %s7180_s25  ;;  %p4950_p3 = por %p142_p2, %p141_p1 }
   0xb   : > { %p31_p4 = scmp.ge.s32.totalorder %s7182_s26, 2  ;;  %p148_p6 = scmp.eq.s32.totalorder %s4469_s24, 3 }
   0xc   : > { %p4474_p7 = scmp.ge.s32.totalorder %s4839_s22, 1  ;;  %p187_p9 = scmp.lt.s32.totalorder %s4839_s22, 5 }
   0xd   : > { %s7184_s26 = smov (%p31_p4, %s7182_s26), 0  ;;  %p4959_p8 = por %p148_p6, %p147_p5 }
   0xe   : > { %s126_s30 = ssub.s32 %s4835_s21, %s7184_s26  ;;  %s131_s5 = sadd.s32 1, %s4819_s17 }
   0xf   : > { %s128_s6 = sor.u32 %s127_s27, %s126_s30  ;;  %p188_p10 = pnand %p4474_p7, %p187_p9 }
  0x10   : > { %p129_p11 = scmp.eq.s32.totalorder %s128_s6, 0 }
  0x11   : > { %191 = sbr.rel (%p188_p10) target bundleno = 1546 (0x60a), region = 36 }
  0x12   : > { %s4968_s7 = scalar_select %p129_p11, %s4819_s17, %s131_s5  }
  0x16   : > { %s4476_s8 = sshll.u32 %s4827_s19, 1  ;;  %v4841_v0 = vmov 1983009808   ;;  %v7088_v2 = vlaneseq  ;;  %vm1474_vm0 = vcmask 1042432   ;;  %vm1475_vm1 = vcmask 1046532   ;;  %s4843_s19 = smov 126  }
  0x17   : > { %s4972_s9 = sadd.s32 %s4823_s18, %s4476_s8  ;;  %v234_v1 = vunpack.c.l.s4 %v4841_v0  ;;  %vm4984_vm2 = vmor %vm1474_vm0, %vm1475_vm1  ;;  %v7096_v6 = vmov 0   ;;  %vm821_vm3 = vsmask.f32 3328  ;;  %vm822_vm4 = vsmask.f32 7440  ;;  %s7103_s23 = smov 127  }
  0x18   : > { %p217_p12 = scmp.lt.s32.totalorder %s4972_s9, 3  ;;  %v4977_v4 = vshrl.u32 %v7088_v2, 7  ;;  %2148 = vmatprep.mubr.bf16.mxu0 %v7096_v6  ;;  %4723 = vset.pattern.permute.xlu1 %v7096_v6  ;;  %vm5077_vm5 = vmor %vm821_vm3, %vm822_vm4  ;;  %s4846_s24 = smov 36   ;;  %vm379_vm6 = vcmask 146432   ;;  %vm383_vm7 = vcmask 293888   ;;  %vm386_vm8 = vcmask 441344  }
  0x19   : > { %v235_v3 = vunpack.c.0.s8 %v234_v1  ;;  %s4847_s27 = smov 18   ;;  %s4848_s30 = smov 54   ;;  %vm389_vm9 = vcmask 588800   ;;  %vm392_vm10 = vcmask 736256   ;;  %vm395_vm11 = vcmask 883712  }
  0x1a   : > { %s218_s10 = scalar_select %p217_p12, %s4972_s9, 3  ;;  %7109 = vst [vmem:[#allocation7_spill] sm:$0xff] %v4977_v4  ;;  %vm401_vm12 = vcmask 130048   ;;  %vm398_vm13 = vcmask 1031168   ;;  %vm404_vm14 = vcmask 277504   ;;  %vm413_vm15 = vcmask 1041408  }
  0x1b   : > { %v5007_v15 = vsub.s32 %v235_v3, %v4977_v4  ;;  %s4849_s5 = smov 72   ;;  %s4850_s6 = smov 16   ;;  %vm414_vm0 = vcmask 422916   ;;  %vm622_vm3 = vcmask 424966  }
  0x1c   : > { %s4599_s11 = sshll.u32 %s218_s10, 5  ;;  %s4851_s8 = smov 90   ;;  %vm5887_vm1 = vmor %vm414_vm0, %vm413_vm15 }
  0x1d   : > { %s4982_s14 = scalar_lea.vmem %s7083_s0, %s4599_s11  ;;  %s4852_s10 = smov 108  }
  0x1e   : > { %v4991_v7 = vld [vmem:[%s4982_s14 + $0x10] sm:$0xf]  ;;  %v4994_v8 = vld [vmem:[%s4982_s14 + $0x14] sm:$0x3]  ;;  %v4997_v9 = vld [vmem:[%s4982_s14] sm:$0xf] }
  0x1f   : > { %7112 = vst [vmem:[#allocation8_spill] sm:$0xff] %v4991_v7  ;;  %v4541_v10 = vrot.slane %v4991_v7, 9  ;;  %v1489_v11 = vrot.slane %v4994_v8, 5  ;;  %v5002_v12 = vld [vmem:[%s4982_s14 + $0x4] sm:$0x3]  ;;  %v4539_v13 = vrot.slane %v4997_v9, 9 }
  0x20   : > { %v825_v14 = vshrl.u32 %v4997_v9, 16  ;;  %v1479_v16 = vrot.slane %v5002_v12, 5  ;;  %v5011_v17 = vld [vmem:[%s4982_s14 + $0x18] sm:$0xf]  ;;  %v5014_v18 = vld [vmem:[%s4982_s14 + $0x1c] sm:$0x3] }
  0x21   : > { %7113 = vst [vmem:[#allocation9_spill] sm:$0xff] %v5011_v17  ;;  %v828_v19 = vshll.u32 %v4997_v9, 16  ;;  %v5021_v20 = vsel %vm4984_vm2, %v4541_v10, %v1489_v11  ;;  %v4542_v21 = vrot.slane %v5011_v17, 9  ;;  %v1494_v22 = vrot.slane %v5014_v18, 5  ;;  %v5026_v23 = vld [vmem:[%s4982_s14 + $0x8] sm:$0xf] }
  0x22   : > { %7114 = vst [vmem:[#allocation10_spill] sm:$0xff] %v5026_v23  ;;  %v5029_v24 = vld [vmem:[%s4982_s14 + $0xc] sm:$0x3]  ;;  %1882 = vrot.lane.b32.xlu1 %v5021_v20, %s4843_s19  ;;  %v5035_v25 = vrot.slane %v5021_v20, %v5007_v15  ;;  %v1480_v26 = vsel %vm4984_vm2, %v4539_v13, %v1479_v16  ;;  %v4540_v27 = vrot.slane %v5026_v23, 9  ;;  %v844_v31 = vshrl.u32 %v5026_v23, 16  ;;  %s4853_s11 = smov 34  }
  0x23   : > { %v1484_v28 = vrot.slane %v5029_v24, 5  ;;  %1874 = vrot.lane.b32.xlu0 %v1480_v26, %s4843_s19  ;;  %v5045_v29 = vrot.slane %v1480_v26, %v5007_v15  ;;  %v5049_v30 = vsel %vm4984_vm2, %v4542_v21, %v1494_v22  ;;  %v847_v32 = vshll.u32 %v5026_v23, 16  ;;  %s4862_s12 = smov 112   ;;  %s4863_s13 = smov 20  }
  0x24   : > { %v5055_v33 = vrot.slane %v5049_v30, %v5007_v15  ;;  %v853_v35 = vshll.u32 %v5029_v24, 16  ;;  %v827_v36 = vrot.slane %v825_v14, 4  ;;  %v846_v40 = vrot.slane %v844_v31, 4 }
  0x25   : > { %v1485_v34 = vsel %vm4984_vm2, %v4540_v27, %v1484_v28  ;;  %v1513_v37 = vcombine.low %v5045_v29, %v5035_v25  ;;  %v1514_v38 = vcombine.high %v5045_v29, %v5035_v25  ;;  %v849_v41 = vrot.slane %v847_v32, 5 }
  0x26   : > { %v5065_v39 = vrot.slane %v1485_v34, %v5007_v15  ;;  %1886 = vrot.lane.b32.xlu1 %v5049_v30, %s4843_s19  ;;  %v830_v42 = vrot.slane %v828_v19, 5  ;;  %v834_v43 = vshll.u32 %v5002_v12, 16  ;;  %v855_v46 = vrot.slane %v853_v35, 5 }
  0x27   : > { %1878 = vrot.lane.b32.xlu0 %v1485_v34, %s4843_s19  ;;  %v850_v47 = vor.u32 %v849_v41, %v846_v40  ;;  %v882_v50 = vshrl.u32 %v5011_v17, 16  ;;  %v885_v52 = vshll.u32 %v5011_v17, 16  ;;  %v891_v53 = vshll.u32 %v5014_v18, 16 }
  0x28   : > { %v1547_v44 = vcombine.low %v5065_v39, %v5055_v33  ;;  %v1548_v45 = vcombine.high %v5065_v39, %v5055_v33  ;;  %v831_v48 = vor.u32 %v830_v42, %v827_v36  ;;  %v836_v49 = vrot.slane %v834_v43, 5 }
  0x29   : > { %v851_v54 = vrot.slane %v850_v47, 4  ;;  %v884_v56 = vrot.slane %v882_v50, 4  ;;  %v863_v57 = vshrl.u32 %v4991_v7, 16  ;;  %v887_v58 = vrot.slane %v885_v52, 5 }
  0x2a   : > { %1681 = vrot.lane.b32.xlu1 %v1485_v34, %s7103_s23  ;;  %v832_v55 = vrot.slane %v831_v48, 4  ;;  %v866_v59 = vshll.u32 %v4991_v7, 16  ;;  %v872_v60 = vshll.u32 %v4994_v8, 16  ;;  %v893_v63 = vrot.slane %v891_v53, 5 }
  0x2b   : > { %1677 = vrot.lane.b32.xlu0 %v1480_v26, %s7103_s23  ;;  %v856_v61 = vsel %vm5077_vm5, %v851_v54, %v855_v46  ;;  %v865_v0 = vrot.slane %v863_v57, 4  ;;  %v888_v3 = vor.u32 %v887_v58, %v884_v56  ;;  %v5095_v10 = vrot.slane %v1484_v28, 4 }
  0x2c   : > { %v837_v62 = vsel %vm5077_vm5, %v832_v55, %v836_v49  ;;  %v5093_v1 = vrot.slane %v856_v61, %v5007_v15  ;;  %v868_v5 = vrot.slane %v866_v59, 5  ;;  %v874_v13 = vrot.slane %v872_v60, 5 }
  0x2d   : > { %v5100_v14 = vrot.slane %v1479_v16, 4  ;;  %v5102_v19 = vrot.slane %v1494_v22, 4  ;;  %v5106_v21 = vrot.slane %v1489_v11, 4  ;;  %v889_v26 = vrot.slane %v888_v3, 4 }
  0x2e   : > { %1281 = vrot.lane.b32.xlu1 %v856_v61, %s4843_s19  ;;  %v869_v27 = vor.u32 %v868_v5, %v865_v0  ;;  %v857_v28 = vshrl.u32 %v5029_v24, 16  ;;  %v838_v31 = vshrl.u32 %v5002_v12, 16  ;;  %v895_v22 = vshrl.u32 %v5014_v18, 16 }
  0x2f   : > { %1277 = vrot.lane.b32.xlu0 %v837_v62, %s4843_s19  ;;  %v876_v34 = vshrl.u32 %v4994_v8, 16  ;;  %v894_v11 = vsel %vm5077_vm5, %v889_v26, %v893_v63  ;;  %v5120_v41 = vrot.slane %v837_v62, %v5007_v15  ;;  %vm621_vm2 = vcmask 1043458  }
  0x30   : > { %v870_v35 = vrot.slane %v869_v27, 4  ;;  %v859_v36 = vrot.slane %v857_v28, 4  ;;  %v840_v40 = vrot.slane %v838_v31, 4  ;;  %v5123_v42 = vrot.slane %v894_v11, %v5007_v15  ;;  %vm5936_vm4 = vmor %vm622_vm3, %vm621_vm2 }
  0x31   : > { %v897_v43 = vrot.slane %v895_v22, 4  ;;  %v878_v47 = vrot.slane %v876_v34, 4 }
  0x32   : > { %1289 = vrot.lane.b32.xlu1 %v894_v11, %s4843_s19  ;;  %v875_v48 = vsel %vm5077_vm5, %v870_v35, %v874_v13  ;;  %v860_v50 = vor.u32 %v859_v36, %v855_v46  ;;  %v841_v52 = vor.u32 %v840_v40, %v836_v49  ;;  %v950_v53 = vcombine.low %v5093_v1, %v5123_v42 }
  0x33   : > { %v951_v54 = vcombine.high %v5093_v1, %v5123_v42  ;;  %v5133_v55 = vrot.slane %v875_v48, %v5007_v15  ;;  %1285 = vrot.lane.b32.xlu0 %v875_v48, %s4843_s19  ;;  %v898_v56 = vor.u32 %v897_v43, %v893_v63  ;;  %v879_v57 = vor.u32 %v878_v47, %v874_v13 }
  0x34   : > { %v5142_v49 = vrot.slane %v860_v50, 4  ;;  %v5144_v51 = vrot.slane %v841_v52, 4  ;;  %vm2199_vm5 = vcmask 15360  }
  0x35   : > { %v916_v58 = vcombine.low %v5120_v41, %v5133_v55  ;;  %v917_v46 = vcombine.high %v5120_v41, %v5133_v55  ;;  %v5146_v59 = vrot.slane %v898_v56, 4  ;;  %v5148_v60 = vrot.slane %v879_v57, 4 }
  0x36   : > { %1689 = vrot.lane.b32.xlu1 %v5049_v30, %s7103_s23 }
  0x37   : > { %1685 = vrot.lane.b32.xlu0 %v5021_v20, %s7103_s23  ;;  %v4845_v20 = vmov 1934713408  }
  0x38   : > { %v250_v30 = vunpack.c.l.s4 %v4845_v20 }
  0x3a   : > { %1085 = vrot.lane.b32.xlu1 %v856_v61, %s7103_s23  ;;  %v251_v61 = vunpack.c.0.s8 %v250_v30 }
  0x3b   : > { %1081 = vrot.lane.b32.xlu0 %v837_v62, %s7103_s23 }
  0x3c   : > { %v5209_v62 = vsub.s32 %v251_v61, %v4977_v4 }
  0x3e   : > { %1093 = vrot.lane.b32.xlu1 %v894_v11, %s7103_s23  ;;  %v5217_v3 = vrot.slane %v1513_v37, %v5209_v62  ;;  %v5223_v5 = vrot.slane %v1547_v44, %v5209_v62  ;;  %v5228_v13 = vrot.slane %v950_v53, %v5209_v62  ;;  %v5231_v26 = vrot.slane %v916_v58, %v5209_v62 }
  0x3f   : > { %1089 = vrot.lane.b32.xlu0 %v875_v48, %s7103_s23  ;;  %v5277_v33 = vrot.slane %v951_v54, %v5209_v62  ;;  %v5283_v39 = vrot.slane %v917_v46, %v5209_v62 }
  0x40   : > { %7117 = vst [vmem:[#allocation11_spill] sm:$0xff] %v5217_v3  ;;  %7118 = vst [vmem:[#allocation12_spill] sm:$0xff] %v5223_v5  ;;  %v1588_v37 = vshrl.u32 %v5217_v3, 16  ;;  %v1589_v44 = vshrl.u32 %v5223_v5, 16  ;;  %v1529_v27 = vcombine.high %v5217_v3, %v7096_v6  ;;  %v1563_v28 = vcombine.high %v5223_v5, %v7096_v6 }
  0x41   : > { %v991_v22 = vshrl.u32 %v5231_v26, 16  ;;  %v992_v34 = vshrl.u32 %v5228_v13, 16  ;;  %v5287_v56 = vpack.i.b16 %v5277_v33, %v5283_v39 }
  0x42   : > { %429 = vrot.lane.b32.xlu1 %v5026_v23, %s7103_s23  ;;  %v1593_v31 = vpack.i.b16 %v1563_v28, %v1529_v27  ;;  %v1590_v11 = vpack.i.b16 %v1589_v44, %v1588_v37  ;;  %v1594_v35 = vshrl.u32 %v1529_v27, 16  ;;  %v1595_v36 = vshrl.u32 %v1563_v28, 16 }
  0x43   : > { %425 = vrot.lane.b32.xlu0 %v4997_v9, %s7103_s23  ;;  %v993_v43 = vpack.i.b16 %v992_v34, %v991_v22  ;;  %7120 = vst [vmem:[#allocation14_spill] sm:$0xff] %v5287_v56 }
  0x44   : > { %v4544_v40 = vcombine.low %v1593_v31, %v1593_v31  ;;  %v1596_v47 = vpack.i.b16 %v1595_v36, %v1594_v35 }
  0x45   : > { %v4509_v48 = vcombine.low %v993_v43, %v993_v43 }
  0x46   : > { %437 = vrot.lane.b32.xlu1 %v5011_v17, %s7103_s23 }
  0x47   : > { %433 = vrot.lane.b32.xlu0 %v4991_v7, %s7103_s23 }
  0x4a   : > { %629 = vrot.lane.b32.xlu1 %v5026_v23, %s4843_s19 }
  0x4b   : > { %625 = vrot.lane.b32.xlu0 %v4997_v9, %s4843_s19 }
  0x4e   : > { %637 = vrot.lane.b32.xlu1 %v5011_v17, %s4843_s19 }
  0x4f   : > { %633 = vrot.lane.b32.xlu0 %v4991_v7, %s4843_s19 }
  0x52   : > { %1880 = vrot.lane.b32.xlu1 %v5095_v10, %s4843_s19 }
  0x53   : > { %1876 = vrot.lane.b32.xlu0 %v5100_v14, %s4843_s19 }
  0x56   : > { %1888 = vrot.lane.b32.xlu1 %v5102_v19, %s4843_s19 }
  0x57   : > { %1884 = vrot.lane.b32.xlu0 %v5106_v21, %s4843_s19 }
  0x5a   : > { %1283 = vrot.lane.b32.xlu1 %v5142_v49, %s4843_s19 }
  0x5b   : > { %1279 = vrot.lane.b32.xlu0 %v5144_v51, %s4843_s19 }
  0x5e   : > { %1291 = vrot.lane.b32.xlu1 %v5146_v59, %s4843_s19 }
  0x5f   : > { %1287 = vrot.lane.b32.xlu0 %v5148_v60, %s4843_s19 }
  0x62   : > { %1683 = vrot.lane.b32.xlu1 %v5095_v10, %s7103_s23 }
  0x63   : > { %1679 = vrot.lane.b32.xlu0 %v5100_v14, %s7103_s23 }
  0x66   : > { %1691 = vrot.lane.b32.xlu1 %v5102_v19, %s7103_s23 }
  0x67   : > { %1687 = vrot.lane.b32.xlu0 %v5106_v21, %s7103_s23 }
  0x6a   : > { %1087 = vrot.lane.b32.xlu1 %v5142_v49, %s7103_s23 }
  0x6b   : > { %1083 = vrot.lane.b32.xlu0 %v5144_v51, %s7103_s23 }
  0x6e   : > { %1095 = vrot.lane.b32.xlu1 %v5146_v59, %s7103_s23 }
  0x6f   : > { %1091 = vrot.lane.b32.xlu0 %v5148_v60, %s7103_s23 }
  0x72   : > { %431 = vrot.lane.b32.xlu1 %v5029_v24, %s7103_s23 }
  0x73   : > { %427 = vrot.lane.b32.xlu0 %v5002_v12, %s7103_s23 }
  0x76   : > { %439 = vrot.lane.b32.xlu1 %v5014_v18, %s7103_s23 }
  0x77   : > { %435 = vrot.lane.b32.xlu0 %v4994_v8, %s7103_s23 }
  0x7a   : > { %631 = vrot.lane.b32.xlu1 %v5029_v24, %s4843_s19  ;;  %v4543_v24 = vcombine.low %v1590_v11, %v1590_v11 }
  0x7b   : > { %627 = vrot.lane.b32.xlu0 %v5002_v12, %s4843_s19  ;;  %v5258_v12 = vrot.slane %v1514_v38, %v5209_v62 }
  0x7d   : > { %v1600_v1 = vshrl.u32 %v5258_v12, 16  ;;  %v5377_v5 = vcombine.high %v5258_v12, %v7096_v6 }
  0x7e   : > { %639 = vrot.lane.b32.xlu1 %v5014_v18, %s4843_s19  ;;  %v5264_v18 = vrot.slane %v1548_v45, %v5209_v62 }
  0x7f   : > { %635 = vrot.lane.b32.xlu0 %v4994_v8, %s4843_s19  ;;  %v4545_v8 = vcombine.low %v1596_v47, %v1596_v47 }
  0x80   : > { %v5271_v25 = vpack.i.b16 %v5264_v18, %v5258_v12  ;;  %v1601_v54 = vshrl.u32 %v5264_v18, 16  ;;  %v5381_v3 = vcombine.high %v5264_v18, %v7096_v6 }
  0x82   : > { %1621 = vrot.lane.b32.xlu1 %v4544_v40, %s4846_s24  ;;  %7119 = vst [vmem:[#allocation13_spill] sm:$0xff] %v5271_v25  ;;  %v5299_v41 = vpack.i.b16 %v1601_v54, %v1600_v1 }
  0x83   : > { %1617 = vrot.lane.b32.xlu0 %v4543_v24, %s4847_s27 }
  0x84   : > { %7121 = vst [vmem:[#allocation15_spill] sm:$0xff] %v5299_v41 }
  0x86   : > { %1020 = vrot.lane.b32.xlu1 %v4509_v48, %s4847_s27 }
  0x87   : > { %1625 = vrot.lane.b32.xlu0 %v4545_v8, %s4848_s30 }
  0x94   : > { %v1883_v29 = vpop.permute.xlu1 %1882 }
  0x95   : > { %v1875_v38 = vpop.permute.xlu0 %1874  ;;  %v1905_v36 = vrot.slane %v1883_v29, %v5007_v15 }
  0x96   : > { %v1897_v40 = vrot.slane %v1875_v38, %v5007_v15 }
  0x98   : > { %v1887_v50 = vpop.permute.xlu1 %1886 }
  0x99   : > { %v1879_v52 = vpop.permute.xlu0 %1878  ;;  %v1939_v22 = vrot.slane %v1887_v50, %v5007_v15 }
  0x9a   : > { %v1931_v34 = vrot.slane %v1879_v52, %v5007_v15 }
  0x9c   : > { %v1682_v45 = vpop.permute.xlu1 %1681  ;;  %v1940_v29 = vcombine.low %v1931_v34, %v1939_v22 }
  0x9d   : > { %v1678_v53 = vpop.permute.xlu0 %1677  ;;  %v1734_v52 = vrot.slane %v1682_v45, %v5007_v15 }
  0x9e   : > { %v1700_v54 = vrot.slane %v1678_v53, %v5007_v15  ;;  %v1941_v53 = vcombine.high %v1931_v34, %v1939_v22  ;;  %v5335_v0 = vrot.slane %v1940_v29, %v5209_v62 }
  0xa0   : > { %v5289_v57 = vpop.permute.xlu1 %1281  ;;  %7122 = vst [vmem:[#allocation16_spill] sm:$0xff] %v5335_v0 }
  0xa1   : > { %v5291_v58 = vpop.permute.xlu0 %1277  ;;  %v1334_v41 = vrot.slane %v5289_v57, %v5007_v15 }
  0xa4   : > { %v5294_v42 = vpop.permute.xlu1 %1289 }
  0xa5   : > { %v5297_v20 = vpop.permute.xlu0 %1285  ;;  %v1342_v12 = vrot.slane %v5294_v42, %v5007_v15 }
  0xa7   : > { %v1344_v7 = vcombine.high %v1334_v41, %v1342_v12 }
  0xa8   : > { %v1690_v55 = vpop.permute.xlu1 %1689 }
  0xa9   : > { %v1686_v46 = vpop.permute.xlu0 %1685  ;;  %v1742_v43 = vrot.slane %v1690_v55, %v5007_v15 }
  0xaa   : > { %v1708_v24 = vrot.slane %v1686_v46, %v5007_v15 }
  0xab   : > { %v1744_v46 = vcombine.high %v1734_v52, %v1742_v43 }
  0xac   : > { %v5301_v30 = vpop.permute.xlu1 %1085  ;;  %v1710_v2 = vcombine.high %v1700_v54, %v1708_v24  ;;  %v1709_v32 = vcombine.low %v1700_v54, %v1708_v24 }
  0xad   : > { %v5303_v61 = vpop.permute.xlu0 %1081 }
  0xae   : > { %v5342_v16 = vrot.slane %v1710_v2, %v5209_v62  ;;  %v1982_v2 = vshrl.u32 %v5335_v0, 16 }
  0xb0   : > { %v5305_v37 = vpop.permute.xlu1 %1093 }
  0xb1   : > { %v5307_v44 = vpop.permute.xlu0 %1089 }
  0xb4   : > { %v430_v27 = vpop.permute.xlu1 %429 }
  0xb5   : > { %v426_v28 = vpop.permute.xlu0 %425  ;;  %v482_v11 = vrot.slane %v430_v27, %v5007_v15 }
  0xb6   : > { %v448_v48 = vrot.slane %v426_v28, %v5007_v15  ;;  %v1906_v28 = vcombine.low %v1897_v40, %v1905_v36 }
  0xb8   : > { %v438_v31 = vpop.permute.xlu1 %437 }
  0xb9   : > { %v490_v35 = vrot.slane %v438_v31, %v5007_v15  ;;  %v434_v47 = vpop.permute.xlu0 %433 }
  0xba   : > { %v456_v50 = vrot.slane %v434_v47, %v5007_v15 }
  0xbb   : > { %v491_v8 = vcombine.low %v482_v11, %v490_v35  ;;  %v492_v1 = vcombine.high %v482_v11, %v490_v35  ;;  %v1907_v35 = vcombine.high %v1897_v40, %v1905_v36  ;;  %v5347_v36 = vrot.slane %v1906_v28, %v5209_v62 }
  0xbc   : > { %v5321_v27 = vpop.permute.xlu1 %629  ;;  %v457_v55 = vcombine.low %v448_v48, %v456_v50  ;;  %v458_v31 = vcombine.high %v448_v48, %v456_v50  ;;  %v5339_v50 = vrot.slane %v1744_v46, %v5209_v62  ;;  %v1955_v40 = vrot.slane %v1941_v53, %v5209_v62 }
  0xbd   : > { %v5324_v38 = vrot.slane %v491_v8, %v5209_v62  ;;  %v5326_v63 = vpop.permute.xlu0 %625  ;;  %v1743_v8 = vcombine.low %v1734_v52, %v1742_v43  ;;  %7123 = vst [vmem:[#allocation17_spill] sm:$0xff] %v5347_v36  ;;  %v1921_v34 = vrot.slane %v1907_v35, %v5209_v62  ;;  %v5355_v52 = vrot.slane %v1709_v32, %v5209_v62 }
  0xbe   : > { %v5329_v11 = vrot.slane %v457_v55, %v5209_v62  ;;  %v5359_v54 = vrot.slane %v492_v1, %v5209_v62  ;;  %v5362_v29 = vrot.slane %v458_v31, %v5209_v62  ;;  %v1981_v35 = vshrl.u32 %v5347_v36, 16 }
  0xbf   : > { %v533_v45 = vshrl.u32 %v5324_v38, 16  ;;  %v5352_v24 = vrot.slane %v1743_v8, %v5209_v62  ;;  %v1956_v53 = vcombine.high %v5335_v0, %v7096_v6  ;;  %v1993_v8 = vshrl.u32 %v1921_v34, 16 }
  0xc0   : > { %v5332_v47 = vpop.permute.xlu1 %637  ;;  %v532_v48 = vshrl.u32 %v5329_v11, 16  ;;  %v1922_v1 = vcombine.high %v5347_v36, %v7096_v6  ;;  %v5373_v31 = vcombine.high %v1955_v40, %v7096_v6  ;;  %v1983_v4 = vpack.i.b16 %v1982_v2, %v1981_v35 }
  0xc1   : > { %v5344_v55 = vpop.permute.xlu0 %633  ;;  %v5385_v56 = vcombine.high %v5355_v52, %v7096_v6  ;;  %v5389_v36 = vcombine.high %v5352_v24, %v7096_v6  ;;  %v1992_v42 = vpack.i.b16 %v1955_v40, %v1921_v34 }
  0xc2   : > { %v534_v22 = vpack.i.b16 %v533_v45, %v532_v48  ;;  %v1795_v45 = vpack.i.b16 %v5339_v50, %v5342_v16  ;;  %v1994_v48 = vshrl.u32 %v1955_v40, 16  ;;  %v1987_v35 = vshrl.u32 %v1922_v1, 16 }
  0xc3   : > { %v4563_v17 = vcombine.low %v1983_v4, %v1983_v4  ;;  %v2000_v57 = vshrl.u32 %v5373_v31, 16  ;;  %v7126_v4 = vcombine.low %v5100_v14, %v5106_v21 }
  0xc4   : > { %v1881_v43 = vpop.permute.xlu1 %1880  ;;  %v4489_v28 = vcombine.low %v534_v22, %v534_v22  ;;  %v4556_v0 = vcombine.low %v1795_v45, %v1795_v45  ;;  %v1988_v45 = vshrl.u32 %v1956_v53, 16  ;;  %v1995_v25 = vpack.i.b16 %v1994_v48, %v1993_v8 }
  0xc5   : > { %v1877_v46 = vpop.permute.xlu0 %1876  ;;  %v1574_v40 = vrot.slane %v7126_v4, %v5209_v62  ;;  %v1308_v8 = vrot.slane %v5297_v20, %v5007_v15  ;;  %v1607_v4 = vshrl.u32 %v5381_v3, 16 }
  0xc6   : > { %561 = vrot.lane.b32.xlu0 %v4489_v28, %s4847_s27  ;;  %v1989_v23 = vpack.i.b16 %v1988_v45, %v1987_v35  ;;  %v4567_v45 = vcombine.low %v1995_v25, %v1995_v25 }
  0xc8   : > { %v1889_v32 = vpop.permute.xlu1 %1888  ;;  %v4565_v21 = vcombine.low %v1989_v23, %v1989_v23  ;;  %v1784_v23 = vshrl.u32 %v5355_v52, 16 }
  0xc9   : > { %v1970_v22 = vcombine.low %v1881_v43, %v1889_v32  ;;  %v1885_v28 = vpop.permute.xlu0 %1884  ;;  %v5393_v43 = vpack.i.b16 %v5359_v54, %v5362_v29  ;;  %v5402_v32 = vcombine.high %v1921_v34, %v7096_v6 }
  0xca   : > { %v1960_v2 = vcombine.low %v1877_v46, %v1885_v28  ;;  %1825 = vrot.lane.b32.xlu0 %v4556_v0, %s4849_s5  ;;  %v1789_v46 = vpack.i.b16 %v5389_v36, %v5385_v56  ;;  %v5413_v0 = vpack.i.b16 %v5381_v3, %v5377_v5  ;;  %v1343_v28 = vcombine.low %v1334_v41, %v1342_v12 }
  0xcb   : > { %7124 = vst [vmem:[#allocation18_spill] sm:$0xff] %v5393_v43  ;;  %v5398_v18 = vrot.slane %v1970_v22, %v5209_v62  ;;  %v1986_v22 = vpack.i.b16 %v1956_v53, %v1922_v1  ;;  %v1999_v34 = vshrl.u32 %v5402_v32, 16  ;;  %v1300_v53 = vrot.slane %v5291_v58, %v5007_v15 }
  0xcc   : > { %v5407_v43 = vrot.slane %v1960_v2, %v5209_v62  ;;  %7125 = vst [vmem:[#allocation19_spill] sm:$0xff] %v5413_v0  ;;  %v4566_v1 = vcombine.low %v1992_v42, %v1992_v42  ;;  %v4554_v2 = vcombine.low %v1789_v46, %v1789_v46  ;;  %v5433_v14 = vrot.slane %v1343_v28, %v5209_v62 }
  0xcd   : > { %v4564_v35 = vcombine.low %v1986_v22, %v1986_v22  ;;  %v2001_v58 = vpack.i.b16 %v2000_v57, %v1999_v34  ;;  %v1309_v20 = vcombine.low %v1300_v53, %v1308_v8  ;;  %v5447_v41 = vrot.slane %v5307_v44, %v5007_v15 }
  0xce   : > { %v2004_v6 = vpack.i.b16 %v5398_v18, %v5407_v43  ;;  %2010 = vrot.lane.b32.xlu0 %v4563_v17, %s4847_s27  ;;  %v7127_v17 = vcombine.low %v5095_v10, %v5102_v19  ;;  %7128 = vst [vmem:[#allocation20_spill] sm:$0xff] %v5433_v14  ;;  %v544_v10 = vshrl.u32 %v5362_v29, 16  ;;  %v545_v19 = vshrl.u32 %v5359_v54, 16 }
  0xcf   : > { %v1785_v12 = vshrl.u32 %v5352_v24, 16  ;;  %v1310_v42 = vcombine.high %v1300_v53, %v1308_v8  ;;  %v1003_v22 = vshrl.u32 %v5283_v39, 16  ;;  %v5459_v28 = vrot.slane %v1344_v7, %v5209_v62 }
  0xd0   : > { %v4570_v48 = vcombine.low %v2004_v6, %v2004_v6  ;;  %v1584_v0 = vrot.slane %v7127_v17, %v5209_v62  ;;  %v5438_v6 = vrot.slane %v5305_v37, %v5007_v15  ;;  %v5453_v37 = vrot.slane %v5301_v30, %v5007_v15 }
  0xd1   : > { %v5455_v46 = vpack.i.b16 %v545_v19, %v544_v10  ;;  %v5463_v44 = vrot.slane %v5303_v61, %v5007_v15  ;;  %v1004_v57 = vshrl.u32 %v5277_v33, 16  ;;  %v1606_v34 = vshrl.u32 %v5377_v5, 16 }
  0xd2   : > { %2038 = vrot.lane.b32.xlu1 %v4570_v48, %s4850_s6  ;;  %1817 = vrot.lane.b32.xlu0 %v4554_v2, %s4846_s24  ;;  %v5441_v25 = vpack.i.b16 %v1584_v0, %v1574_v40  ;;  %v1147_v30 = vcombine.low %v5453_v37, %v5438_v6  ;;  %v1612_v7 = vshrl.u32 %v1574_v40, 16  ;;  %v1613_v53 = vshrl.u32 %v1584_v0, 16 }
  0xd3   : > { %v5473_v8 = vrot.slane %v1309_v20, %v5209_v62  ;;  %v1113_v61 = vcombine.low %v5463_v44, %v5447_v41  ;;  %v1786_v48 = vpack.i.b16 %v1785_v12, %v1784_v23  ;;  %v5480_v5 = vrot.slane %v1310_v42, %v5209_v62 }
  0xd4   : > { %v5482_v2 = vpack.i.b16 %v1607_v4, %v1606_v34  ;;  %v5484_v17 = vpack.i.b16 %v1613_v53, %v1612_v7  ;;  %v1998_v0 = vpack.i.b16 %v5373_v31, %v5402_v32  ;;  %v5492_v40 = vrot.slane %v1147_v30, %v5209_v62 }
  0xd5   : > { %7129 = vst [vmem:[#allocation21_spill] sm:$0xff] %v5473_v8  ;;  %v1796_v10 = vshrl.u32 %v5342_v16, 16  ;;  %v1797_v19 = vshrl.u32 %v5339_v50, 16  ;;  %v5498_v20 = vrot.slane %v1113_v61, %v5209_v62  ;;  %v4553_v23 = vcombine.low %v1786_v48, %v1786_v48 }
  0xd6   : > { %2022 = vrot.lane.b32.xlu1 %v4566_v1, %s4849_s5  ;;  %2026 = vrot.lane.b32.xlu0 %v4567_v45, %s4851_s8  ;;  %v5477_v1 = vpack.i.b16 %v1004_v57, %v1003_v22  ;;  %v4569_v45 = vcombine.low %v2001_v58, %v2001_v58  ;;  %v7130_v12 = vmov 0   ;;  %v1395_v32 = vpack.i.b16 %v5459_v28, %v5480_v5 }
  0xd7   : > { %v508_v31 = vcombine.high %v5359_v54, %v7130_v12  ;;  %v1385_v58 = vshrl.u32 %v5433_v14, 16  ;;  %v933_v42 = vcombine.high %v5283_v39, %v7130_v12  ;;  %v4568_v22 = vcombine.low %v1998_v0, %v1998_v0 }
  0xd8   : > { %v1798_v54 = vpack.i.b16 %v1797_v19, %v1796_v10  ;;  %v1790_v34 = vshrl.u32 %v5385_v56, 16  ;;  %v1791_v30 = vshrl.u32 %v5389_v36, 16  ;;  %v7131_v4 = vcombine.low %v5144_v51, %v5148_v60  ;;  %v5541_v10 = vpop.permute.xlu0 %1279 }
  0xd9   : > { %v1188_v7 = vshrl.u32 %v5498_v20, 16  ;;  %v1189_v53 = vshrl.u32 %v5492_v40, 16  ;;  %v1129_v61 = vcombine.high %v5498_v20, %v7130_v12  ;;  %v4532_v48 = vcombine.low %v1395_v32, %v1395_v32 }
  0xda   : > { %2014 = vrot.lane.b32.xlu1 %v4564_v35, %s4846_s24  ;;  %2018 = vrot.lane.b32.xlu0 %v4565_v21, %s4848_s30  ;;  %v474_v35 = vcombine.high %v5362_v29, %v7130_v12  ;;  %v1384_v21 = vshrl.u32 %v5473_v8, 16  ;;  %v967_v29 = vcombine.high %v5277_v33, %v7130_v12  ;;  %v977_v39 = vrot.slane %v7131_v4, %v5209_v62 }
  0xdb   : > { %v1163_v33 = vcombine.high %v5492_v40, %v7130_v12  ;;  %v7132_v36 = vcombine.low %v5142_v49, %v5146_v59  ;;  %v5537_v60 = vcombine.high %v5433_v14, %v7130_v12  ;;  %v5546_v32 = vcombine.high %v5473_v8, %v7130_v12 }
  0xdc   : > { %v5511_v57 = vpack.i.b16 %v508_v31, %v474_v35  ;;  %v1386_v0 = vpack.i.b16 %v1385_v58, %v1384_v21  ;;  %v5528_v56 = vpack.i.b16 %v967_v29, %v933_v42  ;;  %v550_v19 = vshrl.u32 %v474_v35, 16 }
  0xdd   : > { %v987_v51 = vrot.slane %v7132_v36, %v5209_v62  ;;  %v551_v59 = vshrl.u32 %v508_v31, 16  ;;  %v1190_v21 = vpack.i.b16 %v1189_v53, %v1188_v7  ;;  %v1792_v58 = vpack.i.b16 %v1791_v30, %v1790_v34  ;;  %v1288_v30 = vpop.permute.xlu0 %1287 }
  0xde   : > { %1813 = vrot.lane.b32.xlu1 %v4553_v23, %s4847_s27  ;;  %2034 = vrot.lane.b32.xlu0 %v4569_v45, %s4843_s19  ;;  %v5539_v45 = vpop.permute.xlu1 %1283  ;;  %v4557_v23 = vcombine.low %v1798_v54, %v1798_v54  ;;  %v1195_v4 = vshrl.u32 %v1163_v33, 16  ;;  %v4529_v36 = vcombine.low %v1386_v0, %v1386_v0  ;;  %v1015_v14 = vshrl.u32 %v977_v39, 16 }
  0xdf   : > { %v5548_v49 = vpack.i.b16 %v987_v51, %v977_v39  ;;  %v5550_v3 = vpack.i.b16 %v551_v59, %v550_v19  ;;  %v1016_v35 = vshrl.u32 %v987_v51, 16  ;;  %v1389_v54 = vpack.i.b16 %v5537_v60, %v5546_v32 }
  0xe0   : > { %v1010_v8 = vshrl.u32 %v967_v29, 16  ;;  %v4555_v31 = vcombine.low %v1792_v58, %v1792_v58  ;;  %v2006_v0 = vshrl.u32 %v5398_v18, 16  ;;  %v2005_v39 = vshrl.u32 %v5407_v43, 16 }
  0xe1   : > { %7133 = vst [vmem:[#allocation22_spill] sm:$0xff] %v5548_v49  ;;  %v4519_v49 = vcombine.low %v1190_v21, %v1190_v21  ;;  %v5556_v53 = vpack.i.b16 %v1016_v35, %v1015_v14  ;;  %v1783_v51 = vpack.i.b16 %v5352_v24, %v5355_v52  ;;  %v5571_v29 = vcombine.high %v5228_v13, %v7130_v12 }
  0xe2   : > { %2030 = vrot.lane.b32.xlu1 %v4568_v22, %s4852_s10  ;;  %1425 = vrot.lane.b32.xlu0 %v4532_v48, %s4849_s5  ;;  %v1194_v22 = vshrl.u32 %v1129_v61, 16  ;;  %v1009_v48 = vshrl.u32 %v933_v42, 16  ;;  %v1292_v34 = vpop.permute.xlu1 %1291  ;;  %v5567_v42 = vcombine.high %v5231_v26, %v7130_v12  ;;  %v1396_v18 = vshrl.u32 %v5480_v5, 16 }
  0xe3   : > { %v1397_v43 = vshrl.u32 %v5459_v28, 16  ;;  %v4530_v14 = vcombine.low %v1389_v54, %v1389_v54  ;;  %v2007_v59 = vpack.i.b16 %v2006_v0, %v2005_v39  ;;  %v5578_v21 = vrot.slane %v5332_v47, %v5007_v15 }
  0xe4   : > { %v1196_v7 = vpack.i.b16 %v1195_v4, %v1194_v22  ;;  %v5560_v19 = vpack.i.b16 %v1010_v8, %v1009_v48  ;;  %v1193_v8 = vpack.i.b16 %v1163_v33, %v1129_v61  ;;  %v5582_v58 = vrot.slane %v5344_v55, %v5007_v15  ;;  %v1680_v4 = vpop.permute.xlu0 %1679 }
  0xe5   : > { %v1373_v61 = vcombine.low %v5539_v45, %v1292_v34  ;;  %v1363_v33 = vcombine.low %v5541_v10, %v1288_v30  ;;  %v1390_v47 = vshrl.u32 %v5546_v32, 16  ;;  %v5593_v55 = vrot.slane %v5321_v27, %v5007_v15 }
  0xe6   : > { %1829 = vrot.lane.b32.xlu1 %v4557_v23, %s4851_s8  ;;  %1413 = vrot.lane.b32.xlu0 %v4529_v36, %s4847_s27  ;;  %v4521_v23 = vcombine.low %v1196_v7, %v1196_v7  ;;  %v1684_v22 = vpop.permute.xlu1 %1683  ;;  %v1398_v36 = vpack.i.b16 %v1397_v43, %v1396_v18  ;;  %v5597_v35 = vrot.slane %v5326_v63, %v5007_v15  ;;  %v1391_v48 = vshrl.u32 %v5537_v60, 16 }
  0xe7   : > { %v4520_v54 = vcombine.low %v1193_v8, %v1193_v8  ;;  %v1326_v45 = vcombine.high %v5480_v5, %v7130_v12  ;;  %v1360_v10 = vcombine.high %v5459_v28, %v7130_v12  ;;  %v1187_v32 = vpack.i.b16 %v5492_v40, %v5498_v20 }
  0xe8   : > { %v691_v27 = vcombine.low %v5593_v55, %v5578_v21  ;;  %v657_v63 = vcombine.low %v5597_v35, %v5582_v58  ;;  %v1148_v60 = vcombine.high %v5453_v37, %v5438_v6  ;;  %v1114_v5 = vcombine.high %v5463_v44, %v5447_v41  ;;  %v1688_v18 = vpop.permute.xlu0 %1687 }
  0xe9   : > { %v5617_v28 = vrot.slane %v1373_v61, %v5209_v62  ;;  %v5620_v34 = vrot.slane %v1363_v33, %v5209_v62  ;;  %v4533_v30 = vcombine.low %v1398_v36, %v1398_v36  ;;  %v1392_v0 = vpack.i.b16 %v1391_v48, %v1390_v47 }
  0xea   : > { %1821 = vrot.lane.b32.xlu1 %v4555_v31, %s4848_s30  ;;  %1217 = vrot.lane.b32.xlu0 %v4519_v49, %s4847_s27  ;;  %v996_v49 = vpack.i.b16 %v5571_v29, %v5567_v42  ;;  %v4571_v31 = vcombine.low %v2007_v59, %v2007_v59  ;;  %v1692_v39 = vpop.permute.xlu1 %1691  ;;  %v473_v43 = vcombine.high %v5329_v11, %v7130_v12 }
  0xeb   : > { %v507_v6 = vcombine.high %v5324_v38, %v7130_v12  ;;  %v1401_v41 = vpack.i.b16 %v1360_v10, %v1326_v45  ;;  %v5627_v37 = vrot.slane %v691_v27, %v5209_v62  ;;  %v5630_v44 = vrot.slane %v657_v63, %v5209_v62  ;;  %v7136_v63 = vld [vmem:[#allocation9_spill] sm:$0xff] }
  0xec   : > { %v4510_v7 = vcombine.low %v996_v49, %v996_v49  ;;  %v1763_v8 = vcombine.low %v1680_v4, %v1688_v18  ;;  %v5637_v59 = vrot.slane %v1148_v60, %v5209_v62  ;;  %v5640_v49 = vrot.slane %v1114_v5, %v5209_v62  ;;  %v7134_v4 = vld [vmem:[#allocation8_spill] sm:$0xff] }
  0xed   : > { %v4531_v61 = vcombine.low %v1392_v0, %v1392_v0  ;;  %v537_v33 = vpack.i.b16 %v507_v6, %v473_v43  ;;  %v4534_v36 = vcombine.low %v1401_v41, %v1401_v41  ;;  %v1726_v47 = vcombine.high %v5342_v16, %v7130_v12 }
  0xee   : > { %1417 = vrot.lane.b32.xlu1 %v4530_v14, %s4846_s24  ;;  %1225 = vrot.lane.b32.xlu0 %v4521_v23, %s4848_s30  ;;  %v1773_v14 = vcombine.low %v1684_v22, %v1692_v39  ;;  %v1407_v23 = vpack.i.b16 %v5617_v28, %v5620_v34  ;;  %v5648_v22 = vrot.slane %v4997_v9, %v5007_v15  ;;  %v1402_v0 = vshrl.u32 %v1326_v45, 16 }
  0xef   : > { %v5653_v48 = vrot.slane %v7134_v4, %v5007_v15  ;;  %v5661_v16 = vrot.slane %v7136_v63, %v5007_v15  ;;  %v4490_v5 = vcombine.low %v537_v33, %v537_v33  ;;  %v1403_v39 = vshrl.u32 %v1360_v10, 16 }
  0xf0   : > { %v1780_v9 = vrot.slane %v1773_v14, %v5209_v62  ;;  %v4536_v60 = vcombine.low %v1407_v23, %v1407_v23  ;;  %v539_v4 = vshrl.u32 %v507_v6, 16  ;;  %v997_v63 = vshrl.u32 %v5567_v42, 16  ;;  %v7137_v6 = vld [vmem:[#allocation13_spill] sm:$0xff] }
  0xf1   : > { %v247_v41 = vcombine.low %v5648_v22, %v5653_v48  ;;  %v1404_v23 = vpack.i.b16 %v1403_v39, %v1402_v0  ;;  %v4546_v39 = vcombine.low %v7137_v6, %v7137_v6  ;;  %v1409_v42 = vshrl.u32 %v5617_v28, 16 }
  0xf2   : > { %1221 = vrot.lane.b32.xlu1 %v4520_v54, %s4846_s24  ;;  %2042 = vrot.lane.b32.xlu0 %v4571_v31, %s4853_s11  ;;  %v1760_v54 = vcombine.high %v5339_v50, %v7130_v12  ;;  %v7135_v31 = vld [vmem:[#allocation10_spill] sm:$0xff]  ;;  %v731_v50 = vpack.i.b16 %v5627_v37, %v5630_v44 }
  0xf3   : > { %v5657_v27 = vrot.slane %v7135_v31, %v5007_v15  ;;  %v5678_v45 = vrot.slane %v247_v41, %v5209_v62 }
  0xf4   : > { %v1801_v18 = vpack.i.b16 %v1760_v54, %v1726_v47  ;;  %v1803_v0 = vshrl.u32 %v1760_v54, 16  ;;  %v1084_v54 = vpop.permute.xlu0 %1083 }
  0xf6   : > { %1429 = vrot.lane.b32.xlu1 %v4533_v30, %s4851_s8  ;;  %1024 = vrot.lane.b32.xlu0 %v4510_v7, %s4846_s24  ;;  %v1770_v7 = vrot.slane %v1763_v8, %v5209_v62  ;;  %v1199_v30 = vpack.i.b16 %v5637_v59, %v5640_v49  ;;  %v4558_v33 = vcombine.low %v1801_v18, %v1801_v18  ;;  %v316_v18 = vshrl.u32 %v5678_v45, 16 }
  0xf8   : > { %v1807_v14 = vpack.i.b16 %v1780_v9, %v1770_v7  ;;  %v4522_v8 = vcombine.low %v1199_v30, %v1199_v30  ;;  %v1802_v30 = vshrl.u32 %v1726_v47, 16 }
  0xfa   : > { %1421 = vrot.lane.b32.xlu1 %v4531_v61, %s4848_s30  ;;  %1433 = vrot.lane.b32.xlu0 %v4534_v36, %s4852_s10  ;;  %v279_v61 = vcombine.low %v5657_v27, %v5661_v16  ;;  %v538_v36 = vshrl.u32 %v473_v43, 16  ;;  %v4560_v31 = vcombine.low %v1807_v14, %v1807_v14  ;;  %v1804_v14 = vpack.i.b16 %v1803_v0, %v1802_v30 }
  0xfb   : > { %v1200_v30 = vshrl.u32 %v5640_v49, 16  ;;  %v1201_v0 = vshrl.u32 %v5637_v59, 16 }
  0xfc   : > { %v5681_v10 = vrot.slane %v279_v61, %v5209_v62  ;;  %v540_v43 = vpack.i.b16 %v539_v4, %v538_v36  ;;  %v732_v36 = vshrl.u32 %v5630_v44, 16  ;;  %v733_v4 = vshrl.u32 %v5627_v37, 16 }
  0xfe   : > { %565 = vrot.lane.b32.xlu1 %v4490_v5, %s4846_s24  ;;  %1441 = vrot.lane.b32.xlu0 %v4536_v60, %s4850_s6  ;;  %v998_v60 = vshrl.u32 %v5571_v29, 16  ;;  %v4535_v5 = vcombine.low %v1404_v23, %v1404_v23  ;;  %v317_v41 = vshrl.u32 %v5681_v10, 16  ;;  %v1408_v29 = vshrl.u32 %v5620_v34, 16  ;;  %v1092_v34 = vpop.permute.xlu0 %1091 }
  0xff   : > { %v4491_v47 = vcombine.low %v540_v43, %v540_v43 }
 0x100   : > { %v999_v61 = vpack.i.b16 %v998_v60, %v997_v63  ;;  %v1808_v63 = vshrl.u32 %v1770_v7, 16  ;;  %v1410_v60 = vpack.i.b16 %v1409_v42, %v1408_v29  ;;  %v1202_v7 = vpack.i.b16 %v1201_v0, %v1200_v30  ;;  %v1088_v29 = vpop.permute.xlu1 %1087 }
 0x101   : > { %v295_v42 = vcombine.high %v5681_v10, %v7130_v12 }
 0x102   : > { %1229 = vrot.lane.b32.xlu1 %v4522_v8, %s4849_s5  ;;  %1833 = vrot.lane.b32.xlu0 %v4558_v33, %s4852_s10  ;;  %v318_v8 = vpack.i.b16 %v317_v41, %v316_v18  ;;  %v4511_v23 = vcombine.low %v999_v61, %v999_v61  ;;  %v4559_v33 = vcombine.low %v1804_v14, %v1804_v14  ;;  %v5708_v61 = vpop.permute.xlu0 %427 }
 0x103   : > { %v4537_v43 = vcombine.low %v1410_v60, %v1410_v60  ;;  %v1130_v18 = vcombine.high %v5640_v49, %v7130_v12  ;;  %v263_v14 = vcombine.high %v5678_v45, %v7130_v12 }
 0x104   : > { %v4479_v28 = vcombine.low %v318_v8, %v318_v8  ;;  %v7138_v8 = vld [vmem:[#allocation18_spill] sm:$0xff]  ;;  %v1096_v30 = vpop.permute.xlu1 %1095 }
 0x106   : > { %1437 = vrot.lane.b32.xlu1 %v4535_v5, %s4843_s19  ;;  %1841 = vrot.lane.b32.xlu0 %v4560_v31, %s4850_s6  ;;  %v1809_v31 = vshrl.u32 %v1780_v9, 16  ;;  %v734_v5 = vpack.i.b16 %v733_v4, %v732_v36  ;;  %v321_v4 = vpack.i.b16 %v295_v42, %v263_v14  ;;  %v436_v60 = vpop.permute.xlu0 %435 }
 0x108   : > { %v1810_v6 = vpack.i.b16 %v1809_v31, %v1808_v63  ;;  %v4499_v9 = vcombine.low %v734_v5, %v734_v5  ;;  %v7140_v31 = vld [vmem:[#allocation14_spill] sm:$0xff]  ;;  %v707_v5 = vcombine.high %v5627_v37, %v7130_v12 }
 0x109   : > { %v4512_v63 = vcombine.low %v7140_v31, %v7140_v31 }
 0x10a   : > { %1629 = vrot.lane.b32.xlu1 %v4546_v39, %s4849_s5  ;;  %569 = vrot.lane.b32.xlu0 %v4491_v47, %s4848_s30  ;;  %v1164_v39 = vcombine.high %v5637_v59, %v7130_v12  ;;  %v4561_v41 = vcombine.low %v1810_v6, %v1810_v6  ;;  %v4523_v47 = vcombine.low %v1202_v7, %v1202_v7 }
 0x10b   : > { %v4492_v59 = vcombine.low %v7138_v8, %v7138_v8  ;;  %v1167_v6 = vcombine.low %v1084_v54, %v1092_v34  ;;  %v7141_v8 = vld [vmem:[#allocation19_spill] sm:$0xff]  ;;  %v4550_v54 = vcombine.low %v5441_v25, %v5441_v25  ;;  %v4549_v25 = vcombine.low %v5482_v2, %v5482_v2 }
 0x10c   : > { %v1207_v49 = vshrl.u32 %v1164_v39, 16  ;;  %v280_v2 = vcombine.high %v5657_v27, %v5661_v16 }
 0x10e   : > { %1837 = vrot.lane.b32.xlu1 %v4559_v33, %s4843_s19  ;;  %1028 = vrot.lane.b32.xlu0 %v4511_v23, %s4848_s30  ;;  %v1206_v23 = vshrl.u32 %v1130_v18, 16  ;;  %v7139_v33 = vld [vmem:[#allocation15_spill] sm:$0xff] }
 0x10f   : > { %v4547_v36 = vcombine.low %v7139_v33, %v7139_v33  ;;  %v432_v33 = vpop.permute.xlu1 %431 }
 0x110   : > { %v1208_v0 = vpack.i.b16 %v1207_v49, %v1206_v23  ;;  %v1174_v23 = vrot.slane %v1167_v6, %v5209_v62 }
 0x112   : > { %345 = vrot.lane.b32.xlu1 %v4479_v28, %s4847_s27  ;;  %1445 = vrot.lane.b32.xlu0 %v4537_v43, %s4853_s11  ;;  %v673_v28 = vcombine.high %v5630_v44, %v7130_v12  ;;  %v4480_v43 = vcombine.low %v321_v4, %v321_v4  ;;  %v1205_v4 = vpack.i.b16 %v1164_v39, %v1130_v18 }
 0x113   : > { %v4493_v39 = vcombine.low %v5455_v46, %v5455_v46 }
 0x114   : > { %v737_v7 = vpack.i.b16 %v707_v5, %v673_v28  ;;  %v4524_v31 = vcombine.low %v1205_v4, %v1205_v4 }
 0x116   : > { %761 = vrot.lane.b32.xlu1 %v4499_v9, %s4847_s27  ;;  %1845 = vrot.lane.b32.xlu0 %v4561_v41, %s4853_s11  ;;  %v1177_v9 = vcombine.low %v1088_v29, %v1096_v30  ;;  %v4525_v41 = vcombine.low %v1208_v0, %v1208_v0  ;;  %v323_v30 = vshrl.u32 %v295_v42, 16  ;;  %v440_v0 = vpop.permute.xlu1 %439  ;;  %v738_v42 = vshrl.u32 %v673_v28, 16  ;;  %s4856_s27 = smov 110  }
 0x117   : > { %v521_v46 = vcombine.low %v432_v33, %v440_v0  ;;  %v1212_v28 = vshrl.u32 %v1174_v23, 16 }
 0x118   : > { %v1184_v49 = vrot.slane %v1177_v9, %v5209_v62  ;;  %v739_v9 = vshrl.u32 %v707_v5, 16 }
 0x119   : > { %v528_v33 = vrot.slane %v521_v46, %v5209_v62  ;;  %v4495_v46 = vcombine.low %v5550_v3, %v5550_v3  ;;  %v4515_v3 = vcombine.low %v5560_v19, %v5560_v19 }
 0x11a   : > { %1233 = vrot.lane.b32.xlu1 %v4523_v47, %s4851_s8  ;;  %573 = vrot.lane.b32.xlu0 %v4492_v59, %s4849_s5  ;;  %v5730_v47 = vpop.permute.xlu0 %627  ;;  %v4548_v59 = vcombine.low %v7141_v8, %v7141_v8  ;;  %v1211_v29 = vpack.i.b16 %v1184_v49, %v1174_v23  ;;  %v1213_v5 = vshrl.u32 %v1184_v49, 16  ;;  %v4494_v49 = vcombine.low %v5511_v57, %v5511_v57 }
 0x11c   : > { %v1214_v27 = vpack.i.b16 %v1213_v5, %v1212_v28 }
 0x11e   : > { %1633 = vrot.lane.b32.xlu1 %v4547_v36, %s4851_s8  ;;  %1032 = vrot.lane.b32.xlu0 %v4512_v63, %s4849_s5  ;;  %v4500_v36 = vcombine.low %v737_v7, %v737_v7  ;;  %v5742_v34 = vpop.permute.xlu0 %635  ;;  %v322_v63 = vshrl.u32 %v263_v14, 16  ;;  %v4513_v14 = vcombine.low %v5477_v1, %v5477_v1  ;;  %v5756_v7 = vpop.permute.xlu1 %631  ;;  %v4551_v1 = vcombine.low %v5484_v17, %v5484_v17 }
 0x120   : > { %v324_v6 = vpack.i.b16 %v323_v30, %v322_v63  ;;  %v658_v63 = vcombine.high %v5597_v35, %v5582_v58  ;;  %v4527_v30 = vcombine.low %v1214_v27, %v1214_v27  ;;  %v557_v58 = vshrl.u32 %v528_v33, 16 }
 0x122   : > { %349 = vrot.lane.b32.xlu1 %v4480_v43, %s4846_s24  ;;  %1241 = vrot.lane.b32.xlu0 %v4525_v41, %s4843_s19  ;;  %v4526_v43 = vcombine.low %v1211_v29, %v1211_v29  ;;  %v5748_v18 = vpop.permute.xlu0 %1617  ;;  %v511_v41 = vcombine.low %v5708_v61, %v436_v60  ;;  %v4481_v8 = vcombine.low %v324_v6, %v324_v6  ;;  %v5771_v4 = vpop.permute.xlu1 %639 }
 0x123   : > { %v740_v61 = vpack.i.b16 %v739_v9, %v738_v42 }
 0x124   : > { %v518_v60 = vrot.slane %v511_v41, %v5209_v62 }
 0x125   : > { %v4501_v16 = vcombine.low %v740_v61, %v740_v61 }
 0x126   : > { %765 = vrot.lane.b32.xlu1 %v4500_v36, %s4846_s24  ;;  %1637 = vrot.lane.b32.xlu0 %v4548_v59, %s4852_s10  ;;  %v248_v59 = vcombine.high %v5648_v22, %v5653_v48  ;;  %v5765_v36 = vpop.permute.xlu0 %1625  ;;  %v294_v48 = vrot.slane %v280_v2, %v5209_v62  ;;  %v555_v17 = vpack.i.b16 %v528_v33, %v518_v60  ;;  %s4582_s24 = sshll.u32 %s4823_s18, 3  ;;  %s4865_s18 = smov 32  }
 0x128   : > { %v262_v22 = vrot.slane %v248_v59, %v5209_v62  ;;  %v4496_v0 = vcombine.low %v555_v17, %v555_v17  ;;  %v296_v41 = vcombine.high %v294_v48, %v7130_v12  ;;  %v329_v28 = vshrl.u32 %v294_v48, 16 }
 0x12a   : > { %1237 = vrot.lane.b32.xlu1 %v4524_v31, %s4852_s10  ;;  %1645 = vrot.lane.b32.xlu0 %v4550_v54, %s4850_s6  ;;  %v5781_v54 = vpop.permute.xlu1 %1621  ;;  %v327_v29 = vpack.i.b16 %v294_v48, %v262_v22  ;;  %v692_v31 = vcombine.high %v5593_v55, %v5578_v21  ;;  %v672_v21 = vrot.slane %v658_v63, %v5209_v62  ;;  %v556_v55 = vshrl.u32 %v518_v60, 16 }
 0x12b   : > { %v264_v9 = vcombine.high %v262_v22, %v7130_v12  ;;  %v335_v61 = vshrl.u32 %v296_v41, 16  ;;  %v711_v63 = vcombine.low %v5730_v47, %v5742_v34 }
 0x12c   : > { %v706_v6 = vrot.slane %v692_v31, %v5209_v62  ;;  %v558_v59 = vpack.i.b16 %v557_v58, %v556_v55  ;;  %v4744_v55 = vld [vmem:[%s4982_s14 + $0x4] sm:$0x3] }
 0x12d   : > { %v334_v5 = vshrl.u32 %v264_v9, 16 }
 0x12e   : > { %1245 = vrot.lane.b32.xlu1 %v4526_v43, %s4850_s6  ;;  %577 = vrot.lane.b32.xlu0 %v4493_v39, %s4851_s8  ;;  %v5792_v57 = vpop.permute.xlu1 %1020  ;;  %v4482_v39 = vcombine.low %v327_v29, %v327_v29  ;;  %v744_v29 = vshrl.u32 %v672_v21, 16  ;;  %v745_v31 = vshrl.u32 %v706_v6, 16 }
 0x12f   : > { %v336_v48 = vpack.i.b16 %v335_v61, %v334_v5 }
 0x131   : > { %v4485_v47 = vcombine.low %v336_v48, %v336_v48  ;;  %v7143_v48 = vld [vmem:[#allocation17_spill] sm:$0xff] }
 0x132   : > { %1641 = vrot.lane.b32.xlu1 %v4549_v25, %s4843_s19  ;;  %1036 = vrot.lane.b32.xlu0 %v4513_v14, %s4851_s8  ;;  %v4514_v25 = vcombine.low %v5528_v56, %v5528_v56  ;;  %v7142_v14 = vld [vmem:[#allocation22_spill] sm:$0xff] }
 0x133   : > { %v4516_v42 = vcombine.low %v7142_v14, %v7142_v14  ;;  %v4745_v14 = vld [vmem:[%s4982_s14 + $0x1c] sm:$0x3] }
 0x136   : > { %353 = vrot.lane.b32.xlu1 %v4481_v8, %s4848_s30  ;;  %1649 = vrot.lane.b32.xlu0 %v4551_v1, %s4853_s11  ;;  %v743_v8 = vpack.i.b16 %v706_v6, %v672_v21  ;;  %v328_v1 = vshrl.u32 %v262_v22, 16  ;;  %v4517_v22 = vcombine.low %v5556_v53, %v5556_v53  ;;  %v4743_v53 = vld [vmem:[%s4982_s14 + $0x14] sm:$0x3] }
 0x137   : > { %v297_v58 = vcombine.low %v4744_v55, %v4743_v53 }
 0x138   : > { %v5777_v23 = vpop.permute.xlu0 %561  ;;  %v4502_v33 = vcombine.low %v743_v8, %v743_v8  ;;  %v330_v17 = vpack.i.b16 %v329_v28, %v328_v1 }
 0x139   : > { %v304_v1 = vrot.slane %v297_v58, %v5209_v62 }
 0x13a   : > { %769 = vrot.lane.b32.xlu1 %v4501_v16, %s4848_s30  ;;  %581 = vrot.lane.b32.xlu0 %v4494_v49, %s4852_s10  ;;  %v4497_v16 = vcombine.low %v558_v59, %v558_v59  ;;  %v333_v59 = vpack.i.b16 %v296_v41, %v264_v9  ;;  %s4857_s30 = smov 2  }
 0x13c   : > { %v5789_v43 = vpop.permute.xlu0 %1825  ;;  %v4484_v9 = vcombine.low %v333_v59, %v333_v59 }
 0x13e   : > { %1249 = vrot.lane.b32.xlu1 %v4527_v30, %s4853_s11  ;;  %589 = vrot.lane.b32.xlu0 %v4496_v0, %s4850_s6  ;;  %v721_v30 = vcombine.low %v5756_v7, %v5771_v4  ;;  %v674_v0 = vcombine.high %v672_v21, %v7130_v12  ;;  %v746_v7 = vpack.i.b16 %v745_v31, %v744_v29  ;;  %v7144_v29 = vld [vmem:[#allocation16_spill] sm:$0xff] }
 0x13f   : > { %v718_v4 = vrot.slane %v711_v63, %v5209_v62  ;;  %v1980_v31 = vpack.i.b16 %v7144_v29, %v7143_v48 }
 0x140   : > { %v5799_v35 = vpop.permute.xlu0 %2010  ;;  %v728_v21 = vrot.slane %v721_v30, %v5209_v62  ;;  %v4503_v61 = vcombine.low %v746_v7, %v746_v7 }
 0x141   : > { %v2046_v63 = vsel %vm379_vm6, %v1980_v31, %v5799_v35 }
 0x142   : > { %357 = vrot.lane.b32.xlu1 %v4482_v39, %s4849_s5  ;;  %1040 = vrot.lane.b32.xlu0 %v4514_v25, %s4852_s10  ;;  %v708_v39 = vcombine.high %v706_v6, %v7130_v12  ;;  %v4483_v25 = vcombine.low %v330_v17, %v330_v17 }
 0x144   : > { %v5807_v56 = vpop.permute.xlu1 %2038  ;;  %v5811_v2 = vpop.permute.xlu0 %1817  ;;  %v749_v8 = vpack.i.b16 %v708_v39, %v674_v0  ;;  %v751_v53 = vshrl.u32 %v708_v39, 16 }
 0x146   : > { %585 = vrot.lane.b32.xlu1 %v4495_v46, %s4843_s19  ;;  %1048 = vrot.lane.b32.xlu0 %v4516_v42, %s4850_s6  ;;  %v4746_v42 = vld [vmem:[%s4982_s14 + $0xc] sm:$0x3]  ;;  %s4864_s14 = smov 94  }
 0x147   : > { %v305_v46 = vcombine.low %v4746_v42, %v4745_v14 }
 0x148   : > { %v5815_v60 = vpop.permute.xlu1 %2022  ;;  %v5817_v27 = vpop.permute.xlu0 %2026 }
 0x149   : > { %v312_v28 = vrot.slane %v305_v46, %v5209_v62 }
 0x14a   : > { %773 = vrot.lane.b32.xlu1 %v4502_v33, %s4849_s5  ;;  %593 = vrot.lane.b32.xlu0 %v4497_v16, %s4853_s11  ;;  %v756_v33 = vshrl.u32 %v718_v4, 16  ;;  %v755_v16 = vpack.i.b16 %v728_v21, %v718_v4  ;;  %s4858_s5 = smov 74  }
 0x14b   : > { %v339_v41 = vpack.i.b16 %v312_v28, %v304_v1  ;;  %v341_v7 = vshrl.u32 %v312_v28, 16 }
 0x14c   : > { %v2015_v49 = vpop.permute.xlu1 %2014  ;;  %v2019_v19 = vpop.permute.xlu0 %2018  ;;  %v4506_v58 = vcombine.low %v755_v16, %v755_v16 }
 0x14d   : > { %v2048_v14 = vsel %vm383_vm7, %v2046_v63, %v2015_v49  ;;  %v4486_v46 = vcombine.low %v339_v41, %v339_v41 }
 0x14e   : > { %1044 = vrot.lane.b32.xlu1 %v4515_v3, %s4843_s19  ;;  %1052 = vrot.lane.b32.xlu0 %v4517_v22, %s4853_s11  ;;  %v757_v3 = vshrl.u32 %v728_v21, 16  ;;  %v4504_v22 = vcombine.low %v749_v8, %v749_v8  ;;  %v2050_v35 = vsel %vm386_vm8, %v2048_v14, %v2019_v19 }
 0x14f   : > { %v2052_v8 = vsel %vm389_vm9, %v2050_v35, %v5815_v60  ;;  %v7148_v35 = vld [vmem:[#allocation20_spill] sm:$0xff] }
 0x150   : > { %v5837_v34 = vpop.permute.xlu1 %1813  ;;  %v5841_v6 = vpop.permute.xlu0 %2034  ;;  %v758_v55 = vpack.i.b16 %v757_v3, %v756_v33  ;;  %v2054_v28 = vsel %vm392_vm10, %v2052_v8, %v5817_v27 }
 0x151   : > { %v2060_v16 = vsel %vm401_vm12, %v5841_v6, %v5807_v56  ;;  %v2159_v56 = vld [vmem:[%s7086_s3] sm:$0xff] }
 0x152   : > { %361 = vrot.lane.b32.xlu1 %v4483_v25, %s4851_s8  ;;  %369 = vrot.lane.b32.xlu0 %v4485_v47, %s4843_s19  ;;  %v750_v25 = vshrl.u32 %v674_v0, 16  ;;  %v340_v47 = vshrl.u32 %v304_v1, 16  ;;  %v4507_v21 = vcombine.low %v758_v55, %v758_v55 }
 0x154   : > { %v2031_v5 = vpop.permute.xlu1 %2030  ;;  %v5847_v17 = vpop.permute.xlu0 %1425  ;;  %v752_v0 = vpack.i.b16 %v751_v53, %v750_v25  ;;  %v342_v49 = vpack.i.b16 %v341_v7, %v340_v47  ;;  %v7147_v7 = vld [vmem:[#allocation21_spill] sm:$0xff] }
 0x155   : > { %v2056_v33 = vsel %vm395_vm11, %v2054_v28, %v2031_v5 }
 0x156   : > { %777 = vrot.lane.b32.xlu1 %v4503_v61, %s4851_s8  ;;  %781 = vrot.lane.b32.xlu0 %v4504_v22, %s4852_s10  ;;  %v4505_v1 = vcombine.low %v752_v0, %v752_v0  ;;  %v4487_v61 = vcombine.low %v342_v49, %v342_v49  ;;  %v2058_v22 = vsel %vm398_vm13, %v2056_v33, %v5841_v6  ;;  %v4854_v6 = vmov 1   ;;  %s7102_s8 = smov 92  }
 0x157   : > { %4724 = vset.pattern.permute.xlu0 %v4854_v6  ;;  %v1383_v0 = vpack.i.b16 %v7148_v35, %v7147_v7 }
 0x158   : > { %v5855_v30 = vpop.permute.xlu1 %1829  ;;  %v5858_v42 = vpop.permute.xlu0 %1413 }
 0x159   : > { %v1449_v8 = vsel %vm379_vm6, %v1383_v0, %v5858_v42 }
 0x15a   : > { %365 = vrot.lane.b32.xlu1 %v4484_v9, %s4852_s10  ;;  %789 = vrot.lane.b32.xlu0 %v4506_v58, %s4850_s6  ;;  %s4860_s10 = smov 38  }
 0x15c   : > { %v5863_v4 = vpop.permute.xlu1 %1821  ;;  %v5865_v39 = vpop.permute.xlu0 %1217 }
 0x15e   : > { %373 = vrot.lane.b32.xlu1 %v4486_v46, %s4850_s6  ;;  %793 = vrot.lane.b32.xlu0 %v4507_v21, %s4853_s11 }
 0x160   : > { %v1418_v59 = vpop.permute.xlu1 %1417  ;;  %v5871_v19 = vpop.permute.xlu0 %1225 }
 0x162   : > { %785 = vrot.lane.b32.xlu1 %v4505_v1, %s4843_s19  ;;  %2168 = vperm.xlu0 %4724, %v2159_v56   ;;  %v1451_v1 = vsel %vm383_vm7, %v1449_v8, %v1418_v59 }
 0x164   : > { %v5877_v60 = vpop.permute.xlu1 %1221  ;;  %v2043_v3 = vpop.permute.xlu0 %2042 }
 0x165   : > { %v2062_v27 = vsel %vm404_vm14, %v2060_v16, %v2043_v3  ;;  %v1849_v16 = vsel %vm379_vm6, %v1783_v51, %v5837_v34 }
 0x166   : > { %377 = vrot.lane.b32.xlu1 %v4487_v61, %s4853_s11  ;;  %v4572_v48 = vcombine.low %v2058_v22, %v2062_v27  ;;  %v1851_v42 = vsel %vm383_vm7, %v1849_v16, %v5811_v2  ;;  %v7152_v16 = vld [vmem:[#allocation12_spill] sm:$0xff]  ;;  %s4861_s11 = smov 56  }
 0x167   : > { %v1853_v59 = vsel %vm386_vm8, %v1851_v42, %v5863_v4 }
 0x168   : > { %v1430_v29 = vpop.permute.xlu1 %1429  ;;  %v5891_v31 = vpop.permute.xlu0 %1024  ;;  %2069 = vst.msk [vmem:[#allocation2 + $0x20] sm:$0x33] %vm5887_vm1, %v4572_v48  ;;  %v1855_v24 = vsel %vm389_vm9, %v1853_v59, %v5789_v43 }
 0x169   : > { %v1857_v4 = vsel %vm392_vm10, %v1855_v24, %v5855_v30 }
 0x16a   : > { %2162 = vperm.xlu1 %4723, %v2159_v56  }
 0x16c   : > { %v1422_v9 = vpop.permute.xlu1 %1421  ;;  %v1434_v41 = vpop.permute.xlu0 %1433 }
 0x16d   : > { %v1453_v28 = vsel %vm386_vm8, %v1451_v1, %v1422_v9 }
 0x16e   : > { %v1455_v3 = vsel %vm389_vm9, %v1453_v28, %v5847_v17  ;;  %v7151_v28 = vld [vmem:[#allocation11_spill] sm:$0xff] }
 0x16f   : > { %v2076_v25 = vld [vmem:[#allocation2 + $0x20] sm:$0x33]  ;;  %v1457_v48 = vsel %vm392_vm10, %v1455_v3, %v1430_v29  ;;  %v1587_v3 = vpack.i.b16 %v7152_v16, %v7151_v28  ;;  %v990_v28 = vpack.i.b16 %v5228_v13, %v5231_v26  ;;  %v7153_v16 = vpack.i.b16 %v5324_v38, %v5329_v11 }
 0x170   : > { %v5898_v63 = vpop.permute.xlu1 %565  ;;  %v1442_v53 = vpop.permute.xlu0 %1441  ;;  %v4579_v55 = vcombine.high %v2076_v25, %v2076_v25  ;;  %v4578_v58 = vcombine.low %v2076_v25, %v2076_v25  ;;  %v1459_v52 = vsel %vm395_vm11, %v1457_v48, %v1434_v41 }
 0x171   : > { %v1653_v59 = vsel %vm379_vm6, %v1587_v3, %v5748_v18  ;;  %v597_v3 = vsel %vm379_vm6, %v7153_v16, %v5777_v23 }
 0x172   : > { %4580 = vmatprep.subr.msk.bf16.mxu0 %vm413_vm15, %v4579_v55  ;;  %v2111_v14 = vsel %vm413_vm15, %v4578_v58, 0 }
 0x173   : > { %2127 = vmatpush1.bf16.msra.mxu0 %v2111_v14 }
 0x174   : > { %v5902_v46 = vpop.permute.xlu1 %1229  ;;  %v1834_v47 = vpop.permute.xlu0 %1833 }
 0x175   : > { %v1859_v43 = vsel %vm395_vm11, %v1857_v4, %v1834_v47 }
 0x178   : > { %v1438_v21 = vpop.permute.xlu1 %1437  ;;  %v1842_v49 = vpop.permute.xlu0 %1841 }
 0x179   : > { %v1463_v51 = vsel %vm401_vm12, %v1438_v21, %v1442_v53  ;;  %v1461_v2 = vsel %vm398_vm13, %v1459_v52, %v1438_v21  ;;  %v1655_v52 = vsel %vm383_vm7, %v1653_v59, %v5781_v54 }
 0x17c   : > { %v1630_v61 = vpop.permute.xlu1 %1629  ;;  %v5910_v33 = vpop.permute.xlu0 %569 }
 0x180   : > { %v1838_v22 = vpop.permute.xlu1 %1837  ;;  %v5921_v27 = vpop.permute.xlu0 %1028 }
 0x181   : > { %v1863_v41 = vsel %vm401_vm12, %v1838_v22, %v1842_v49  ;;  %v1861_v55 = vsel %vm398_vm13, %v1859_v43, %v1838_v22 }
 0x184   : > { %v5926_v56 = vpop.permute.xlu1 %345  ;;  %v1446_v34 = vpop.permute.xlu0 %1445 }
 0x185   : > { %v1465_v17 = vsel %vm404_vm14, %v1463_v51, %v1446_v34 }
 0x186   : > { %v4538_v6 = vcombine.low %v1461_v2, %v1465_v17  ;;  %v1657_v2 = vsel %vm386_vm8, %v1655_v52, %v5765_v36  ;;  %v1253_v17 = vsel %vm379_vm6, %v1187_v32, %v5865_v39 }
 0x187   : > { %v1255_v18 = vsel %vm383_vm7, %v1253_v17, %v5877_v60 }
 0x188   : > { %v5940_v9 = vpop.permute.xlu1 %761  ;;  %v1471_v25 = vrot.slane %v4538_v6, 6  ;;  %v1846_v53 = vpop.permute.xlu0 %1845  ;;  %v1659_v6 = vsel %vm389_vm9, %v1657_v2, %v1630_v61  ;;  %v1257_v20 = vsel %vm386_vm8, %v1255_v18, %v5871_v19 }
 0x189   : > { %v1865_v58 = vsel %vm404_vm14, %v1863_v41, %v1846_v53  ;;  %v1259_v39 = vsel %vm389_vm9, %v1257_v20, %v5902_v46 }
 0x18a   : > { %1473 = vst.msk [vmem:[#allocation2 + $0x10] sm:$0xcc] %vm5936_vm4, %v1471_v25  ;;  %v4562_v30 = vcombine.low %v1861_v55, %v1865_v58 }
 0x18c   : > { %v1234_v14 = vpop.permute.xlu1 %1233  ;;  %v1871_v7 = vrot.slane %v4562_v30, 6  ;;  %v574_v35 = vpop.permute.xlu0 %573 }
 0x18d   : > { %v1261_v61 = vsel %vm392_vm10, %v1259_v39, %v1234_v14 }
 0x18e   : > { %1873 = vst.msk [vmem:[#allocation2 + $0x18] sm:$0xcc] %vm5936_vm4, %v1871_v7 }
 0x190   : > { %v1634_v0 = vpop.permute.xlu1 %1633  ;;  %v1033_v47 = vpop.permute.xlu0 %1032 }
 0x191   : > { %v1661_v4 = vsel %vm392_vm10, %v1659_v6, %v1634_v0 }
 0x194   : > { %v5950_v21 = vpop.permute.xlu1 %349  ;;  %v1242_v49 = vpop.permute.xlu0 %1241 }
 0x198   : > { %v5952_v8 = vpop.permute.xlu1 %765  ;;  %v1638_v1 = vpop.permute.xlu0 %1637 }
 0x199   : > { %v1663_v54 = vsel %vm395_vm11, %v1661_v4, %v1638_v1 }
 0x19c   : > { %v1238_v22 = vpop.permute.xlu1 %1237  ;;  %v1646_v42 = vpop.permute.xlu0 %1645 }
 0x19d   : > { %v1263_v55 = vsel %vm395_vm11, %v1261_v61, %v1238_v22  ;;  %v315_v61 = vpack.i.b16 %v5681_v10, %v5678_v45 }
 0x19e   : > { %v1265_v0 = vsel %vm398_vm13, %v1263_v55, %v1242_v49 }
 0x1a0   : > { %v1246_v48 = vpop.permute.xlu1 %1245  ;;  %v578_v24 = vpop.permute.xlu0 %577 }
 0x1a1   : > { %v1267_v58 = vsel %vm401_vm12, %v1242_v49, %v1246_v48  ;;  %v599_v49 = vsel %vm383_vm7, %v597_v3, %v5898_v63  ;;  %v1056_v48 = vsel %vm379_vm6, %v990_v28, %v5792_v57 }
 0x1a2   : > { %v601_v59 = vsel %vm386_vm8, %v599_v49, %v5910_v33  ;;  %v1058_v38 = vsel %vm383_vm7, %v1056_v48, %v5891_v31 }
 0x1a3   : > { %v603_v52 = vsel %vm389_vm9, %v601_v59, %v574_v35  ;;  %v1060_v63 = vsel %vm386_vm8, %v1058_v38, %v5921_v27 }
 0x1a4   : > { %v1642_v51 = vpop.permute.xlu1 %1641  ;;  %v1037_v34 = vpop.permute.xlu0 %1036  ;;  %v605_v11 = vsel %vm392_vm10, %v603_v52, %v578_v24  ;;  %v1062_v57 = vsel %vm389_vm9, %v1060_v63, %v1033_v47 }
 0x1a5   : > { %v1667_v41 = vsel %vm401_vm12, %v1642_v51, %v1646_v42  ;;  %v1665_v25 = vsel %vm398_vm13, %v1663_v54, %v1642_v51  ;;  %v1064_v31 = vsel %vm392_vm10, %v1062_v57, %v1037_v34 }
 0x1a8   : > { %v5971_v43 = vpop.permute.xlu1 %353  ;;  %v1650_v36 = vpop.permute.xlu0 %1649 }
 0x1a9   : > { %v1669_v40 = vsel %vm404_vm14, %v1667_v41, %v1650_v36 }
 0x1aa   : > { %v4552_v32 = vcombine.low %v1665_v25, %v1669_v40 }
 0x1ac   : > { %v770_v60 = vpop.permute.xlu1 %769  ;;  %1676 = vst.msk [vmem:[#allocation2 + $0x18] sm:$0x33] %vm5887_vm1, %v4552_v32  ;;  %v582_v53 = vpop.permute.xlu0 %581 }
 0x1ad   : > { %v607_v51 = vsel %vm395_vm11, %v605_v11, %v582_v53  ;;  %v797_v53 = vsel %vm379_vm6, %v731_v50, %v5940_v9  ;;  %v7105_v11 = vmov 0.0  }
 0x1ae   : > { %v799_v55 = vsel %vm383_vm7, %v797_v53, %v5952_v8  ;;  %4606 = vmatprep.subr.bf16.mxu1 %v7105_v11 }
 0x1b0   : > { %v1250_v30 = vpop.permute.xlu1 %1249  ;;  %v590_v7 = vpop.permute.xlu0 %589 }
 0x1b1   : > { %v1269_v19 = vsel %vm404_vm14, %v1267_v58, %v1250_v30  ;;  %v801_v58 = vsel %vm386_vm8, %v799_v55, %v770_v60 }
 0x1b2   : > { %v4528_v1 = vcombine.low %v1265_v0, %v1269_v19  ;;  %v382_v0 = vsel %vm379_vm6, %v315_v61, %v5926_v56 }
 0x1b3   : > { %v385_v10 = vsel %vm383_vm7, %v382_v0, %v5950_v21 }
 0x1b4   : > { %1276 = vst.msk [vmem:[#allocation2 + $0x10] sm:$0x33] %vm5887_vm1, %v4528_v1  ;;  %v358_v46 = vpop.permute.xlu1 %357  ;;  %v1041_v14 = vpop.permute.xlu0 %1040  ;;  %v388_v37 = vsel %vm386_vm8, %v385_v10, %v5971_v43 }
 0x1b5   : > { %v1066_v6 = vsel %vm395_vm11, %v1064_v31, %v1041_v14  ;;  %v391_v44 = vsel %vm389_vm9, %v388_v37, %v358_v46 }
 0x1b8   : > { %v586_v22 = vpop.permute.xlu1 %585  ;;  %v1049_v42 = vpop.permute.xlu0 %1048 }
 0x1b9   : > { %v611_v33 = vsel %vm401_vm12, %v586_v22, %v590_v7  ;;  %v609_v35 = vsel %vm398_vm13, %v607_v51, %v586_v22 }
 0x1bb   : > { %v4731_v13 = vld [vmem:[#allocation2 + $0x14] ss:$8 sps:$4 sm:$0xff]   ;;  %v4733_v26 = vld [vmem:[#allocation2 + $0x10] ss:$8 sps:$4 sm:$0xff]  }
 0x1bc   : > { %v774_v23 = vpop.permute.xlu1 %773  ;;  %v594_v2 = vpop.permute.xlu0 %593  ;;  %2128 = vmatprep.subr.bf16.mxu0 %v4731_v13 }
 0x1bd   : > { %v613_v17 = vsel %vm404_vm14, %v611_v33, %v594_v2  ;;  %2129 = vmatpush1.bf16.msra.mxu0 %v4733_v26  ;;  %v803_v29 = vsel %vm389_vm9, %v801_v58, %v774_v23 }
 0x1be   : > { %v4498_v24 = vcombine.low %v609_v35, %v613_v17 }
 0x1c0   : > { %v1045_v18 = vpop.permute.xlu1 %1044  ;;  %v619_v27 = vrot.slane %v4498_v24, 6  ;;  %v1053_v4 = vpop.permute.xlu0 %1052 }
 0x1c1   : > { %v1068_v54 = vsel %vm398_vm13, %v1066_v6, %v1045_v18  ;;  %v1070_v41 = vsel %vm401_vm12, %v1045_v18, %v1049_v42  ;;  %v4737_v42 = vld [vmem:[%s7084_s1] sm:$0xff]  }
 0x1c2   : > { %v1072_v36 = vsel %vm404_vm14, %v1070_v41, %v1053_v4  ;;  %624 = vst.msk [vmem:[#allocation2] sm:$0xcc] %vm5936_vm4, %v619_v27 }
 0x1c3   : > { %v4518_v47 = vcombine.low %v1068_v54, %v1072_v36  ;;  %v7154_v54 = vld [vmem:[#allocation7_spill] sm:$0xff] }
 0x1c4   : > { %v362_v25 = vpop.permute.xlu1 %361  ;;  %v370_v20 = vpop.permute.xlu0 %369  ;;  %v2414_v41 = vadd.s32 8, %v7154_v54 }
 0x1c5   : > { %v1078_v40 = vrot.slane %v4518_v47, 6  ;;  %v394_v8 = vsel %vm392_vm10, %v391_v44, %v362_v25 }
 0x1c7   : > { %1080 = vst.msk [vmem:[#allocation2 + $0x8] sm:$0xcc] %vm5936_vm4, %v1078_v40  ;;  %vm2577_vm4 = vcmask 261120  }
 0x1c8   : > { %v778_v34 = vpop.permute.xlu1 %777  ;;  %v782_v32 = vpop.permute.xlu0 %781 }
 0x1c9   : > { %v805_v45 = vsel %vm392_vm10, %v803_v29, %v778_v34 }
 0x1ca   : > { %v807_v50 = vsel %vm395_vm11, %v805_v45, %v782_v32  ;;  %v7155_v32 = vlaneseq }
 0x1cc   : > { %v366_v39 = vpop.permute.xlu1 %365  ;;  %v790_v30 = vpop.permute.xlu0 %789 }
 0x1cd   : > { %v397_v1 = vsel %vm395_vm11, %v394_v8, %v366_v39  ;;  %v6078_v39 = vand.u32 127, %v7155_v32 }
 0x1ce   : > { %v400_v46 = vsel %vm398_vm13, %v397_v1, %v370_v20 }
 0x1cf   : > { %vm2426_vm8 = vcmp.ge.s32.totalorder %v6078_v39, 1  ;;  %vm2435_vm10 = vcmp.le.s32.totalorder %v6078_v39, 16 }
 0x1d0   : > { %v374_v7 = vpop.permute.xlu1 %373  ;;  %v794_v60 = vpop.permute.xlu0 %793 }
 0x1d1   : > { %v403_v28 = vsel %vm401_vm12, %v370_v20, %v374_v7 }
 0x1d4   : > { %v786_v9 = vpop.permute.xlu1 %785 }
 0x1d5   : > { %v809_v19 = vsel %vm398_vm13, %v807_v50, %v786_v9  ;;  %v811_v56 = vsel %vm401_vm12, %v786_v9, %v790_v30 }
 0x1d6   : > { %v813_v14 = vsel %vm404_vm14, %v811_v56, %v794_v60 }
 0x1d7   : > { %v4508_v21 = vcombine.low %v809_v19, %v813_v14 }
 0x1d8   : > { %v378_v43 = vpop.permute.xlu1 %377 }
 0x1d9   : > { %820 = vst.msk [vmem:[#allocation2 + $0x8] sm:$0x33] %vm5887_vm1, %v4508_v21  ;;  %v406_v16 = vsel %vm404_vm14, %v403_v28, %v378_v43 }
 0x1da   : > { %v4488_v3 = vcombine.low %v400_v46, %v406_v16 }
 0x1dc   : > { %416 = vst.msk [vmem:[#allocation2] sm:$0x33] %vm5887_vm1, %v4488_v3 }
 0x1dd   : > { %v2169_v52 = vpop.permute.xlu0 %2168 }
 0x1e3   : > { %v4734_v22 = vld [vmem:[#allocation2 + $0x4] ss:$8 sps:$4 sm:$0xff]   ;;  %v4736_v49 = vld [vmem:[#allocation2] ss:$8 sps:$4 sm:$0xff]  }
 0x1e4   : > { %2130 = vmatprep.subr.bf16.mxu0 %v4734_v22 }
 0x1e5   : > { %2131 = vmatpush1.bf16.msra.mxu0 %v4736_v49  ;;  %v2163_v59 = vpop.permute.xlu1 %2162 }
 0x1e8   : > { %4581 = vmatmul.mubr.msk.bf16.vlgmr.msra.gmra.mxu0 %vm383_vm7, %v4737_v42 }
 0x2a8   : > { %v2150_v48 = vpop.f32.mrf.mxu0 }
 0x2a9   : > { %v2165_v13 = vmul.f32 %v2163_v59, %v2150_v48 }
 0x2aa   : > { %v2152_v5 = vpop.f32.mrf.mxu0 }
 0x2ab   : > { %v2171_v26 = vadd.f32 %v2169_v52, %v2165_v13  ;;  %v2166_v23 = vmul.f32 %v2163_v59, %v2152_v5 }
 0x2ad   : > { %v2173_v38 = vmax.f32 %v2171_v26, 0.0  ;;  %v2172_v63 = vadd.f32 %v2169_v52, %v2166_v23 }
 0x2af   : > { %2176 = vrot.lane.b32.xlu0 %v2173_v38, %s4856_s27  ;;  %2195 = vrot.lane.b32.xlu1 %v2173_v38, %s4857_s30  ;;  %v2174_v51 = vmax.f32 %v2172_v63, 0.0 }
 0x2b3   : > { %2182 = vrot.lane.b32.xlu0 %v2173_v38, %s4858_s5  ;;  %2179 = vrot.lane.b32.xlu1 %v2173_v38, %s7102_s8  ;;  %s4583_s8 = sadd.s32 4294967295, %s4582_s24  ;;  %s4868_s24 = smov 96  }
 0x2b4   : > { %v2415_v27 = vstv %s4583_s8  ;;  %s4866_s8 = smov 64  }
 0x2b5   : > { %v2416_v34 = vadd.s32 %v2415_v27, %v7154_v54  ;;  %v2417_v61 = vadd.s32 %v2415_v27, %v2414_v41 }
 0x2b7   : > { %2188 = vrot.lane.b32.xlu0 %v2173_v38, %s4860_s10  ;;  %2185 = vrot.lane.b32.xlu1 %v2173_v38, %s4861_s11  ;;  %vm2420_vm6 = vcmp.ge.s32.totalorder %v2416_v34, 0  ;;  %vm2422_vm7 = vcmp.lt.s32.totalorder %v2416_v34, 16  ;;  %vm2421_vm11 = vcmp.ge.s32.totalorder %v2417_v61, 0  ;;  %vm2423_vm13 = vcmp.lt.s32.totalorder %v2417_v61, 16 }
 0x2b8   : > { %vm2424_vm14 = vmand %vm2420_vm6, %vm2422_vm7  ;;  %vm2580_vm6 = vcmask 392192   ;;  %vm2583_vm7 = vcmask 523264  }
 0x2b9   : > { %vm2433_vm15 = vmand %vm2424_vm14, %vm2426_vm8  ;;  %vm4330_vm14 = vcmask 1043456  }
 0x2ba   : > { %vm2425_vm0 = vmand %vm2421_vm11, %vm2423_vm13  ;;  %vm2592_vm11 = vcmask 916480   ;;  %vm4870_vm13 = vmmov 0  }
 0x2bb   : > { %2202 = vrot.lane.b32.xlu0 %v2174_v51, %s4862_s12  ;;  %2191 = vrot.lane.b32.xlu1 %v2173_v38, %s4863_s13  ;;  %vm6108_vm1 = vmand %vm2433_vm15, %vm2435_vm10 }
 0x2bc   : > { %vm2434_vm2 = vmand %vm2425_vm0, %vm2426_vm8  ;;  %vm2586_vm8 = vcmask 654336  }
 0x2bd   : > { %vm6134_vm3 = vmand %vm2434_vm2, %vm2435_vm10  ;;  %vm2589_vm10 = vcmask 785408  }
 0x2bf   : > { %2197 = vrot.lane.b32.xlu1 %v2174_v51, %s4857_s30 }
 0x2c3   : > { %2205 = vrot.lane.b32.xlu1 %v2174_v51, %s4864_s14 }
 0x321   : > { %v2177_v33 = vpop.permute.xlu0 %2176  ;;  %v2196_v2 = vpop.permute.xlu1 %2195 }
 0x325   : > { %v2183_v57 = vpop.permute.xlu0 %2182  ;;  %v2180_v35 = vpop.permute.xlu1 %2179 }
 0x326   : > { %v2224_v17 = vcombine.low %v2177_v33, %v2183_v57  ;;  %v2225_v31 = vcombine.high %v2177_v33, %v2183_v57  ;;  %v2208_v24 = vcombine.low %v2173_v38, %v2180_v35  ;;  %v2209_v6 = vcombine.high %v2173_v38, %v2180_v35 }
 0x328   : > { %v2232_v36 = vrot.slane %v2224_v17, %v5007_v15  ;;  %v2239_v47 = vrot.slane %v2225_v31, %v5007_v15  ;;  %v2216_v25 = vrot.slane %v2208_v24, %v5007_v15  ;;  %v2223_v40 = vrot.slane %v2209_v6, %v5007_v15 }
 0x329   : > { %v2186_v18 = vpop.permute.xlu1 %2185  ;;  %v2189_v4 = vpop.permute.xlu0 %2188 }
 0x32a   : > { %v2272_v53 = vcombine.low %v2216_v25, %v2232_v36  ;;  %v2273_v55 = vcombine.high %v2216_v25, %v2232_v36  ;;  %v2288_v58 = vcombine.low %v2223_v40, %v2239_v47  ;;  %v2289_v45 = vcombine.high %v2223_v40, %v2239_v47 }
 0x32c   : > { %v2280_v50 = vrot.slane %v2272_v53, %v5209_v62  ;;  %v2287_v9 = vrot.slane %v2273_v55, %v5209_v62  ;;  %v2296_v8 = vrot.slane %v2288_v58, %v5209_v62  ;;  %v2303_v28 = vrot.slane %v2289_v45, %v5209_v62 }
 0x32d   : > { %v2192_v20 = vpop.permute.xlu1 %2191  ;;  %v2203_v30 = vpop.permute.xlu0 %2202 }
 0x32e   : > { %v2240_v29 = vcombine.low %v2186_v18, %v2192_v20  ;;  %v2241_v7 = vcombine.high %v2186_v18, %v2192_v20  ;;  %v2344_v60 = vcombine.high %v2203_v30, %v7105_v11  ;;  %v2351_v43 = vrot.slane %v2203_v30, %v5007_v15 }
 0x330   : > { %v2248_v19 = vrot.slane %v2240_v29, %v5007_v15  ;;  %v2255_v56 = vrot.slane %v2241_v7, %v5007_v15  ;;  %v2358_v59 = vrot.slane %v2344_v60, %v5007_v15 }
 0x331   : > { %v2198_v0 = vpop.permute.xlu1 %2197 }
 0x332   : > { %v2200_v10 = vsel %vm2199_vm5, %v2196_v2, %v2198_v0 }
 0x333   : > { %v2256_v37 = vcombine.low %v2189_v4, %v2200_v10  ;;  %v2257_v44 = vcombine.high %v2189_v4, %v2200_v10 }
 0x335   : > { %v2264_v1 = vrot.slane %v2256_v37, %v5007_v15  ;;  %v2271_v14 = vrot.slane %v2257_v44, %v5007_v15  ;;  %v2206_v21 = vpop.permute.xlu1 %2205 }
 0x336   : > { %v2359_v46 = vcombine.high %v2206_v21, %v7105_v11  ;;  %v2366_v16 = vrot.slane %v2206_v21, %v5007_v15 }
 0x337   : > { %v2304_v3 = vcombine.low %v2248_v19, %v2264_v1  ;;  %v2305_v22 = vcombine.high %v2248_v19, %v2264_v1  ;;  %v2320_v49 = vcombine.low %v2255_v56, %v2271_v14  ;;  %v2321_v42 = vcombine.high %v2255_v56, %v2271_v14 }
 0x338   : > { %v2373_v48 = vrot.slane %v2359_v46, %v5007_v15  ;;  %v2374_v52 = vcombine.low %v2351_v43, %v2366_v16  ;;  %v2375_v13 = vcombine.high %v2351_v43, %v2366_v16 }
 0x339   : > { %v2312_v26 = vrot.slane %v2304_v3, %v5209_v62  ;;  %v2319_v38 = vrot.slane %v2305_v22, %v5209_v62  ;;  %v2328_v5 = vrot.slane %v2320_v49, %v5209_v62  ;;  %v2335_v23 = vrot.slane %v2321_v42, %v5209_v62 }
 0x33a   : > { %v2382_v51 = vrot.slane %v2374_v52, %v5209_v62  ;;  %v2389_v33 = vrot.slane %v2375_v13, %v5209_v62  ;;  %v2390_v2 = vcombine.low %v2358_v59, %v2373_v48  ;;  %v2391_v57 = vcombine.high %v2358_v59, %v2373_v48 }
 0x33b   : > { %v2336_v35 = vcombine.low %v2280_v50, %v2312_v26  ;;  %v2337_v17 = vcombine.high %v2280_v50, %v2312_v26  ;;  %v2338_v31 = vcombine.low %v2287_v9, %v2319_v38  ;;  %v2339_v24 = vcombine.high %v2287_v9, %v2319_v38 }
 0x33c   : > { %v2340_v6 = vcombine.low %v2296_v8, %v2328_v5  ;;  %v2341_v18 = vcombine.high %v2296_v8, %v2328_v5  ;;  %v2342_v27 = vcombine.low %v2303_v28, %v2335_v23  ;;  %v2343_v4 = vcombine.high %v2303_v28, %v2335_v23 }
 0x33d   : > { %v2446_v54 = vsel %vm6108_vm1, %v2337_v17, 0.0  ;;  %v2450_v41 = vsel %vm6108_vm1, %v2339_v24, 0.0  ;;  %v2444_v36 = vsel %vm6108_vm1, %v2336_v35, 0.0  ;;  %v2448_v47 = vsel %vm6108_vm1, %v2338_v31, 0.0 }
 0x33e   : > { %v2452_v25 = vsel %vm6108_vm1, %v2340_v6, 0.0  ;;  %v2454_v40 = vsel %vm6108_vm1, %v2341_v18, 0.0  ;;  %v2456_v20 = vsel %vm6108_vm1, %v2342_v27, 0.0  ;;  %v2458_v34 = vsel %vm6108_vm1, %v2343_v4, 0.0 }
 0x33f   : > { %v4586_v32 = vpack.c.bf16 %v2454_v40, %v2446_v54  ;;  %v4587_v61 = vpack.c.bf16 %v2458_v34, %v2450_v41  ;;  %v4584_v55 = vpack.c.bf16 %v2452_v25, %v2444_v36  ;;  %v4585_v58 = vpack.c.bf16 %v2456_v20, %v2448_v47 }
 0x340   : > { %v2398_v30 = vrot.slane %v2390_v2, %v5209_v62  ;;  %v2405_v29 = vrot.slane %v2391_v57, %v5209_v62  ;;  %v2406_v7 = vcombine.high %v2382_v51, %v7105_v11  ;;  %v2407_v0 = vcombine.high %v2389_v33, %v7105_v11 }
 0x341   : > { %v2445_v39 = vsel %vm6134_vm3, %v2382_v51, 0.0  ;;  %v2449_v44 = vsel %vm6134_vm3, %v2389_v33, 0.0  ;;  %v6177_v46 = vrot.slane %v4586_v32, %v5007_v15  ;;  %v6185_v49 = vrot.slane %v4587_v61, %v5007_v15 }
 0x342   : > { %v2408_v45 = vcombine.high %v2398_v30, %v7105_v11  ;;  %v2409_v10 = vcombine.high %v2405_v29, %v7105_v11  ;;  %v2447_v37 = vsel %vm6134_vm3, %v2406_v7, 0.0  ;;  %v6150_v50 = vpack.c.bf16 %v2445_v39, %v2444_v36 }
 0x343   : > { %v6152_v9 = vpack.c.bf16 %v2447_v37, %v2446_v54  ;;  %v2451_v8 = vsel %vm6134_vm3, %v2407_v0, 0.0  ;;  %v2453_v60 = vsel %vm6134_vm3, %v2398_v30, 0.0  ;;  %v2457_v19 = vsel %vm6134_vm3, %v2405_v29, 0.0 }
 0x344   : > { %2752 = vrot.lane.b32.xlu0 %v6150_v50, %s4843_s19  ;;  %v2455_v56 = vsel %vm6134_vm3, %v2408_v45, 0.0  ;;  %v2459_v1 = vsel %vm6134_vm3, %v2409_v10, 0.0  ;;  %v6168_v14 = vpack.c.bf16 %v2449_v44, %v2448_v47  ;;  %v6170_v21 = vpack.c.bf16 %v2451_v8, %v2450_v41 }
 0x345   : > { %2754 = vrot.lane.b32.xlu1 %v6152_v9, %s4843_s19  ;;  %v6172_v28 = vpack.c.bf16 %v2453_v60, %v2452_v25  ;;  %v6174_v43 = vpack.c.bf16 %v2457_v19, %v2456_v20  ;;  %v6179_v16 = vpack.c.bf16 %v2455_v56, %v2454_v40  ;;  %v6181_v3 = vpack.c.bf16 %v2459_v1, %v2458_v34 }
 0x346   : > { %v2902_v22 = vshll.u32 %v6150_v50, 16  ;;  %v2475_v42 = vrot.slane %v4584_v55, %v5007_v15  ;;  %v2483_v59 = vrot.slane %v4585_v58, %v5007_v15  ;;  %v6194_v48 = vrot.slane %v6150_v50, 1 }
 0x347   : > { %v6197_v52 = vrot.slane %v6152_v9, 1  ;;  %v2909_v13 = vshll.u32 %v6152_v9, 16  ;;  %v2916_v26 = vshll.u32 %v6168_v14, 16  ;;  %v6202_v38 = vrot.slane %v6168_v14, 1 }
 0x348   : > { %2756 = vrot.lane.b32.xlu0 %v6168_v14, %s4843_s19  ;;  %v6205_v5 = vrot.slane %v6170_v21, 1  ;;  %v6208_v23 = vrot.slane %v6172_v28, 1  ;;  %v6211_v63 = vrot.slane %v6174_v43, 1  ;;  %v6214_v51 = vrot.slane %v6179_v16, 1 }
 0x349   : > { %2758 = vrot.lane.b32.xlu1 %v6170_v21, %s4843_s19  ;;  %v6217_v33 = vrot.slane %v6181_v3, 1  ;;  %v2904_v2 = vrot.slane %v2902_v22, 1  ;;  %v2923_v57 = vshll.u32 %v6170_v21, 16  ;;  %v2900_v35 = vshrl.u32 %v6150_v50, 16 }
 0x34a   : > { %v2907_v17 = vshrl.u32 %v6152_v9, 16  ;;  %v2930_v31 = vshll.u32 %v6172_v28, 16  ;;  %v2937_v24 = vshll.u32 %v6179_v16, 16  ;;  %v2911_v6 = vrot.slane %v2909_v13, 1 }
 0x34b   : > { %v2914_v18 = vshrl.u32 %v6168_v14, 16  ;;  %v2918_v27 = vrot.slane %v2916_v26, 1  ;;  %v2944_v4 = vshll.u32 %v6174_v43, 16  ;;  %v2925_v54 = vrot.slane %v2923_v57, 1 }
 0x34c   : > { %2760 = vrot.lane.b32.xlu0 %v6172_v28, %s4843_s19  ;;  %v2935_v41 = vshrl.u32 %v6179_v16, 16  ;;  %v2939_v36 = vrot.slane %v2937_v24, 1  ;;  %v2951_v47 = vshll.u32 %v6181_v3, 16  ;;  %v6232_v25 = vor.u32 %v2904_v2, %v2900_v35 }
 0x34d   : > { %2762 = vrot.lane.b32.xlu1 %v6179_v16, %s4843_s19  ;;  %v2932_v40 = vrot.slane %v2930_v31, 1  ;;  %v2946_v20 = vrot.slane %v2944_v4, 1  ;;  %v2485_v34 = vcombine.high %v2475_v42, %v2483_v59  ;;  %v2921_v32 = vshrl.u32 %v6170_v21, 16 }
 0x34e   : > { %v6239_v61 = vor.u32 %v2939_v36, %v2935_v41  ;;  %v2949_v53 = vshrl.u32 %v6181_v3, 16  ;;  %v2953_v55 = vrot.slane %v2951_v47, 1  ;;  %v2928_v58 = vshrl.u32 %v6172_v28, 16 }
 0x34f   : > { %v2942_v30 = vshrl.u32 %v6174_v43, 16  ;;  %v6245_v29 = vrot.slane %v2485_v34, %v5209_v62  ;;  %v2519_v7 = vcombine.high %v6177_v46, %v6185_v49  ;;  %v6249_v0 = vor.u32 %v2911_v6, %v2907_v17 }
 0x350   : > { %2764 = vrot.lane.b32.xlu0 %v6174_v43, %s4843_s19  ;;  %v6251_v45 = vor.u32 %v2918_v27, %v2914_v18  ;;  %v6253_v10 = vor.u32 %v2925_v54, %v2921_v32  ;;  %v6255_v39 = vor.u32 %v2953_v55, %v2949_v53  ;;  %v6257_v37 = vor.u32 %v2932_v40, %v2928_v58 }
 0x351   : > { %2766 = vrot.lane.b32.xlu1 %v6181_v3, %s4843_s19  ;;  %v6259_v44 = vor.u32 %v2946_v20, %v2942_v30  ;;  %v6262_v8 = vrot.slane %v2519_v7, %v5209_v62  ;;  %v2484_v60 = vcombine.low %v2475_v42, %v2483_v59  ;;  %v3430_v19 = vcombine.low %v6197_v52, %v6214_v51 }
 0x352   : > { %v3438_v56 = vcombine.low %v6205_v5, %v6217_v33  ;;  %v2997_v1 = vcombine.low %v6249_v0, %v6239_v61  ;;  %v3005_v22 = vcombine.low %v6253_v10, %v6255_v39  ;;  %v2518_v59 = vcombine.low %v6177_v46, %v6185_v49 }
 0x353   : > { %v2550_v42 = vpack.i.b16 %v6262_v8, %v6245_v29  ;;  %v2552_v13 = vshrl.u32 %v6262_v8, 16  ;;  %v3396_v26 = vcombine.low %v6194_v48, %v6208_v23  ;;  %v3404_v2 = vcombine.low %v6202_v38, %v6211_v63 }
 0x354   : > { %2605 = vrot.lane.b32.xlu0 %v6150_v50, %s7103_s23  ;;  %v6279_v50 = vrot.slane %v2484_v60, %v5209_v62  ;;  %v2963_v57 = vcombine.low %v6232_v25, %v6257_v37  ;;  %v2971_v35 = vcombine.low %v6251_v45, %v6259_v44  ;;  %v6298_v46 = vrot.slane %v3430_v19, %v5007_v15 }
 0x355   : > { %2607 = vrot.lane.b32.xlu1 %v6152_v9, %s7103_s23  ;;  %v2551_v9 = vshrl.u32 %v6245_v29, 16  ;;  %v6301_v49 = vrot.slane %v2518_v59, %v5209_v62  ;;  %v6309_v24 = vrot.slane %v3438_v56, %v5007_v15  ;;  %v6325_v4 = vrot.slane %v3396_v26, %v5007_v15 }
 0x356   : > { %v2539_v17 = vshrl.u32 %v6279_v50, 16  ;;  %v6306_v31 = vcombine.high %v6279_v50, %v7130_v12  ;;  %v6328_v54 = vrot.slane %v3404_v2, %v5007_v15  ;;  %v6331_v41 = vrot.slane %v2963_v57, %v5007_v15 }
 0x357   : > { %v6317_v6 = vpack.i.b16 %v2552_v13, %v2551_v9  ;;  %v2540_v18 = vshrl.u32 %v6301_v49, 16  ;;  %v6322_v27 = vcombine.high %v6301_v49, %v7130_v12  ;;  %v6334_v36 = vrot.slane %v2971_v35, %v5007_v15 }
 0x358   : > { %2609 = vrot.lane.b32.xlu0 %v6168_v14, %s7103_s23  ;;  %v6312_v14 = vrot.slane %v2997_v1, %v5007_v15  ;;  %v3446_v20 = vcombine.low %v6298_v46, %v6309_v24  ;;  %v2545_v32 = vshrl.u32 %v6306_v31, 16  ;;  %v6384_v56 = vcombine.high %v6245_v29, %v7130_v12 }
 0x359   : > { %2611 = vrot.lane.b32.xlu1 %v6170_v21, %s7103_s23  ;;  %v6315_v21 = vrot.slane %v3005_v22, %v5007_v15  ;;  %v6340_v47 = vpack.i.b16 %v2540_v18, %v2539_v17  ;;  %v2544_v40 = vpack.i.b16 %v6322_v27, %v6306_v31  ;;  %v2546_v53 = vshrl.u32 %v6322_v27, 16 }
 0x35a   : > { %v6361_v58 = vrot.slane %v3446_v20, %v5209_v62  ;;  %v6388_v1 = vcombine.high %v6262_v8, %v7130_v12  ;;  %v2557_v22 = vshrl.u32 %v6384_v56, 16  ;;  %v3447_v29 = vcombine.high %v6298_v46, %v6309_v24 }
 0x35b   : > { %v3013_v34 = vcombine.low %v6312_v14, %v6315_v21  ;;  %v6358_v55 = vpack.i.b16 %v2546_v53, %v2545_v32 }
 0x35c   : > { %2613 = vrot.lane.b32.xlu0 %v6172_v28, %s7103_s23  ;;  %v3412_v28 = vcombine.low %v6325_v4, %v6328_v54  ;;  %v2558_v59 = vshrl.u32 %v6388_v1, 16  ;;  %v3461_v8 = vrot.slane %v3447_v29, %v5209_v62 }
 0x35d   : > { %2615 = vrot.lane.b32.xlu1 %v6179_v16, %s7103_s23  ;;  %v2979_v16 = vcombine.low %v6331_v41, %v6334_v36  ;;  %v6364_v30 = vrot.slane %v3013_v34, %v5209_v62 }
 0x35e   : > { %v6367_v7 = vrot.slane %v3412_v28, %v5209_v62  ;;  %v6398_v13 = vpack.i.b16 %v2558_v59, %v2557_v22 }
 0x35f   : > { %v6370_v60 = vrot.slane %v2979_v16, %v5209_v62  ;;  %v3463_v16 = vcombine.high %v3461_v8, %v7130_v12 }
 0x360   : > { %2617 = vrot.lane.b32.xlu0 %v6174_v43, %s7103_s23  ;;  %v2538_v43 = vpack.i.b16 %v6301_v49, %v6279_v50  ;;  %v3467_v18 = vshrl.u32 %v6367_v7, 16 }
 0x361   : > { %2619 = vrot.lane.b32.xlu1 %v6181_v3, %s7103_s23  ;;  %v3033_v3 = vpack.i.b16 %v6364_v30, %v6370_v60 }
 0x364   : > { %3666 = vrot.lane.b32.xlu0 %v6194_v48, %s4843_s19 }
 0x365   : > { %3668 = vrot.lane.b32.xlu1 %v6197_v52, %s4843_s19 }
 0x368   : > { %3670 = vrot.lane.b32.xlu0 %v6202_v38, %s4843_s19 }
 0x369   : > { %3672 = vrot.lane.b32.xlu1 %v6205_v5, %s4843_s19 }
 0x36c   : > { %3674 = vrot.lane.b32.xlu0 %v6208_v23, %s4843_s19 }
 0x36d   : > { %3676 = vrot.lane.b32.xlu1 %v6214_v51, %s4843_s19 }
 0x370   : > { %3678 = vrot.lane.b32.xlu0 %v6211_v63, %s4843_s19 }
 0x371   : > { %3680 = vrot.lane.b32.xlu1 %v6217_v33, %s4843_s19 }
 0x374   : > { %3519 = vrot.lane.b32.xlu0 %v6194_v48, %s7103_s23  ;;  %v6454_v48 = vcombine.high %v6361_v58, %v7130_v12 }
 0x375   : > { %3521 = vrot.lane.b32.xlu1 %v6197_v52, %s7103_s23  ;;  %v3014_v52 = vcombine.high %v6312_v14, %v6315_v21  ;;  %v3468_v21 = vshrl.u32 %v6361_v58, 16 }
 0x378   : > { %3523 = vrot.lane.b32.xlu0 %v6202_v38, %s7103_s23  ;;  %v6464_v38 = vcombine.high %v6367_v7, %v7130_v12 }
 0x379   : > { %3525 = vrot.lane.b32.xlu1 %v6205_v5, %s7103_s23  ;;  %v2980_v5 = vcombine.high %v6331_v41, %v6334_v36  ;;  %v3469_v41 = vpack.i.b16 %v3468_v21, %v3467_v18 }
 0x37c   : > { %3527 = vrot.lane.b32.xlu0 %v6208_v23, %s7103_s23  ;;  %v3472_v23 = vpack.i.b16 %v6454_v48, %v6464_v38 }
 0x37d   : > { %3529 = vrot.lane.b32.xlu1 %v6214_v51, %s7103_s23  ;;  %v2994_v51 = vrot.slane %v2980_v5, %v5209_v62 }
 0x37f   : > { %v2996_v46 = vcombine.high %v2994_v51, %v7130_v12 }
 0x380   : > { %3531 = vrot.lane.b32.xlu0 %v6211_v63, %s7103_s23  ;;  %v3028_v63 = vrot.slane %v3014_v52, %v5209_v62 }
 0x381   : > { %3533 = vrot.lane.b32.xlu1 %v6217_v33, %s7103_s23 }
 0x382   : > { %v3045_v33 = vpack.i.b16 %v3028_v63, %v2994_v51  ;;  %v3030_v35 = vcombine.high %v3028_v63, %v7130_v12 }
 0x384   : > { %3086 = vrot.lane.b32.xlu0 %v6232_v25, %s7103_s23  ;;  %v3051_v24 = vpack.i.b16 %v3030_v35, %v2996_v46  ;;  %v3053_v36 = vshrl.u32 %v3030_v35, 16 }
 0x385   : > { %3088 = vrot.lane.b32.xlu1 %v6249_v0, %s7103_s23 }
 0x388   : > { %3090 = vrot.lane.b32.xlu0 %v6251_v45, %s7103_s23 }
 0x389   : > { %3092 = vrot.lane.b32.xlu1 %v6253_v10, %s7103_s23 }
 0x38c   : > { %3094 = vrot.lane.b32.xlu0 %v6257_v37, %s7103_s23 }
 0x38d   : > { %3096 = vrot.lane.b32.xlu1 %v6239_v61, %s7103_s23 }
 0x390   : > { %3098 = vrot.lane.b32.xlu0 %v6259_v44, %s7103_s23 }
 0x391   : > { %3100 = vrot.lane.b32.xlu1 %v6255_v39, %s7103_s23  ;;  %s4869_s23 = smov 48  }
 0x394   : > { %3233 = vrot.lane.b32.xlu0 %v6232_v25, %s4843_s19  ;;  %v3035_v25 = vshrl.u32 %v6364_v30, 16 }
 0x395   : > { %3235 = vrot.lane.b32.xlu1 %v6249_v0, %s4843_s19 }
 0x398   : > { %3237 = vrot.lane.b32.xlu0 %v6251_v45, %s4843_s19  ;;  %v3029_v45 = vcombine.high %v6364_v30, %v7130_v12 }
 0x399   : > { %3239 = vrot.lane.b32.xlu1 %v6253_v10, %s4843_s19  ;;  %v2995_v10 = vcombine.high %v6370_v60, %v7130_v12 }
 0x39a   : > { %v3041_v14 = vshrl.u32 %v3029_v45, 16 }
 0x39c   : > { %3241 = vrot.lane.b32.xlu0 %v6257_v37, %s4843_s19  ;;  %v3039_v37 = vpack.i.b16 %v3029_v45, %v2995_v10 }
 0x39d   : > { %3243 = vrot.lane.b32.xlu1 %v6239_v61, %s4843_s19  ;;  %v3034_v61 = vshrl.u32 %v6370_v60, 16 }
 0x39f   : > { %v3036_v0 = vpack.i.b16 %v3035_v25, %v3034_v61  ;;  %v3473_v25 = vshrl.u32 %v6464_v38, 16 }
 0x3a0   : > { %3245 = vrot.lane.b32.xlu0 %v6259_v44, %s4843_s19  ;;  %v3047_v44 = vshrl.u32 %v3028_v63, 16  ;;  %v3474_v63 = vshrl.u32 %v6454_v48, 16 }
 0x3a1   : > { %3247 = vrot.lane.b32.xlu1 %v6255_v39, %s4843_s19  ;;  %v3413_v39 = vcombine.high %v6325_v4, %v6328_v54  ;;  %s4867_s19 = smov 80  }
 0x3a3   : > { %v3427_v26 = vrot.slane %v3413_v39, %v5209_v62 }
 0x3a4   : > { %3490 = vrot.lane.b32.xlu0 %v3472_v23, %s4865_s18 }
 0x3a5   : > { %2566 = vrot.lane.b32.xlu1 %v2550_v42, %s4866_s8  ;;  %v3046_v42 = vshrl.u32 %v2994_v51, 16  ;;  %v3478_v57 = vpack.i.b16 %v3461_v8, %v3427_v26  ;;  %v3479_v20 = vshrl.u32 %v3427_v26, 16 }
 0x3a7   : > { %v3048_v2 = vpack.i.b16 %v3047_v44, %v3046_v42  ;;  %v3486_v44 = vshrl.u32 %v3463_v16, 16 }
 0x3a8   : > { %3061 = vrot.lane.b32.xlu0 %v3045_v33, %s4866_s8 }
 0x3a9   : > { %2560 = vrot.lane.b32.xlu1 %v6340_v47, %s4850_s6  ;;  %v3480_v47 = vshrl.u32 %v3461_v8, 16 }
 0x3ab   : > { %v3481_v28 = vpack.i.b16 %v3480_v47, %v3479_v20 }
 0x3ac   : > { %3055 = vrot.lane.b32.xlu0 %v3036_v0, %s4850_s6 }
 0x3ad   : > { %2562 = vrot.lane.b32.xlu1 %v2544_v40, %s4865_s18  ;;  %v3052_v40 = vshrl.u32 %v2996_v46, 16 }
 0x3af   : > { %v3054_v53 = vpack.i.b16 %v3053_v36, %v3052_v40 }
 0x3b0   : > { %3057 = vrot.lane.b32.xlu0 %v3039_v37, %s4865_s18  ;;  %v3475_v37 = vpack.i.b16 %v3474_v63, %v3473_v25 }
 0x3b1   : > { %2568 = vrot.lane.b32.xlu1 %v6317_v6, %s4867_s19  ;;  %v3040_v6 = vshrl.u32 %v2995_v10, 16 }
 0x3b3   : > { %v3042_v54 = vpack.i.b16 %v3041_v14, %v3040_v6 }
 0x3b4   : > { %3063 = vrot.lane.b32.xlu0 %v3048_v2, %s4867_s19 }
 0x3b5   : > { %3494 = vrot.lane.b32.xlu1 %v3478_v57, %s4866_s8 }
 0x3b6   : > { %v2753_v17 = vpop.permute.xlu0 %2752 }
 0x3b7   : > { %v2755_v31 = vpop.permute.xlu1 %2754 }
 0x3b8   : > { %3065 = vrot.lane.b32.xlu0 %v3051_v24, %s4868_s24 }
 0x3b9   : > { %2564 = vrot.lane.b32.xlu1 %v6358_v55, %s4869_s23  ;;  %v3429_v55 = vcombine.high %v3427_v26, %v7130_v12 }
 0x3ba   : > { %v2757_v27 = vpop.permute.xlu0 %2756 }
 0x3bb   : > { %v2759_v4 = vpop.permute.xlu1 %2758  ;;  %v3484_v23 = vpack.i.b16 %v3463_v16, %v3429_v55  ;;  %v3485_v2 = vshrl.u32 %v3429_v55, 16 }
 0x3bc   : > { %3059 = vrot.lane.b32.xlu0 %v3042_v54, %s4869_s23 }
 0x3bd   : > { %3488 = vrot.lane.b32.xlu1 %v3469_v41, %s4850_s6  ;;  %v3487_v24 = vpack.i.b16 %v3486_v44, %v3485_v2 }
 0x3be   : > { %v2761_v34 = vpop.permute.xlu0 %2760 }
 0x3bf   : > { %v2763_v32 = vpop.permute.xlu1 %2762  ;;  %v2776_v22 = vcombine.low %v2753_v17, %v2761_v34 }
 0x3c0   : > { %3067 = vrot.lane.b32.xlu0 %v3054_v53, %s4862_s12  ;;  %v2810_v59 = vcombine.low %v2755_v31, %v2763_v32 }
 0x3c1   : > { %3496 = vrot.lane.b32.xlu1 %v3481_v28, %s4867_s19  ;;  %v2783_v61 = vrot.slane %v2776_v22, %v5007_v15 }
 0x3c2   : > { %v2765_v52 = vpop.permute.xlu0 %2764  ;;  %v2817_v0 = vrot.slane %v2810_v59, %v5007_v15 }
 0x3c3   : > { %v2767_v5 = vpop.permute.xlu1 %2766  ;;  %v2784_v51 = vcombine.low %v2757_v27, %v2765_v52 }
 0x3c4   : > { %v2818_v33 = vcombine.low %v2759_v4, %v2767_v5 }
 0x3c5   : > { %3498 = vrot.lane.b32.xlu1 %v3484_v23, %s4868_s24  ;;  %v2791_v45 = vrot.slane %v2784_v51, %v5007_v15 }
 0x3c6   : > { %v2825_v29 = vrot.slane %v2818_v33, %v5007_v15  ;;  %v2606_v10 = vpop.permute.xlu0 %2605 }
 0x3c7   : > { %v2608_v39 = vpop.permute.xlu1 %2607  ;;  %v2792_v8 = vcombine.low %v2783_v61, %v2791_v45  ;;  %v2793_v48 = vcombine.high %v2783_v61, %v2791_v45 }
 0x3c8   : > { %v2826_v42 = vcombine.low %v2817_v0, %v2825_v29  ;;  %v2827_v26 = vcombine.high %v2817_v0, %v2825_v29 }
 0x3c9   : > { %3492 = vrot.lane.b32.xlu1 %v3475_v37, %s4869_s23  ;;  %v6524_v38 = vrot.slane %v2792_v8, %v5209_v62  ;;  %v6530_v35 = vrot.slane %v2793_v48, %v5209_v62 }
 0x3ca   : > { %v6527_v57 = vrot.slane %v2826_v42, %v5209_v62  ;;  %v6533_v46 = vrot.slane %v2827_v26, %v5209_v62  ;;  %v2610_v17 = vpop.permute.xlu0 %2609 }
 0x3cb   : > { %v2612_v31 = vpop.permute.xlu1 %2611 }
 0x3cc   : > { %v2858_v18 = vpack.i.b16 %v6533_v46, %v6530_v35 }
 0x3cd   : > { %3500 = vrot.lane.b32.xlu1 %v3487_v24, %s4862_s12 }
 0x3ce   : > { %v2614_v21 = vpop.permute.xlu0 %2613 }
 0x3cf   : > { %v2616_v6 = vpop.permute.xlu1 %2615  ;;  %v2629_v27 = vcombine.low %v2606_v10, %v2614_v21 }
 0x3d0   : > { %v2663_v4 = vcombine.low %v2608_v39, %v2616_v6 }
 0x3d1   : > { %2874 = vrot.lane.b32.xlu1 %v2858_v18, %s4866_s8  ;;  %v2636_v40 = vrot.slane %v2629_v27, %v5007_v15 }
 0x3d2   : > { %v2618_v54 = vpop.permute.xlu0 %2617  ;;  %v2670_v20 = vrot.slane %v2663_v4, %v5007_v15 }
 0x3d3   : > { %v2620_v41 = vpop.permute.xlu1 %2619  ;;  %v2637_v36 = vcombine.low %v2610_v17, %v2618_v54 }
 0x3d4   : > { %v2671_v47 = vcombine.low %v2612_v31, %v2620_v41 }
 0x3d5   : > { %v2644_v34 = vrot.slane %v2637_v36, %v5007_v15 }
 0x3d6   : > { %v2678_v32 = vrot.slane %v2671_v47, %v5007_v15  ;;  %v3667_v53 = vpop.permute.xlu0 %3666 }
 0x3d7   : > { %v3669_v28 = vpop.permute.xlu1 %3668  ;;  %v2645_v16 = vcombine.low %v2636_v40, %v2644_v34  ;;  %v2646_v55 = vcombine.high %v2636_v40, %v2644_v34 }
 0x3d8   : > { %v2679_v22 = vcombine.low %v2670_v20, %v2678_v32  ;;  %v2680_v59 = vcombine.high %v2670_v20, %v2678_v32 }
 0x3d9   : > { %v6546_v52 = vrot.slane %v2645_v16, %v5209_v62  ;;  %v6549_v5 = vrot.slane %v2646_v55, %v5209_v62  ;;  %v2848_v16 = vshrl.u32 %v6527_v57, 16 }
 0x3da   : > { %v6552_v23 = vrot.slane %v2679_v22, %v5209_v62  ;;  %v6555_v63 = vrot.slane %v2680_v59, %v5209_v62  ;;  %v3671_v51 = vpop.permute.xlu0 %3670 }
 0x3db   : > { %v3673_v33 = vpop.permute.xlu1 %3672  ;;  %v6561_v61 = vcombine.high %v6549_v5, %v7130_v12 }
 0x3dc   : > { %v2711_v25 = vpack.i.b16 %v6555_v63, %v6549_v5  ;;  %v6566_v0 = vcombine.high %v6555_v63, %v7130_v12 }
 0x3dd   : > { %v2718_v39 = vshrl.u32 %v6561_v61, 16 }
 0x3de   : > { %2727 = vrot.lane.b32.xlu0 %v2711_v25, %s4866_s8  ;;  %v3675_v29 = vpop.permute.xlu0 %3674  ;;  %v2719_v44 = vshrl.u32 %v6566_v0, 16  ;;  %v6599_v25 = vcombine.high %v6524_v38, %v7130_v12 }
 0x3df   : > { %v3677_v10 = vpop.permute.xlu1 %3676  ;;  %v3690_v8 = vcombine.low %v3667_v53, %v3675_v29  ;;  %v6603_v29 = vcombine.high %v6527_v57, %v7130_v12 }
 0x3e0   : > { %v3724_v48 = vcombine.low %v3669_v28, %v3677_v10  ;;  %v6574_v42 = vpack.i.b16 %v2719_v44, %v2718_v39  ;;  %v2847_v28 = vshrl.u32 %v6524_v38, 16 }
 0x3e1   : > { %v3697_v24 = vrot.slane %v3690_v8, %v5007_v15 }
 0x3e2   : > { %v3679_v26 = vpop.permute.xlu0 %3678  ;;  %v3731_v21 = vrot.slane %v3724_v48, %v5007_v15 }
 0x3e3   : > { %v3681_v2 = vpop.permute.xlu1 %3680  ;;  %v3698_v17 = vcombine.low %v3671_v51, %v3679_v26  ;;  %v2859_v26 = vshrl.u32 %v6530_v35, 16 }
 0x3e4   : > { %v3732_v31 = vcombine.low %v3673_v33, %v3681_v2  ;;  %v2849_v33 = vpack.i.b16 %v2848_v16, %v2847_v28  ;;  %v2860_v2 = vshrl.u32 %v6533_v46, 16 }
 0x3e5   : > { %v3705_v6 = vrot.slane %v3698_v17, %v5007_v15 }
 0x3e6   : > { %v3739_v18 = vrot.slane %v3732_v31, %v5007_v15  ;;  %v3520_v27 = vpop.permute.xlu0 %3519 }
 0x3e7   : > { %v3522_v4 = vpop.permute.xlu1 %3521  ;;  %v3707_v54 = vcombine.high %v3697_v24, %v3705_v6  ;;  %v3706_v36 = vcombine.low %v3697_v24, %v3705_v6  ;;  %v2852_v24 = vpack.i.b16 %v6603_v29, %v6599_v25 }
 0x3e8   : > { %v3741_v41 = vcombine.high %v3731_v21, %v3739_v18  ;;  %v3740_v47 = vcombine.low %v3731_v21, %v3739_v18 }
 0x3e9   : > { %v6581_v40 = vrot.slane %v3707_v54, %v5209_v62  ;;  %v6591_v55 = vrot.slane %v3706_v36, %v5209_v62  ;;  %v6619_v36 = vcombine.high %v6530_v35, %v7130_v12 }
 0x3ea   : > { %v6584_v20 = vrot.slane %v3741_v41, %v5209_v62  ;;  %v3524_v34 = vpop.permute.xlu0 %3523  ;;  %v6594_v22 = vrot.slane %v3740_v47, %v5209_v62  ;;  %v2861_v41 = vpack.i.b16 %v2860_v2, %v2859_v26  ;;  %v6623_v47 = vcombine.high %v6533_v46, %v7130_v12 }
 0x3eb   : > { %v3526_v32 = vpop.permute.xlu1 %3525  ;;  %v2701_v2 = vshrl.u32 %v6552_v23, 16 }
 0x3ec   : > { %v3772_v53 = vpack.i.b16 %v6584_v20, %v6581_v40  ;;  %v6649_v26 = vcombine.high %v6594_v22, %v7130_v12  ;;  %v3774_v9 = vshrl.u32 %v6584_v20, 16 }
 0x3ee   : > { %3788 = vrot.lane.b32.xlu1 %v3772_v53, %s4866_s8  ;;  %v3528_v59 = vpop.permute.xlu0 %3527 }
 0x3ef   : > { %v3530_v51 = vpop.permute.xlu1 %3529  ;;  %v3543_v39 = vcombine.low %v3520_v27, %v3528_v59 }
 0x3f0   : > { %v3577_v44 = vcombine.low %v3522_v4, %v3530_v51 }
 0x3f1   : > { %v3550_v21 = vrot.slane %v3543_v39, %v5007_v15  ;;  %v2864_v39 = vpack.i.b16 %v6623_v47, %v6619_v36 }
 0x3f2   : > { %2868 = vrot.lane.b32.xlu1 %v2849_v33, %s4850_s6  ;;  %v3532_v8 = vpop.permute.xlu0 %3531  ;;  %v3584_v6 = vrot.slane %v3577_v44, %v5007_v15  ;;  %v2700_v44 = vshrl.u32 %v6546_v52, 16 }
 0x3f3   : > { %v3534_v48 = vpop.permute.xlu1 %3533  ;;  %v3551_v17 = vcombine.low %v3524_v34, %v3532_v8 }
 0x3f4   : > { %v3585_v31 = vcombine.low %v3526_v32, %v3534_v48  ;;  %v6645_v48 = vcombine.high %v6591_v55, %v7130_v12 }
 0x3f5   : > { %v3558_v18 = vrot.slane %v3551_v17, %v5007_v15  ;;  %v6656_v17 = vcombine.high %v6546_v52, %v7130_v12 }
 0x3f6   : > { %v3592_v27 = vrot.slane %v3585_v31, %v5007_v15  ;;  %2870 = vrot.lane.b32.xlu1 %v2852_v24, %s4865_s18  ;;  %v3087_v4 = vpop.permute.xlu0 %3086 }
 0x3f7   : > { %v3089_v54 = vpop.permute.xlu1 %3088  ;;  %v3559_v34 = vcombine.low %v3550_v21, %v3558_v18  ;;  %v3560_v32 = vcombine.high %v3550_v21, %v3558_v18  ;;  %v6660_v21 = vcombine.high %v6581_v40, %v7130_v12  ;;  %v6668_v18 = vcombine.high %v6552_v23, %v7130_v12 }
 0x3f8   : > { %v3593_v53 = vcombine.low %v3584_v6, %v3592_v27  ;;  %v3594_v28 = vcombine.high %v3584_v6, %v3592_v27  ;;  %v6664_v6 = vcombine.high %v6584_v20, %v7130_v12 }
 0x3f9   : > { %v6626_v16 = vrot.slane %v3560_v32, %v5209_v62  ;;  %v6633_v51 = vrot.slane %v3559_v34, %v5209_v62  ;;  %v2702_v34 = vpack.i.b16 %v2701_v2, %v2700_v44  ;;  %v2705_v10 = vpack.i.b16 %v6668_v18, %v6656_v17 }
 0x3fa   : > { %v6629_v59 = vrot.slane %v3594_v28, %v5209_v62  ;;  %2876 = vrot.lane.b32.xlu1 %v2861_v41, %s4867_s19  ;;  %v6636_v35 = vrot.slane %v3593_v53, %v5209_v62  ;;  %v3091_v46 = vpop.permute.xlu0 %3090  ;;  %v3766_v41 = vpack.i.b16 %v6649_v26, %v6645_v48  ;;  %v2712_v44 = vshrl.u32 %v6549_v5, 16 }
 0x3fb   : > { %v3093_v33 = vpop.permute.xlu1 %3092  ;;  %v6682_v11 = vcombine.high %v6633_v51, %v7130_v12  ;;  %v2713_v2 = vshrl.u32 %v6555_v63, 16  ;;  %v2854_v63 = vshrl.u32 %v6603_v29, 16 }
 0x3fc   : > { %v3625_v8 = vpack.i.b16 %v6629_v59, %v6626_v16 }
 0x3fe   : > { %2878 = vrot.lane.b32.xlu1 %v2864_v39, %s4868_s24  ;;  %3641 = vrot.lane.b32.xlu0 %v3625_v8, %s4866_s8  ;;  %v3095_v31 = vpop.permute.xlu0 %3094  ;;  %v3778_v8 = vpack.i.b16 %v6664_v6, %v6660_v21 }
 0x3ff   : > { %v3097_v24 = vpop.permute.xlu1 %3096  ;;  %v3110_v32 = vcombine.low %v3087_v4, %v3095_v31  ;;  %v6686_v4 = vcombine.high %v6636_v35, %v7130_v12 }
 0x400   : > { %v3144_v53 = vcombine.low %v3089_v54, %v3097_v24 }
 0x401   : > { %v3117_v54 = vrot.slane %v3110_v32, %v5007_v15  ;;  %v3619_v5 = vpack.i.b16 %v6686_v4, %v6682_v11 }
 0x402   : > { %3784 = vrot.lane.b32.xlu1 %v3766_v41, %s4865_s18  ;;  %2721 = vrot.lane.b32.xlu0 %v2702_v34, %s4850_s6  ;;  %v3099_v28 = vpop.permute.xlu0 %3098  ;;  %v3151_v31 = vrot.slane %v3144_v53, %v5007_v15  ;;  %v2853_v34 = vshrl.u32 %v6599_v25, 16  ;;  %v2714_v53 = vpack.i.b16 %v2713_v2, %v2712_v44  ;;  %v2865_v44 = vshrl.u32 %v6619_v36, 16 }
 0x403   : > { %v3101_v39 = vpop.permute.xlu1 %3100  ;;  %v3118_v14 = vcombine.low %v3091_v46, %v3099_v28  ;;  %v2866_v2 = vshrl.u32 %v6623_v47, 16 }
 0x404   : > { %v3152_v27 = vcombine.low %v3093_v33, %v3101_v39  ;;  %v2855_v29 = vpack.i.b16 %v2854_v63, %v2853_v34 }
 0x405   : > { %v3125_v24 = vrot.slane %v3118_v14, %v5007_v15  ;;  %v3761_v14 = vshrl.u32 %v6591_v55, 16  ;;  %v2867_v34 = vpack.i.b16 %v2866_v2, %v2865_v44  ;;  %v3627_v44 = vshrl.u32 %v6629_v59, 16 }
 0x406   : > { %v3159_v46 = vrot.slane %v3152_v27, %v5007_v15  ;;  %3792 = vrot.lane.b32.xlu1 %v3778_v8, %s4868_s24  ;;  %2723 = vrot.lane.b32.xlu0 %v2705_v10, %s4865_s18  ;;  %v3234_v33 = vpop.permute.xlu0 %3233  ;;  %v3762_v27 = vshrl.u32 %v6594_v22, 16 }
 0x407   : > { %v3236_v41 = vpop.permute.xlu1 %3235  ;;  %v3126_v28 = vcombine.low %v3117_v54, %v3125_v24  ;;  %v3127_v25 = vcombine.high %v3117_v54, %v3125_v24 }
 0x408   : > { %v3160_v32 = vcombine.low %v3151_v31, %v3159_v46  ;;  %v3161_v8 = vcombine.high %v3151_v31, %v3159_v46  ;;  %v3763_v19 = vpack.i.b16 %v3762_v27, %v3761_v14 }
 0x409   : > { %v6703_v39 = vrot.slane %v3126_v28, %v5209_v62  ;;  %v3773_v28 = vshrl.u32 %v6581_v40, 16  ;;  %v3141_v31 = vrot.slane %v3127_v25, %v5209_v62  ;;  %v3615_v40 = vshrl.u32 %v6636_v35, 16 }
 0x40a   : > { %v6706_v10 = vrot.slane %v3160_v32, %v5209_v62  ;;  %3637 = vrot.lane.b32.xlu1 %v3619_v5, %s4865_s18  ;;  %v3238_v45 = vpop.permute.xlu0 %3237  ;;  %2729 = vrot.lane.b32.xlu0 %v2714_v53, %s4867_s19  ;;  %v3175_v24 = vrot.slane %v3161_v8, %v5209_v62  ;;  %v3614_v32 = vshrl.u32 %v6633_v51, 16 }
 0x40b   : > { %v3240_v37 = vpop.permute.xlu1 %3239  ;;  %v3775_v47 = vpack.i.b16 %v3774_v9, %v3773_v28 }
 0x40c   : > { %v3192_v14 = vpack.i.b16 %v3175_v24, %v3141_v31  ;;  %v3182_v8 = vshrl.u32 %v6706_v10, 16  ;;  %v3616_v9 = vpack.i.b16 %v3615_v40, %v3614_v32  ;;  %v3176_v32 = vcombine.high %v6706_v10, %v7130_v12 }
 0x40e   : > { %2872 = vrot.lane.b32.xlu1 %v2855_v29, %s4869_s23  ;;  %v3242_v46 = vpop.permute.xlu0 %3241  ;;  %3782 = vrot.lane.b32.xlu0 %v3763_v19, %s4850_s6  ;;  %v3181_v19 = vshrl.u32 %v6703_v39, 16  ;;  %v3626_v29 = vshrl.u32 %v6626_v16, 16  ;;  %v3188_v54 = vshrl.u32 %v3176_v32, 16 }
 0x40f   : > { %v3244_v36 = vpop.permute.xlu1 %3243  ;;  %v3257_v20 = vcombine.low %v3234_v33, %v3242_v46  ;;  %v3142_v46 = vcombine.high %v6703_v39, %v7130_v12 }
 0x410   : > { %v3291_v5 = vcombine.low %v3236_v41, %v3244_v36  ;;  %v3628_v40 = vpack.i.b16 %v3627_v44, %v3626_v29  ;;  %v2707_v29 = vshrl.u32 %v6668_v18, 16  ;;  %v3768_v18 = vshrl.u32 %v6649_v26, 16 }
 0x411   : > { %v6729_v33 = vrot.slane %v3257_v20, %v5007_v15  ;;  %v6756_v20 = vcombine.high %v6626_v16, %v7130_v12  ;;  %v3187_v44 = vshrl.u32 %v3142_v46, 16 }
 0x412   : > { %2880 = vrot.lane.b32.xlu1 %v2867_v34, %s4862_s12  ;;  %v3246_v63 = vpop.permute.xlu0 %3245  ;;  %3790 = vrot.lane.b32.xlu0 %v3775_v47, %s4867_s19  ;;  %v6732_v41 = vrot.slane %v3291_v5, %v5007_v15  ;;  %v3183_v47 = vpack.i.b16 %v3182_v8, %v3181_v19  ;;  %v6760_v5 = vcombine.high %v6629_v59, %v7130_v12  ;;  %v3194_v19 = vshrl.u32 %v3175_v24, 16 }
 0x413   : > { %v3248_v53 = vpop.permute.xlu1 %3247  ;;  %v3265_v27 = vcombine.low %v3238_v45, %v3246_v63  ;;  %v3186_v59 = vpack.i.b16 %v3176_v32, %v3142_v46 }
 0x414   : > { %v3299_v25 = vcombine.low %v3240_v37, %v3248_v53  ;;  %v3631_v8 = vpack.i.b16 %v6760_v5, %v6756_v20 }
 0x415   : > { %v6735_v2 = vrot.slane %v3265_v27, %v5007_v15 }
 0x416   : > { %v6738_v45 = vrot.slane %v3299_v25, %v5007_v15  ;;  %3208 = vrot.lane.b32.xlu1 %v3192_v14, %s4866_s8  ;;  %v6741_v37 = vpop.permute.xlu0 %3490  ;;  %3635 = vrot.lane.b32.xlu0 %v3616_v9, %s4850_s6  ;;  %v3193_v25 = vshrl.u32 %v3141_v31, 16  ;;  %v2706_v9 = vshrl.u32 %v6656_v17, 16  ;;  %v3767_v17 = vshrl.u32 %v6645_v48, 16 }
 0x417   : > { %v6744_v28 = vpop.permute.xlu1 %2566  ;;  %v3273_v36 = vcombine.low %v6729_v33, %v6735_v2 }
 0x418   : > { %v3307_v34 = vcombine.low %v6732_v41, %v6738_v45 }
 0x419   : > { %v6763_v63 = vrot.slane %v3273_v36, %v5209_v62 }
 0x41a   : > { %v6766_v53 = vrot.slane %v3307_v34, %v5209_v62  ;;  %3202 = vrot.lane.b32.xlu1 %v3183_v47, %s4850_s6  ;;  %v6769_v14 = vpop.permute.xlu0 %3061  ;;  %3643 = vrot.lane.b32.xlu0 %v3628_v40, %s4867_s19  ;;  %v3143_v34 = vcombine.high %v3141_v31, %v7130_v12  ;;  %v3177_v47 = vcombine.high %v3175_v24, %v7130_v12  ;;  %v3780_v31 = vshrl.u32 %v6664_v6, 16 }
 0x41b   : > { %v2561_v27 = vpop.permute.xlu1 %2560  ;;  %v2708_v40 = vpack.i.b16 %v2707_v29, %v2706_v9  ;;  %v3620_v24 = vshrl.u32 %v6682_v11, 16  ;;  %v3632_v11 = vshrl.u32 %v6756_v20, 16 }
 0x41c   : > { %v2576_v16 = vsel %vm401_vm12, %v2538_v43, %v2561_v27  ;;  %v3195_v43 = vpack.i.b16 %v3194_v19, %v3193_v25  ;;  %v3779_v25 = vshrl.u32 %v6660_v21, 16  ;;  %v3189_v19 = vpack.i.b16 %v3188_v54, %v3187_v44 }
 0x41d   : > { %v3199_v9 = vshrl.u32 %v3143_v34, 16  ;;  %v3200_v29 = vshrl.u32 %v3177_v47, 16  ;;  %v3274_v54 = vcombine.high %v6729_v33, %v6735_v2 }
 0x41e   : > { %3204 = vrot.lane.b32.xlu1 %v3186_v59, %s4865_s18  ;;  %v3056_v36 = vpop.permute.xlu0 %3055  ;;  %3645 = vrot.lane.b32.xlu0 %v3631_v8, %s4868_s24  ;;  %v3198_v8 = vpack.i.b16 %v3177_v47, %v3143_v34  ;;  %v3781_v46 = vpack.i.b16 %v3780_v31, %v3779_v25  ;;  %v3633_v34 = vshrl.u32 %v6760_v5, 16  ;;  %v7160_v5 = vpack.i.b16 %v6388_v1, %v6384_v56  ;;  %v6840_v25 = vpop.f32.mrf.mxu0 }
 0x41f   : > { %v2563_v50 = vpop.permute.xlu1 %2562  ;;  %v7161_v1 = vpack.i.b16 %v6361_v58, %v6367_v7 }
 0x420   : > { %v2579_v49 = vsel %vm2577_vm4, %v2576_v16, %v2563_v50  ;;  %v3769_v16 = vpack.i.b16 %v3768_v18, %v3767_v17  ;;  %v3621_v50 = vshrl.u32 %v6686_v4, 16  ;;  %v3308_v4 = vcombine.high %v6732_v41, %v6738_v45 }
 0x422   : > { %3210 = vrot.lane.b32.xlu1 %v3195_v43, %s4867_s19  ;;  %2725 = vrot.lane.b32.xlu0 %v2708_v40, %s4869_s23  ;;  %v3058_v27 = vpop.permute.xlu0 %3057  ;;  %v3201_v43 = vpack.i.b16 %v3200_v29, %v3199_v9  ;;  %v3622_v40 = vpack.i.b16 %v3621_v50, %v3620_v24  ;;  %v3322_v30 = vrot.slane %v3308_v4, %v5209_v62  ;;  %v2156_v4 = vpop.f32.mrf.mxu0 }
 0x423   : > { %v2569_v59 = vpop.permute.xlu1 %2568  ;;  %v3323_v24 = vcombine.high %v6766_v53, %v7130_v12 }
 0x424   : > { %v3341_v50 = vshrl.u32 %v3322_v30, 16 }
 0x426   : > { %3212 = vrot.lane.b32.xlu1 %v3198_v8, %s4868_s24  ;;  %3786 = vrot.lane.b32.xlu0 %v3769_v16, %s4869_s23  ;;  %v3064_v48 = vpop.permute.xlu0 %3063  ;;  %v3329_v8 = vshrl.u32 %v6766_v53, 16 }
 0x427   : > { %v3495_v26 = vpop.permute.xlu1 %3494 }
 0x42a   : > { %3206 = vrot.lane.b32.xlu1 %v3189_v19, %s4869_s23  ;;  %3794 = vrot.lane.b32.xlu0 %v3781_v46, %s4862_s12  ;;  %v3066_v21 = vpop.permute.xlu0 %3065 }
 0x42b   : > { %v2565_v6 = vpop.permute.xlu1 %2564 }
 0x42c   : > { %v2582_v32 = vsel %vm2580_vm6, %v2579_v49, %v2565_v6  ;;  %v3071_v49 = vsel %vm401_vm12, %v3033_v3, %v3056_v36  ;;  %v3634_v3 = vpack.i.b16 %v3633_v34, %v3632_v11 }
 0x42d   : > { %v2585_v44 = vsel %vm2583_vm7, %v2582_v32, %v6744_v28  ;;  %v3073_v33 = vsel %vm2577_vm4, %v3071_v49, %v3058_v27  ;;  %v3288_v28 = vrot.slane %v3274_v54, %v5209_v62  ;;  %v3335_v54 = vshrl.u32 %v3323_v24, 16 }
 0x42e   : > { %3214 = vrot.lane.b32.xlu1 %v3201_v43, %s4862_s12  ;;  %v6814_v20 = vsel %vm2586_vm8, %v2585_v44, %v2569_v59  ;;  %3639 = vrot.lane.b32.xlu0 %v3622_v40, %s4869_s23  ;;  %v3060_v41 = vpop.permute.xlu0 %3059 }
 0x42f   : > { %v3489_v2 = vpop.permute.xlu1 %3488  ;;  %v3075_v45 = vsel %vm2580_vm6, %v3073_v33, %v3060_v41  ;;  %v3339_v59 = vpack.i.b16 %v3322_v30, %v3288_v28  ;;  %v3340_v29 = vshrl.u32 %v3288_v28, 16  ;;  %v3290_v43 = vcombine.high %v3288_v28, %v7130_v12 }
 0x430   : > { %v3077_v60 = vsel %vm2583_vm7, %v3075_v45, %v6769_v14  ;;  %v3328_v14 = vshrl.u32 %v6763_v63, 16  ;;  %v3504_v16 = vsel %vm401_vm12, %v7161_v1, %v3489_v2  ;;  %v7162_v33 = vpack.i.b16 %v6566_v0, %v6561_v61 }
 0x431   : > { %v3079_v36 = vsel %vm2586_vm8, %v3077_v60, %v3064_v48  ;;  %v3289_v48 = vcombine.high %v6763_v63, %v7130_v12  ;;  %v3342_v32 = vpack.i.b16 %v3341_v50, %v3340_v29  ;;  %v3346_v34 = vshrl.u32 %v3290_v43, 16 }
 0x432   : > { %2570 = vrot.lane.b32.xlu1 %v7160_v5, %s4868_s24  ;;  %3647 = vrot.lane.b32.xlu0 %v3634_v3, %s4862_s12  ;;  %v3081_v47 = vsel %vm2589_vm10, %v3079_v36, %v3066_v21  ;;  %v3068_v17 = vpop.permute.xlu0 %3067  ;;  %v3330_v31 = vpack.i.b16 %v3329_v8, %v3328_v14  ;;  %v7164_v5 = vpack.i.b16 %v6552_v23, %v6546_v52 }
 0x433   : > { %v3497_v18 = vpop.permute.xlu1 %3496  ;;  %v3083_v27 = vsel %vm2592_vm11, %v3081_v47, %v3068_v17  ;;  %v3333_v9 = vpack.i.b16 %v3323_v24, %v3289_v48  ;;  %v3334_v11 = vshrl.u32 %v3289_v48, 16  ;;  %v7165_v47 = vmov 0.0  }
 0x434   : > { %3085 = vst [vmem:[#allocation3 + $0xc] sm:$0xf] %v3083_v27  ;;  %4616 = vmatprep.mubr.msk.bf16.mxu1 %vm4870_vm13, %v7165_v47  ;;  %v7166_v8 = vpack.i.b16 %v6527_v57, %v6524_v38 }
 0x435   : > { %v3336_v44 = vpack.i.b16 %v3335_v54, %v3334_v11 }
 0x436   : > { %2572 = vrot.lane.b32.xlu1 %v6398_v13, %s4862_s12  ;;  %3355 = vrot.lane.b32.xlu0 %v3339_v59, %s4866_s8  ;;  %v3506_v13 = vsel %vm2577_vm4, %v3504_v16, %v6741_v37 }
 0x437   : > { %v3499_v56 = vpop.permute.xlu1 %3498 }
 0x43a   : > { %3843 = vrot.lane.b32.xlu1 %v6840_v25, %s4857_s30  ;;  %3349 = vrot.lane.b32.xlu0 %v3330_v31, %s4850_s6 }
 0x43b   : > { %v3493_v58 = vpop.permute.xlu1 %3492 }
 0x43c   : > { %v3508_v7 = vsel %vm2580_vm6, %v3506_v13, %v3493_v58 }
 0x43d   : > { %v3510_v19 = vsel %vm2583_vm7, %v3508_v7, %v3495_v26  ;;  %v3324_v26 = vcombine.high %v3322_v30, %v7130_v12 }
 0x43e   : > { %3824 = vrot.lane.b32.xlu1 %v6840_v25, %s4856_s27  ;;  %v3512_v46 = vsel %vm2586_vm8, %v3510_v19, %v3497_v18  ;;  %3351 = vrot.lane.b32.xlu0 %v3333_v9, %s4865_s18  ;;  %s7163_s27 = smov 92  }
 0x43f   : > { %v3514_v21 = vsel %vm2589_vm10, %v3512_v46, %v3499_v56  ;;  %v3501_v6 = vpop.permute.xlu1 %3500  ;;  %v3345_v40 = vpack.i.b16 %v3324_v26, %v3290_v43  ;;  %v3347_v49 = vshrl.u32 %v3324_v26, 16 }
 0x440   : > { %v3516_v37 = vsel %vm2592_vm11, %v3514_v21, %v3501_v6  ;;  %v7167_v6 = vpack.i.b16 %v6594_v22, %v6591_v55 }
 0x441   : > { %3518 = vst [vmem:[#allocation3 + $0x18] sm:$0xf] %v3516_v37  ;;  %v3348_v12 = vpack.i.b16 %v3347_v49, %v3346_v34 }
 0x442   : > { %3830 = vrot.lane.b32.xlu1 %v6840_v25, %s4858_s5  ;;  %3357 = vrot.lane.b32.xlu0 %v3342_v32, %s4867_s19  ;;  %s4873_s5 = smov [#allocation4]  }
 0x443   : > { %v2875_v41 = vpop.permute.xlu1 %2874 }
 0x446   : > { %3836 = vrot.lane.b32.xlu1 %v6840_v25, %s4860_s10  ;;  %3359 = vrot.lane.b32.xlu0 %v3345_v40, %s4868_s24  ;;  %s7171_s10 = smov 127  }
 0x44a   : > { %3849 = vrot.lane.b32.xlu1 %v2156_v4, %s4862_s12  ;;  %3353 = vrot.lane.b32.xlu0 %v3336_v44, %s4869_s23  ;;  %v7168_v44 = vpack.i.b16 %v6706_v10, %v6703_v39 }
 0x44e   : > { %3361 = vrot.lane.b32.xlu0 %v3348_v12, %s4862_s12 }
 0x450   : > { %v2728_v61 = vpop.permute.xlu0 %2727 }
 0x452   : > { %2731 = vrot.lane.b32.xlu0 %v7162_v33, %s4868_s24 }
 0x456   : > { %2733 = vrot.lane.b32.xlu0 %v6574_v42, %s4862_s12 }
 0x45a   : > { %3845 = vrot.lane.b32.xlu0 %v2156_v4, %s4857_s30 }
 0x45e   : > { %3827 = vrot.lane.b32.xlu0 %v6840_v25, %s7163_s27 }
 0x460   : > { %v3789_v2 = vpop.permute.xlu1 %3788 }
 0x462   : > { %3833 = vrot.lane.b32.xlu0 %v6840_v25, %s4861_s11 }
 0x464   : > { %v2869_v45 = vpop.permute.xlu1 %2868 }
 0x465   : > { %v2884_v56 = vsel %vm401_vm12, %v7166_v8, %v2869_v45 }
 0x466   : > { %3839 = vrot.lane.b32.xlu0 %v6840_v25, %s4863_s13 }
 0x468   : > { %v2871_v28 = vpop.permute.xlu1 %2870 }
 0x469   : > { %v2886_v1 = vsel %vm2577_vm4, %v2884_v56, %v2871_v28  ;;  %v7169_v28 = vpack.i.b16 %v6636_v35, %v6633_v51 }
 0x46a   : > { %3852 = vrot.lane.b32.xlu0 %v2156_v4, %s4864_s14 }
 0x46c   : > { %v2877_v0 = vpop.permute.xlu1 %2876 }
 0x470   : > { %v2879_v42 = vpop.permute.xlu1 %2878  ;;  %v3642_v30 = vpop.permute.xlu0 %3641 }
 0x474   : > { %v3785_v60 = vpop.permute.xlu1 %3784  ;;  %v2722_v3 = vpop.permute.xlu0 %2721 }
 0x475   : > { %v2737_v36 = vsel %vm401_vm12, %v7164_v5, %v2722_v3 }
 0x478   : > { %v3793_v17 = vpop.permute.xlu1 %3792  ;;  %v2724_v18 = vpop.permute.xlu0 %2723 }
 0x479   : > { %v2739_v27 = vsel %vm2577_vm4, %v2737_v36, %v2724_v18 }
 0x47c   : > { %v3638_v59 = vpop.permute.xlu1 %3637  ;;  %v2730_v14 = vpop.permute.xlu0 %2729 }
 0x480   : > { %v2873_v16 = vpop.permute.xlu1 %2872  ;;  %v3783_v23 = vpop.permute.xlu0 %3782 }
 0x481   : > { %v2888_v52 = vsel %vm2580_vm6, %v2886_v1, %v2873_v16  ;;  %v3798_v37 = vsel %vm401_vm12, %v7167_v6, %v3783_v23 }
 0x482   : > { %v2890_v31 = vsel %vm2583_vm7, %v2888_v52, %v2875_v41  ;;  %v3800_v11 = vsel %vm2577_vm4, %v3798_v37, %v3785_v60 }
 0x483   : > { %v2892_v48 = vsel %vm2586_vm8, %v2890_v31, %v2877_v0 }
 0x484   : > { %v2894_v24 = vsel %vm2589_vm10, %v2892_v48, %v2879_v42  ;;  %v2881_v13 = vpop.permute.xlu1 %2880  ;;  %v3791_v7 = vpop.permute.xlu0 %3790 }
 0x485   : > { %v2896_v58 = vsel %vm2592_vm11, %v2894_v24, %v2881_v13 }
 0x486   : > { %2898 = vst [vmem:[#allocation3 + $0x8] sm:$0xf] %v2896_v58 }
 0x488   : > { %v3209_v38 = vpop.permute.xlu1 %3208  ;;  %v3636_v57 = vpop.permute.xlu0 %3635 }
 0x48c   : > { %v3203_v19 = vpop.permute.xlu1 %3202  ;;  %v3644_v9 = vpop.permute.xlu0 %3643 }
 0x48d   : > { %v3218_v34 = vsel %vm401_vm12, %v7168_v44, %v3203_v19 }
 0x490   : > { %v3205_v29 = vpop.permute.xlu1 %3204  ;;  %v3646_v50 = vpop.permute.xlu0 %3645 }
 0x491   : > { %v3220_v22 = vsel %vm2577_vm4, %v3218_v34, %v3205_v29 }
 0x494   : > { %v3211_v46 = vpop.permute.xlu1 %3210  ;;  %v2726_v21 = vpop.permute.xlu0 %2725 }
 0x495   : > { %v2741_v32 = vsel %vm2580_vm6, %v2739_v27, %v2726_v21 }
 0x496   : > { %v2743_v43 = vsel %vm2583_vm7, %v2741_v32, %v2728_v61  ;;  %v3651_v61 = vsel %vm401_vm12, %v7169_v28, %v3636_v57 }
 0x497   : > { %v2745_v40 = vsel %vm2586_vm8, %v2743_v43, %v2730_v14  ;;  %v3653_v3 = vsel %vm2577_vm4, %v3651_v61, %v3638_v59 }
 0x498   : > { %v3213_v26 = vpop.permute.xlu1 %3212  ;;  %v3787_v54 = vpop.permute.xlu0 %3786 }
 0x499   : > { %v3802_v4 = vsel %vm2580_vm6, %v3800_v11, %v3787_v54  ;;  %v4741_v11 = vld [vmem:[#allocation3 + $0x8] sm:$0xff]  }
 0x49a   : > { %v3804_v55 = vsel %vm2583_vm7, %v3802_v4, %v3789_v2 }
 0x49b   : > { %v3806_v12 = vsel %vm2586_vm8, %v3804_v55, %v3791_v7 }
 0x49c   : > { %v3207_v49 = vpop.permute.xlu1 %3206  ;;  %v3808_v41 = vsel %vm2589_vm10, %v3806_v12, %v3793_v17  ;;  %v3795_v45 = vpop.permute.xlu0 %3794 }
 0x49d   : > { %v3222_v33 = vsel %vm2580_vm6, %v3220_v22, %v3207_v49  ;;  %v3810_v10 = vsel %vm2592_vm11, %v3808_v41, %v3795_v45 }
 0x49e   : > { %v3224_v39 = vsel %vm2583_vm7, %v3222_v33, %v3209_v38  ;;  %3812 = vst [vmem:[#allocation3 + $0x20] sm:$0xf] %v3810_v10 }
 0x49f   : > { %v3226_v2 = vsel %vm2586_vm8, %v3224_v39, %v3211_v46 }
 0x4a0   : > { %v3228_v0 = vsel %vm2589_vm10, %v3226_v2, %v3213_v26  ;;  %v3215_v42 = vpop.permute.xlu1 %3214  ;;  %v3640_v5 = vpop.permute.xlu0 %3639 }
 0x4a1   : > { %v3230_v60 = vsel %vm2592_vm11, %v3228_v0, %v3215_v42  ;;  %v3655_v51 = vsel %vm2580_vm6, %v3653_v3, %v3640_v5 }
 0x4a2   : > { %3232 = vst [vmem:[#allocation3 + $0x10] sm:$0xf] %v3230_v60  ;;  %v3657_v35 = vsel %vm2583_vm7, %v3655_v51, %v3642_v30 }
 0x4a3   : > { %v3659_v17 = vsel %vm2586_vm8, %v3657_v35, %v3644_v9 }
 0x4a4   : > { %v2571_v36 = vpop.permute.xlu1 %2570  ;;  %v3661_v18 = vsel %vm2589_vm10, %v3659_v17, %v3646_v50  ;;  %v3648_v27 = vpop.permute.xlu0 %3647 }
 0x4a5   : > { %v3663_v14 = vsel %vm2592_vm11, %v3661_v18, %v3648_v27  ;;  %v4738_v8 = vld [vmem:[#allocation3 + $0x20] ss:$0 sps:$4 sm:$0xff]   ;;  %v2591_v59 = vsel %vm2589_vm10, %v6814_v20, %v2571_v36  ;;  %v7170_v20 = vpack.i.b16 %v6766_v53, %v6763_v63 }
 0x4a6   : > { %3665 = vst [vmem:[#allocation3 + $0x1c] sm:$0xf] %v3663_v14  ;;  %v4332_v1 = vsel %vm4330_vm14, %v4738_v8, 0 }
 0x4a7   : > { %4607 = vmatpush3.bf16.msra.mxu1 %v4332_v1 }
 0x4a8   : > { %v2573_v56 = vpop.permute.xlu1 %2572  ;;  %v3356_v52 = vpop.permute.xlu0 %3355  ;;  %4608 = vmatprep.subr.bf16.mxu1 %v7165_v47 }
 0x4a9   : > { %v2594_v16 = vsel %vm2592_vm11, %v2591_v59, %v2573_v56 }
 0x4aa   : > { %2596 = vst [vmem:[#allocation3] sm:$0xf] %v2594_v16 }
 0x4ac   : > { %v3350_v30 = vpop.permute.xlu0 %3349  ;;  %v3844_v50 = vpop.permute.xlu1 %3843 }
 0x4ad   : > { %v4739_v23 = vld [vmem:[#allocation3 + $0x18] sm:$0xff]   ;;  %v3365_v13 = vsel %vm401_vm12, %v7170_v20, %v3350_v30 }
 0x4ae   : > { %4609 = vmatpush3.bf16.msra.mxu1 %v4739_v23 }
 0x4af   : > { %4610 = vmatprep.subr.bf16.mxu1 %v7165_v47 }
 0x4b0   : > { %v3352_v31 = vpop.permute.xlu0 %3351  ;;  %v3825_v63 = vpop.permute.xlu1 %3824 }
 0x4b1   : > { %v3367_v58 = vsel %vm2577_vm4, %v3365_v13, %v3352_v31 }
 0x4b4   : > { %v3358_v48 = vpop.permute.xlu0 %3357  ;;  %v3831_v26 = vpop.permute.xlu1 %3830 }
 0x4b5   : > { %v3871_v49 = vcombine.low %v3825_v63, %v3831_v26  ;;  %v3872_v3 = vcombine.high %v3825_v63, %v3831_v26 }
 0x4b7   : > { %v3879_v45 = vrot.slane %v3871_v49, %v5007_v15 }
 0x4b8   : > { %v3360_v24 = vpop.permute.xlu0 %3359  ;;  %v3837_v44 = vpop.permute.xlu1 %3836 }
 0x4bc   : > { %v3354_v7 = vpop.permute.xlu0 %3353  ;;  %v3850_v28 = vpop.permute.xlu1 %3849 }
 0x4bd   : > { %v3369_v38 = vsel %vm2580_vm6, %v3367_v58, %v3354_v7  ;;  %v3991_v5 = vcombine.high %v3850_v28, %v7165_v47  ;;  %v3998_v27 = vrot.slane %v3850_v28, %v5007_v15 }
 0x4be   : > { %v3371_v57 = vsel %vm2583_vm7, %v3369_v38, %v3356_v52 }
 0x4bf   : > { %v3373_v19 = vsel %vm2586_vm8, %v3371_v57, %v3358_v48  ;;  %v4005_v52 = vrot.slane %v3991_v5, %v5007_v15  ;;  %v3886_v48 = vrot.slane %v3872_v3, %v5007_v15 }
 0x4c0   : > { %v3375_v9 = vsel %vm2589_vm10, %v3373_v19, %v3360_v24  ;;  %v3362_v29 = vpop.permute.xlu0 %3361 }
 0x4c1   : > { %v3377_v46 = vsel %vm2592_vm11, %v3375_v9, %v3362_v29 }
 0x4c2   : > { %3379 = vst [vmem:[#allocation3 + $0x14] sm:$0xf] %v3377_v46 }
 0x4c4   : > { %v2732_v21 = vpop.permute.xlu0 %2731 }
 0x4c5   : > { %v2747_v53 = vsel %vm2589_vm10, %v2745_v40, %v2732_v21  ;;  %v3813_v40 = vld [vmem:[%s7085_s2] sm:$0xf] }
 0x4c8   : > { %v2734_v6 = vpop.permute.xlu0 %2733 }
 0x4c9   : > { %v2749_v37 = vsel %vm2592_vm11, %v2747_v53, %v2734_v6  ;;  %v4740_v32 = vld [vmem:[#allocation3 + $0x10] sm:$0xff]  }
 0x4ca   : > { %2751 = vst [vmem:[#allocation3 + $0x4] sm:$0xf] %v2749_v37  ;;  %4611 = vmatpush3.bf16.msra.mxu1 %v4740_v32 }
 0x4cb   : > { %4612 = vmatprep.subr.bf16.mxu1 %v7165_v47 }
 0x4cc   : > { %v3846_v43 = vpop.permute.xlu0 %3845 }
 0x4cd   : > { %v3847_v55 = vsel %vm2199_vm5, %v3844_v50, %v3846_v43 }
 0x4ce   : > { %4613 = vmatpush3.bf16.msra.mxu1 %v4741_v11  ;;  %v3903_v12 = vcombine.low %v3837_v44, %v3847_v55  ;;  %v3904_v10 = vcombine.high %v3837_v44, %v3847_v55 }
 0x4cf   : > { %4614 = vmatprep.subr.bf16.mxu1 %v7165_v47 }
 0x4d0   : > { %v3828_v54 = vpop.permute.xlu0 %3827  ;;  %v3911_v2 = vrot.slane %v3903_v12, %v5007_v15  ;;  %v3918_v14 = vrot.slane %v3904_v10, %v5007_v15 }
 0x4d1   : > { %v4742_v4 = vld [vmem:[#allocation3] sm:$0xff]   ;;  %v3855_v34 = vcombine.low %v6840_v25, %v3828_v54  ;;  %v3856_v0 = vcombine.high %v6840_v25, %v3828_v54 }
 0x4d2   : > { %4615 = vmatpush3.bf16.msra.mxu1 %v4742_v4 }
 0x4d3   : > { %v3863_v33 = vrot.slane %v3855_v34, %v5007_v15  ;;  %v3870_v59 = vrot.slane %v3856_v0, %v5007_v15 }
 0x4d4   : > { %v3834_v22 = vpop.permute.xlu0 %3833 }
 0x4d5   : > { %4617 = vmatmul.mubr.msk.bf16.vlgmr.msra.gmra.mxu1 %vm389_vm9, %v3813_v40  ;;  %v3919_v42 = vcombine.low %v3863_v33, %v3879_v45  ;;  %v3920_v35 = vcombine.high %v3863_v33, %v3879_v45  ;;  %v3935_v19 = vcombine.low %v3870_v59, %v3886_v48  ;;  %vm4073_vm9 = vcmask 1046528  }
 0x4d6   : > { %v3936_v32 = vcombine.high %v3870_v59, %v3886_v48 }
 0x4d7   : > { %v3927_v56 = vrot.slane %v3919_v42, %v5209_v62  ;;  %v3934_v24 = vrot.slane %v3920_v35, %v5209_v62  ;;  %v3943_v54 = vrot.slane %v3935_v19, %v5209_v62 }
 0x4d8   : > { %v3840_v41 = vpop.permute.xlu0 %3839  ;;  %v3950_v28 = vrot.slane %v3936_v32, %v5209_v62 }
 0x4d9   : > { %v3887_v61 = vcombine.low %v3834_v22, %v3840_v41  ;;  %v3888_v39 = vcombine.high %v3834_v22, %v3840_v41 }
 0x4db   : > { %v3895_v60 = vrot.slane %v3887_v61, %v5007_v15  ;;  %v3902_v36 = vrot.slane %v3888_v39, %v5007_v15 }
 0x4dc   : > { %v3853_v51 = vpop.permute.xlu0 %3852 }
 0x4dd   : > { %v3951_v17 = vcombine.low %v3895_v60, %v3911_v2  ;;  %v3952_v18 = vcombine.high %v3895_v60, %v3911_v2  ;;  %v4006_v8 = vcombine.high %v3853_v51, %v7165_v47  ;;  %v4013_v25 = vrot.slane %v3853_v51, %v5007_v15 }
 0x4de   : > { %v3967_v20 = vcombine.low %v3902_v36, %v3918_v14  ;;  %v3968_v53 = vcombine.high %v3902_v36, %v3918_v14  ;;  %v4871_v14 = vmov 2  }
 0x4df   : > { %v3959_v1 = vrot.slane %v3951_v17, %v5209_v62  ;;  %v3966_v16 = vrot.slane %v3952_v18, %v5209_v62  ;;  %v4020_v30 = vrot.slane %v4006_v8, %v5007_v15  ;;  %v4021_v23 = vcombine.low %v3998_v27, %v4013_v25  ;;  %4725 = vset.pattern.permute.xlu0 %v4871_v14 }
 0x4e0   : > { %v4022_v31 = vcombine.high %v3998_v27, %v4013_v25  ;;  %v3975_v6 = vrot.slane %v3967_v20, %v5209_v62  ;;  %v3982_v12 = vrot.slane %v3968_v53, %v5209_v62 }
 0x4e1   : > { %v3983_v13 = vcombine.low %v3927_v56, %v3959_v1  ;;  %v4029_v58 = vrot.slane %v4021_v23, %v5209_v62  ;;  %v4037_v38 = vcombine.low %v4005_v52, %v4020_v30  ;;  %v3984_v57 = vcombine.high %v3927_v56, %v3959_v1 }
 0x4e2   : > { %v4036_v7 = vrot.slane %v4022_v31, %v5209_v62  ;;  %v3985_v29 = vcombine.low %v3934_v24, %v3966_v16  ;;  %v4038_v50 = vcombine.high %v4005_v52, %v4020_v30  ;;  %v3986_v11 = vcombine.high %v3934_v24, %v3966_v16 }
 0x4e3   : > { %v4074_v9 = vrot.slane %v3983_v13, 1  ;;  %v4045_v46 = vrot.slane %v4037_v38, %v5209_v62  ;;  %v4053_v21 = vcombine.high %v4029_v58, %v7165_v47  ;;  %v4075_v37 = vrot.slane %v4029_v58, 1 }
 0x4e4   : > { %v4054_v63 = vcombine.high %v4036_v7, %v7165_v47  ;;  %v4077_v43 = vrot.slane %v3984_v57, 1  ;;  %v4081_v4 = vrot.slane %v4036_v7, 1  ;;  %v4080_v34 = vrot.slane %v3985_v29, 1 }
 0x4e5   : > { %v4078_v26 = vrot.slane %v4053_v21, 1  ;;  %v4076_v44 = vsel %vm4073_vm9, %v4074_v9, %v4075_v37  ;;  %v4052_v40 = vrot.slane %v4038_v50, %v5209_v62  ;;  %v4055_v49 = vcombine.high %v4045_v46, %v7165_v47 }
 0x4e6   : > { %4098 = vrot.lane.b32.xlu1 %v4076_v44, %s7171_s10  ;;  %v4084_v22 = vrot.slane %v4054_v63, 1  ;;  %v3987_v33 = vcombine.low %v3943_v54, %v3975_v6  ;;  %v4083_v41 = vrot.slane %v3986_v11, 1  ;;  %v3988_v45 = vcombine.high %v3943_v54, %v3975_v6 }
 0x4e7   : > { %v4079_v55 = vsel %vm4073_vm9, %v4077_v43, %v4078_v26  ;;  %v4082_v61 = vsel %vm4073_vm9, %v4080_v34, %v4081_v4  ;;  %v4087_v39 = vrot.slane %v4045_v46, 1  ;;  %v4090_v2 = vrot.slane %v4055_v49, 1 }
 0x4e8   : > { %4100 = vrot.lane.b32.xlu0 %v4079_v55, %s7171_s10  ;;  %v4085_v10 = vsel %vm4073_vm9, %v4083_v41, %v4084_v22  ;;  %v4056_v0 = vcombine.high %v4052_v40, %v7165_v47  ;;  %v4086_v42 = vrot.slane %v3987_v33, 1  ;;  %v3989_v60 = vcombine.low %v3950_v28, %v3982_v12 }
 0x4e9   : > { %v4089_v3 = vrot.slane %v3988_v45, 1  ;;  %v3990_v5 = vcombine.high %v3950_v28, %v3982_v12  ;;  %v4093_v35 = vrot.slane %v4052_v40, 1  ;;  %v4293_v12 = vld [vmem:[%s7086_s3] sm:$0xff] }
 0x4ea   : > { %4102 = vrot.lane.b32.xlu1 %v4082_v61, %s7171_s10  ;;  %v4088_v51 = vsel %vm4073_vm9, %v4086_v42, %v4087_v39  ;;  %v4096_v17 = vrot.slane %v4056_v0, 1  ;;  %v4092_v18 = vrot.slane %v3989_v60, 1 }
 0x4eb   : > { %v4091_v36 = vsel %vm4073_vm9, %v4089_v3, %v4090_v2  ;;  %v4095_v27 = vrot.slane %v3990_v5, 1 }
 0x4ec   : > { %4104 = vrot.lane.b32.xlu0 %v4085_v10, %s7171_s10  ;;  %v4094_v47 = vsel %vm4073_vm9, %v4092_v18, %v4093_v35  ;;  %v4872_v10 = vmov 3  }
 0x4ed   : > { %v4097_v8 = vsel %vm4073_vm9, %v4095_v27, %v4096_v17 }
 0x4ee   : > { %4106 = vrot.lane.b32.xlu1 %v4088_v51, %s7171_s10 }
 0x4f0   : > { %4108 = vrot.lane.b32.xlu0 %v4091_v36, %s7171_s10 }
 0x4f2   : > { %4110 = vrot.lane.b32.xlu1 %v4094_v47, %s7171_s10 }
 0x4f4   : > { %4112 = vrot.lane.b32.xlu0 %v4097_v8, %s7171_s10  ;;  %s4751_s10 = sshll.u32 %s4873_s5, 4  ;;  %s4752_s10 = int_to_ptr.vmem [resolvable:$false] %s4751_s10 }
 0x558   : > { %v4099_v25 = vpop.permute.xlu1 %4098 }
 0x55a   : > { %v4101_v59 = vpop.permute.xlu0 %4100 }
 0x55c   : > { %v4103_v56 = vpop.permute.xlu1 %4102 }
 0x55d   : > { %v4122_v30 = vcombine.low %v4099_v25, %v4103_v56  ;;  %v4123_v46 = vcombine.high %v4099_v25, %v4103_v56 }
 0x55e   : > { %v4105_v1 = vpop.permute.xlu0 %4104 }
 0x55f   : > { %v4138_v16 = vcombine.low %v4101_v59, %v4105_v1  ;;  %v4130_v24 = vrot.slane %v4122_v30, %v5007_v15  ;;  %v4139_v38 = vcombine.high %v4101_v59, %v4105_v1  ;;  %v4137_v54 = vrot.slane %v4123_v46, %v5007_v15 }
 0x560   : > { %v4107_v52 = vpop.permute.xlu1 %4106 }
 0x561   : > { %v4146_v31 = vrot.slane %v4138_v16, %v5007_v15  ;;  %v4153_v6 = vrot.slane %v4139_v38, %v5007_v15 }
 0x562   : > { %v4109_v23 = vpop.permute.xlu0 %4108 }
 0x563   : > { %v4186_v57 = vcombine.low %v4130_v24, %v4146_v31  ;;  %v4187_v19 = vcombine.high %v4130_v24, %v4146_v31  ;;  %v4202_v22 = vcombine.low %v4137_v54, %v4153_v6  ;;  %v4203_v49 = vcombine.high %v4137_v54, %v4153_v6 }
 0x564   : > { %v4111_v48 = vpop.permute.xlu1 %4110 }
 0x565   : > { %v4154_v20 = vcombine.low %v4107_v52, %v4111_v48  ;;  %v4155_v9 = vcombine.high %v4107_v52, %v4111_v48  ;;  %v4194_v37 = vrot.slane %v4186_v57, %v5209_v62  ;;  %v4201_v32 = vrot.slane %v4187_v19, %v5209_v62 }
 0x566   : > { %v4113_v13 = vpop.permute.xlu0 %4112  ;;  %v4210_v45 = vrot.slane %v4202_v22, %v5209_v62  ;;  %v4217_v28 = vrot.slane %v4203_v49, %v5209_v62 }
 0x567   : > { %v4170_v58 = vcombine.low %v4109_v23, %v4113_v13  ;;  %v4171_v7 = vcombine.high %v4109_v23, %v4113_v13  ;;  %v4162_v29 = vrot.slane %v4154_v20, %v5007_v15  ;;  %v4169_v43 = vrot.slane %v4155_v9, %v5007_v15 }
 0x569   : > { %v4178_v50 = vrot.slane %v4170_v58, %v5007_v15  ;;  %v4185_v21 = vrot.slane %v4171_v7, %v5007_v15 }
 0x56b   : > { %v4218_v63 = vcombine.low %v4162_v29, %v4178_v50  ;;  %v4219_v53 = vcombine.high %v4162_v29, %v4178_v50  ;;  %v4234_v4 = vcombine.low %v4169_v43, %v4185_v21  ;;  %v4235_v44 = vcombine.high %v4169_v43, %v4185_v21 }
 0x56d   : > { %v4226_v26 = vrot.slane %v4218_v63, %v5209_v62  ;;  %v4233_v11 = vrot.slane %v4219_v53, %v5209_v62  ;;  %v4242_v33 = vrot.slane %v4234_v4, %v5209_v62  ;;  %v4249_v41 = vrot.slane %v4235_v44, %v5209_v62 }
 0x56f   : > { %v4252_v34 = vcombine.low %v4201_v32, %v4233_v11  ;;  %v4251_v40 = vcombine.high %v4194_v37, %v4226_v26  ;;  %v4250_v55 = vcombine.low %v4194_v37, %v4226_v26  ;;  %v4253_v15 = vcombine.high %v4201_v32, %v4233_v11 }
 0x570   : > { %v4256_v61 = vcombine.low %v4217_v28, %v4249_v41  ;;  %v4254_v39 = vcombine.low %v4210_v45, %v4242_v33  ;;  %v4255_v2 = vcombine.high %v4210_v45, %v4242_v33  ;;  %v4257_v0 = vcombine.high %v4217_v28, %v4249_v41 }
 0x571   : > { %4263 = vrot.lane.b32.xlu0 %v4252_v34, %s4865_s18  ;;  %4259 = vrot.lane.b32.xlu1 %v4251_v40, %s4850_s6 }
 0x575   : > { %4296 = vperm.xlu0 %4725, %v4293_v12   ;;  %4267 = vrot.lane.b32.xlu1 %v4253_v15, %s4869_s23  ;;  %s212_s23 = sand.u32 1, %s4815_s16  }
 0x576   : > { %s4475_s6 = sshll.u32 %s212_s23, 3  ;;  %s4381_s27 = scalar_lea.sflag [#allocation5], %s212_s23 }
 0x577   : > { %s214_s14 = scalar_lea.vmem [#allocation4], %s4475_s6 }
 0x578   : > { %s4396_s18 = sshll.u32 %s214_s14, 4  ;;  %s4397_s18 = int_to_ptr.vmem [resolvable:$true] %s4396_s18 }
 0x579   : > { %4279 = vrot.lane.b32.xlu0 %v4256_v61, %s4868_s24  ;;  %4271 = vrot.lane.b32.xlu1 %v4254_v39, %s4866_s8  ;;  %s4747_s30 = scalar_lea.vmem %s4397_s18, 128  ;;  %p4754_p2 = scmp.lt.s32.totalorder %s4397_s18, %s4752_s10 }
 0x57a   : > { %4726 = vset.pattern.permute.xlu0 %v4872_v10  ;;  %p4748_p13 = scmp.ne.s32.totalorder %s4397_s18, %s4747_s30 }
 0x57c   : > { %p4749_p0 = pnand %p4748_p13, %p4950_p3 }
 0x57d   : > { %4275 = vrot.lane.b32.xlu1 %v4255_v2, %s4867_s19  ;;  %4375 = vperm.xlu0 %4726, %v4293_v12  }
 0x57e   : > { %p4750_p1 = pneg %p4749_p0 }
 0x581   : > { %4283 = vrot.lane.b32.xlu1 %v4257_v0, %s4862_s12  ;;  %s4596_s12 = sshll.u32 %s4972_s9, 7  ;;  %s4753_s9 = scalar_lea.vmem %s4752_s10, 256 }
 0x582   : > { %s4394_s24 = scalar_lea.hbm %s7087_s4, %s4596_s12  ;;  %p4755_p4 = scmp.lt.s32.totalorder %s4753_s9, %s4747_s30 }
 0x584   : > { %p4756_p5 = por %p4755_p4, %p4754_p2 }
 0x586   : > { %p4757_p6 = pnand %p4756_p5, %p4750_p1 }
 0x595   : > { %v4368_v62 = vpop.f32.mrf.mxu1 }
 0x597   : > { %v4618_v42 = vpop.f32.mrf.mxu1 }
 0x599   : > { %v4371_v60 = vpop.f32.mrf.mxu1 }
 0x59b   : > { %v4619_v3 = vpop.f32.mrf.mxu1 }
 0x5e3   : > { %v4260_v5 = vpop.permute.xlu1 %4259  ;;  %v4264_v36 = vpop.permute.xlu0 %4263 }
 0x5e4   : > { %v4286_v17 = vsel %vm401_vm12, %v4250_v55, %v4260_v5 }
 0x5e5   : > { %v4287_v47 = vsel %vm2577_vm4, %v4286_v17, %v4264_v36 }
 0x5e7   : > { %v4268_v51 = vpop.permute.xlu1 %4267 }
 0x5e8   : > { %v4288_v14 = vsel %vm2580_vm6, %v4287_v47, %v4268_v51 }
 0x5eb   : > { %v4272_v35 = vpop.permute.xlu1 %4271 }
 0x5ec   : > { %v4289_v8 = vsel %vm2583_vm7, %v4288_v14, %v4272_v35 }
 0x5ef   : > { %v4276_v18 = vpop.permute.xlu1 %4275 }
 0x5f0   : > { %v4297_v27 = vpop.permute.xlu0 %4296  ;;  %v4290_v25 = vsel %vm2586_vm8, %v4289_v8, %v4276_v18 }
 0x5f3   : > { %v4284_v56 = vpop.permute.xlu1 %4283 }
 0x5f4   : > { %v4280_v59 = vpop.permute.xlu0 %4279 }
 0x5f5   : > { %v4291_v1 = vsel %vm2589_vm10, %v4290_v25, %v4280_v59 }
 0x5f6   : > { %v4292_v16 = vsel %vm2592_vm11, %v4291_v1, %v4284_v56 }
 0x5f7   : > { %v4299_v52 = vmul.f32 %v4297_v27, %v4292_v16 }
 0x5f8   : > { %v4376_v30 = vpop.permute.xlu0 %4375 }
 0x5f9   : > { %v4369_v23 = vadd.f32 %v4368_v62, %v4299_v52 }
 0x5fb   : > { %v4378_v31 = vadd.f32 %v4376_v30, %v4369_v23 }
 0x5fd   : > { %4379 = vst [vmem:[%s214_s14] sm:$0xff] %v4378_v31 }
 0x5fe   : > { %4760 = shalt.err (!%p4757_p6)
}
 0x5ff   : > { %s4761_s11 = scalar_lea.hbm %s4394_s24, 128  ;;  %s4765_s6 = scalar_lea.hbm %s7087_s4, 512 }
 0x600   : > { %p4762_p7 = scmp.ne.s32.totalorder %s4394_s24, %s4761_s11  ;;  %p4766_p11 = scmp.lt.s32.totalorder %s4394_s24, %s7087_s4 }
 0x601   : > { %p4767_p12 = scmp.lt.s32.totalorder %s4765_s6, %s4761_s11 }
 0x602   : > { %p4763_p9 = pnand %p4762_p7, %p4950_p3 }
 0x603   : > { %p4768_p13 = por %p4767_p12, %p4766_p11 }
 0x604   : > { %p4764_p10 = pneg %p4763_p9 }
 0x606   : > { %p4769_p0 = pnand %p4768_p13, %p4764_p10 }
 0x608   : > { %4772 = shalt.err (!%p4769_p0)
}
 0x609   : > { %4620 = dma.vmem_to_hbm [thread:$0]  (%p4950_p3), %s4397_s18, 128, %s4394_s24, %s4381_s27  }
 0x60a PF: > { %p4626_p1 = scmp.ge.s32.totalorder %s4839_s22, 2  ;;  %s4408_s8 = sand.u32 1, %s4811_s15  }
 0x60b   : > { %s4409_s19 = scalar_lea.sflag [#allocation5], %s4408_s8 }
 0x60c   : > { %p4623_p2 = pnand %p4626_p1, %p4959_p8 }
 0x60e   : > { %p4624_p4 = pneg %p4623_p2 }
 0x610   : > { %4806 = dma.done.wait (%p4624_p4), %s4409_s19, 128  }
 0x611   : > { %4808 = vsyncadd (%p4624_p4), %s4409_s19, 4294967168  ;;  %s17_s22 = sadd.s32 1, %s4839_s22   ;;  %s7172_s15 = smov %s4815_s16 }
 0x612   : > { %p14_p5 = scmp.ge.s32.totalorder %s17_s22, 6   ;;  %s7173_s16 = smov %s4819_s17 }
 0x613   : > { %s7174_s17 = smov %s4968_s7  ;;  %s7175_s18 = smov %s4831_s20 }
 0x614   : > { %s7176_s19 = smov %s4835_s21  ;;  %s7177_s20 = smov %s7180_s25 }
 0x615   : > { %s7178_s21 = smov %s7184_s26  ;;  %16 = sbr.rel (!%p14_p5) target bundleno = 5 (0x5), region = 71 }
 0x61a   :  { %4414 = vsyncpa [#allocation5], 1 }
 0x61b   :  { %4416 = vsyncpa [#allocation5 + $0x1], 1 }

</bundles_post_ra>
